<compile_context>
chip_gen: v7x
topology: tpu7x:2x2x1
jax: 0.10.0
libtpu: 0.0.40
codegen_flags: <defaults>
</compile_context>

<pallas_src>
import functools

import jax
import jax.numpy as jnp
from jax import lax
from jax.experimental import pallas as pl
from jax.experimental.pallas import tpu as pltpu


def _round_up(x, m):
    return ((x + m - 1) // m) * m


def _largest_divisor_le(n, cap):
    """Largest divisor of n that is <= cap (keeps blocks full-sized)."""
    for d in range(min(cap, n), 0, -1):
        if n % d == 0:
            return d
    return n


# --------------------------------------------------------------------------
# Kernel
# --------------------------------------------------------------------------
def _attention_kernel(q_ref, k_ref, v_ref,
                      qw_ref, kw_ref, vw_ref, gw_ref, gb_ref,
                      ow_ref, ob_ref,
                      out_ref,
                      k_scr, vg_scr, ctx_scr,
                      *, head_num, c_pad):
    """One (batch element, seq tile) per grid step.

    q_ref : (1, TS, qDim) bf16   k_ref : (1, T, kDim) bf16   v_ref : (1, T, vDim) bf16
    qw/kw/vw/gw : (·, H*Cp) bf16 (1/sqrt(C) folded into qw, heads lane-aligned)
    gb : (1, H*Cp) f32           ow : (H*Cp, outDimP) bf16   ob : (1, outDimP) f32
    out_ref : (1, TS, outDimP)
    k_scr / vg_scr : VMEM (T, H*Cp) bf16    ctx_scr : VMEM (TS, H*Cp) bf16
    """
    sj = pl.program_id(1)

    # K and V*sigmoid(G) depend only on the batch element -> project once per
    # batch element (first seq tile) and cache in bf16 VMEM scratch.
    @pl.when(sj == 0)
    def _():
        kin = k_ref[0]                                                 # (T, kDim)
        vin = v_ref[0]                                                 # (T, vDim)
        k_scr[...] = jnp.dot(
            kin, kw_ref[...],
            preferred_element_type=jnp.float32).astype(jnp.bfloat16)   # (T, HCp)
        # V and G projected separately (avoids a (T, 2*HCp) fused temporary).
        v_slab = jnp.dot(vin, vw_ref[...],
                         preferred_element_type=jnp.float32)           # (T, HCp)
        g_slab = jax.nn.sigmoid(
            jnp.dot(vin, gw_ref[...], preferred_element_type=jnp.float32)
            + gb_ref[...])
        vg_scr[...] = (v_slab * g_slab).astype(jnp.bfloat16)

    # Fused Q projection for this seq tile (scale already folded into qw),
    # kept as bf16 for the score matmuls.
    q = jnp.dot(q_ref[0], qw_ref[...],
                preferred_element_type=jnp.float32).astype(jnp.bfloat16)  # (TS, HCp)

    # --- Per-head attention -------------------------------------------------
    # Issue all heads' score matmuls back-to-back (dense vmatmul pushes), then
    # run softmax + context matmuls; the scheduler hides the VPU/EUP softmax of
    # head h under the context matmul of head h-1.
    # TODO(synk): for very long T, tile the KV axis with an online (flash-style)
    # softmax instead of materializing full (TS, T) score tensors per head.
    scores = []
    for h in range(head_num):
        lo = h * c_pad
        scores.append(lax.dot_general(
            q[:, lo:lo + c_pad], k_scr[:, lo:lo + c_pad],
            (((1,), (1,)), ((), ())),
            preferred_element_type=jnp.float32))                        # (TS, T) f32

    for h in range(head_num):
        lo = h * c_pad
        a = scores[h]
        a = a - jnp.max(a, axis=-1, keepdims=True)
        p = jnp.exp(a)
        p = p / jnp.sum(p, axis=-1, keepdims=True)      # exact reciprocal (parity)
        # TODO(synk): training-mode attention dropout and the optional seqMask
        # path are not implemented (eval-mode forward only).
        ctx_scr[:, lo:lo + c_pad] = jnp.dot(
            p.astype(jnp.bfloat16), vg_scr[:, lo:lo + c_pad],
            preferred_element_type=jnp.float32).astype(jnp.bfloat16)

    # Single stacked output projection (bf16 MXU, lane-dense padded outDim).
    out = jnp.dot(ctx_scr[...], ow_ref[...],
                  preferred_element_type=jnp.float32) + ob_ref[...]
    out_ref[0] = out.astype(out_ref.dtype)


# --------------------------------------------------------------------------
# Host-side weight preparation (call once; off the per-step path)
# --------------------------------------------------------------------------
def prepare_weights(params, *, head_num, c_dim):
    """Fold the 1/sqrt(C) scale, lane-align each head to a multiple of 128,
    pad the output dim to a multiple of 128, and cast all matmul weights to
    bf16.  All pad entries are zero, so they are mathematically inert."""
    q_w, k_w, v_w = params["QTrans"], params["KTrans"], params["VTrans"]
    g_w, g_b = params["GTrans_w"], params["GTrans_b"]
    o_w, o_b = params["outTrans_w"], params["outTrans_b"]

    q_dim, k_dim, v_dim = q_w.shape[0], k_w.shape[0], v_w.shape[0]
    out_dim = o_w.shape[0]
    hc = head_num * c_dim
    assert q_w.shape == (q_dim, hc) and k_w.shape == (k_dim, hc)
    assert v_w.shape == (v_dim, hc) and g_w.shape == (hc, v_dim)
    assert o_w.shape == (out_dim, hc)

    c_pad = _round_up(c_dim, 128)          # lane-aligned per-head width
    hcp = head_num * c_pad
    out_dim_p = _round_up(out_dim, 128)

    def pad_head_cols(w):                  # (in, H*C) -> (in, H*Cpad), zero pad
        w = w.reshape(w.shape[0], head_num, c_dim)
        w = jnp.pad(w, ((0, 0), (0, 0), (0, c_pad - c_dim)))
        return w.reshape(w.shape[0], hcp)

    scale = 1.0 / float(c_dim) ** 0.5
    qw = pad_head_cols(q_w * scale).astype(jnp.bfloat16)     # (qDim, HCp)
    kw = pad_head_cols(k_w).astype(jnp.bfloat16)             # (kDim, HCp)
    vw = pad_head_cols(v_w).astype(jnp.bfloat16)             # (vDim, HCp)
    gw = pad_head_cols(g_w.T).astype(jnp.bfloat16)           # (vDim, HCp)
    gb = jnp.pad(g_b.reshape(head_num, c_dim),
                 ((0, 0), (0, c_pad - c_dim))).reshape(1, hcp).astype(jnp.float32)

    ow = o_w.T.reshape(head_num, c_dim, out_dim)
    ow = jnp.pad(ow, ((0, 0), (0, c_pad - c_dim), (0, out_dim_p - out_dim)))
    ow = ow.reshape(hcp, out_dim_p).astype(jnp.bfloat16)      # (HCp, outDimP)
    ob = jnp.pad(o_b, (0, out_dim_p - out_dim)).reshape(1, out_dim_p).astype(jnp.float32)

    return {
        "qw": qw, "kw": kw, "vw": vw, "gw": gw, "gb": gb, "ow": ow, "ob": ob,
        "dims": {"q_dim": q_dim, "k_dim": k_dim, "v_dim": v_dim,
                 "out_dim": out_dim, "out_dim_p": out_dim_p,
                 "c_pad": c_pad, "hcp": hcp},
    }


# --------------------------------------------------------------------------
# Wrapper
# --------------------------------------------------------------------------
def seq_fusion_attention(qin, kin, vin, prepared, *, head_num, c_dim, seq_tile=256):
    """qin: (N,S,qDim), kin: (N,T,kDim), vin: (N,T,vDim); `prepared` from
    prepare_weights().  Eval-mode forward (no seqMask, no dropout)."""
    N, S, q_dim = qin.shape
    _, T, k_dim = kin.shape
    _, _, v_dim = vin.shape
    d = prepared["dims"]
    assert (q_dim, k_dim, v_dim) == (d["q_dim"], d["k_dim"], d["v_dim"])
    c_pad, hcp = d["c_pad"], d["hcp"]
    out_dim, out_dim_p = d["out_dim"], d["out_dim_p"]

    out_dtype = qin.dtype
    # bf16 inputs: halve the HBM->VMEM DMA and feed the bf16-native MXU.
    qin_b = qin.astype(jnp.bfloat16)
    kin_b = kin.astype(jnp.bfloat16)
    vin_b = vin.astype(jnp.bfloat16)

    # Seq tile: largest divisor of S <= target (never a full-S fallback block).
    ts = _largest_divisor_le(S, seq_tile)
    grid = (N, S // ts)

    # VMEM limit from hardware (64 MiB/TC on v7x vs 128 MiB on v5e/v6e).
    try:
        vmem_cap = pltpu.get_tpu_info().vmem_capacity_bytes
        vmem_limit = min(int(vmem_cap * 3 // 4), 100 * 1024 * 1024)
    except Exception:
        vmem_limit = 48 * 1024 * 1024

    kernel = functools.partial(_attention_kernel, head_num=head_num, c_pad=c_pad)

    def const_spec(shape, single_buffer):
        # Constant-index operands: single-buffer them (default double buffer is
        # pure VMEM waste since the block index never changes).
        if single_buffer:
            return pl.BlockSpec(shape, lambda n, sj: (0, 0),
                                pipeline_mode=pl.Buffered(1))
        return pl.BlockSpec(shape, lambda n, sj: (0, 0))

    def build(single_buffer):
        return pl.pallas_call(
            kernel,
            out_shape=jax.ShapeDtypeStruct((N, S, out_dim_p), out_dtype),
            grid_spec=pltpu.PrefetchScalarGridSpec(
                num_scalar_prefetch=0,
                grid=grid,
                in_specs=[
                    pl.BlockSpec((1, ts, q_dim), lambda n, sj: (n, sj, 0)),
                    # TODO(synk): for very long T (v7x 64 MiB VMEM), pass Kin/Vin
                    # with memory_space=pl.ANY and project them in DMA'd KV
                    # chunks directly into k_scr/vg_scr instead of staging the
                    # full-T blocks through the pipeline.
                    pl.BlockSpec((1, T, k_dim), lambda n, sj: (n, 0, 0)),
                    pl.BlockSpec((1, T, v_dim), lambda n, sj: (n, 0, 0)),
                    const_spec((q_dim, hcp), single_buffer),
                    const_spec((k_dim, hcp), single_buffer),
                    const_spec((v_dim, hcp), single_buffer),
                    const_spec((v_dim, hcp), single_buffer),
                    const_spec((1, hcp), single_buffer),
                    const_spec((hcp, out_dim_p), single_buffer),
                    const_spec((1, out_dim_p), single_buffer),
                ],
                out_specs=pl.BlockSpec((1, ts, out_dim_p), lambda n, sj: (n, sj, 0)),
                scratch_shapes=[
                    pltpu.VMEM((T, hcp), jnp.bfloat16),    # cached K slab
                    pltpu.VMEM((T, hcp), jnp.bfloat16),    # cached V*sigmoid(G)
                    pltpu.VMEM((ts, hcp), jnp.bfloat16),   # stacked per-head ctx
                ],
            ),
            compiler_params=pltpu.CompilerParams(
                # batch axis parallel (megacore / 2-TC); seq-tile axis arbitrary
                # so the K / V*G caching at sj==0 sees a batch row's tiles in order.
                dimension_semantics=("parallel", "arbitrary"),
                vmem_limit_bytes=vmem_limit,
            ),
        )

    args = (qin_b, kin_b, vin_b,
            prepared["qw"], prepared["kw"], prepared["vw"], prepared["gw"],
            prepared["gb"], prepared["ow"], prepared["ob"])
    try:
        out = build(single_buffer=True)(*args)
    except Exception:
        # pipeline_mode=pl.Buffered(1) unsupported on this jax build ->
        # fall back to default double buffering for the constant operands.
        out = build(single_buffer=False)(*args)

    return out[..., :out_dim] if out_dim_p != out_dim else out


# --------------------------------------------------------------------------
# Pure-JAX reference (mirror of the PyTorch forward, eval mode, no mask)
# --------------------------------------------------------------------------
def reference_forward(qin, kin, vin, params, *, head_num, c_dim):
    N, S, _ = qin.shape
    T = kin.shape[1]
    q = jnp.einsum("nsi,ij->nsj", qin, params["QTrans"]).reshape(N, S, head_num, c_dim).transpose(2, 0, 1, 3)
    k = jnp.einsum("nsi,ij->nsj", kin, params["KTrans"]).reshape(N, T, head_num, c_dim).transpose(2, 0, 1, 3)
    v = jnp.einsum("nsi,ij->nsj", vin, params["VTrans"]).reshape(N, T, head_num, c_dim).transpose(2, 0, 1, 3)
    g = (vin @ params["GTrans_w"].T + params["GTrans_b"]).reshape(N, T, head_num, c_dim).transpose(2, 0, 1, 3)
    g = jax.nn.sigmoid(g)
    a = jnp.einsum("hnsi,hnti->hnst", q, k) / jnp.sqrt(jnp.float32(c_dim))
    a = jax.nn.softmax(a, axis=-1)
    ctx = jnp.einsum("hnst,hnti,hnti->nshi", a, v, g)
    ctx = ctx.reshape(N, S, head_num * c_dim)
    return ctx @ params["outTrans_w"].T + params["outTrans_b"]


def init_params(key, q_dim, k_dim, v_dim, out_dim, head_num, c_dim):
    """Deterministic synthetic init (xavier-style scales).

    NOTE: the PyTorch _reset_parameters zeroes GTrans.weight / outTrans.*,
    which would make the output identically zero; small random values are used
    instead so the kernel is exercised non-trivially."""
    hc = head_num * c_dim
    ks = jax.random.split(key, 7)

    def xavier(k, shape):
        fan_in, fan_out = shape[-2], shape[-1]
        bound = jnp.sqrt(6.0 / (fan_in + fan_out))
        return jax.random.uniform(k, shape, jnp.float32, -bound, bound)

    return {
        "QTrans": xavier(ks[0], (q_dim, hc)),
        "KTrans": xavier(ks[1], (k_dim, hc)),
        "VTrans": xavier(ks[2], (v_dim, hc)),
        "GTrans_w": 0.1 * jax.random.normal(ks[3], (hc, v_dim), jnp.float32),
        "GTrans_b": jnp.ones((hc,), jnp.float32),
        "outTrans_w": 0.1 * jax.random.normal(ks[4], (out_dim, hc), jnp.float32),
        "outTrans_b": 0.01 * jax.random.normal(ks[5], (out_dim,), jnp.float32),
    }


if __name__ == "__main__":
    # Small shapes consistent with the module: N=2, S=T=8, qDim=kDim=vDim=outDim=32.
    N, S, T = 2, 8, 8
    q_dim = k_dim = v_dim = out_dim = 32
    head_num = 4
    c_dim = q_dim // head_num  # = round(qDim / headNum)

    key = jax.random.PRNGKey(0)
    k_p, k_q, k_k, k_v = jax.random.split(key, 4)

    params = init_params(k_p, q_dim, k_dim, v_dim, out_dim, head_num, c_dim)
    qin = jax.random.normal(k_q, (N, S, q_dim), jnp.float32)
    kin = jax.random.normal(k_k, (N, T, k_dim), jnp.float32)
    vin = jax.random.normal(k_v, (N, T, v_dim), jnp.float32)

    prepared = prepare_weights(params, head_num=head_num, c_dim=c_dim)
    out = seq_fusion_attention(qin, kin, vin, prepared,
                               head_num=head_num, c_dim=c_dim)
    out = jax.block_until_ready(out)

    ref = reference_forward(qin, kin, vin, params,
                            head_num=head_num, c_dim=c_dim)
    assert out.shape == (N, S, out_dim)
    # Tolerance accounts for bf16 matmul operands (f32 accumulation) vs the
    # pure-f32 reference.
    assert jnp.allclose(out, ref, atol=3e-2, rtol=3e-2), "mismatch vs reference"

    print("KERNEL_OK")
</pallas_src>

<mosaic_0001>
module attributes {stable_mosaic.version = 11 : i64} {
  func.func @_attention_kernel(%arg0: i32, %arg1: i32, %arg2: memref<1x8x32xbf16, #tpu.memory_space<vmem>>, %arg3: memref<1x8x32xbf16, #tpu.memory_space<vmem>>, %arg4: memref<1x8x32xbf16, #tpu.memory_space<vmem>>, %arg5: memref<32x512xbf16, #tpu.memory_space<vmem>>, %arg6: memref<32x512xbf16, #tpu.memory_space<vmem>>, %arg7: memref<32x512xbf16, #tpu.memory_space<vmem>>, %arg8: memref<32x512xbf16, #tpu.memory_space<vmem>>, %arg9: memref<1x512xf32, #tpu.memory_space<vmem>>, %arg10: memref<512x128xbf16, #tpu.memory_space<vmem>>, %arg11: memref<1x128xf32, #tpu.memory_space<vmem>>, %arg12: memref<1x8x128xf32, #tpu.memory_space<vmem>>, %arg13: memref<8x512xbf16, #tpu.memory_space<vmem>>, %arg14: memref<8x512xbf16, #tpu.memory_space<vmem>>, %arg15: memref<8x512xbf16, #tpu.memory_space<vmem>>) attributes {dimension_semantics = [#tpu.dimension_semantics<parallel>, #tpu.dimension_semantics<arbitrary>], iteration_bounds = array<i64: 2, 1>, scalar_prefetch = 0 : i64, scratch_operands = 3 : i64, tpu.core_type = #tpu.core_type<tc>, window_params = [{transform_indices = @transform_0, window_bounds = array<i64: 1, 8, 32>}, {transform_indices = @transform_1, window_bounds = array<i64: 1, 8, 32>}, {transform_indices = @transform_2, window_bounds = array<i64: 1, 8, 32>}, {pipeline_mode = #tpu.pipeline_mode<synchronous>, transform_indices = @transform_3, window_bounds = array<i64: 32, 512>}, {pipeline_mode = #tpu.pipeline_mode<synchronous>, transform_indices = @transform_4, window_bounds = array<i64: 32, 512>}, {pipeline_mode = #tpu.pipeline_mode<synchronous>, transform_indices = @transform_5, window_bounds = array<i64: 32, 512>}, {pipeline_mode = #tpu.pipeline_mode<synchronous>, transform_indices = @transform_6, window_bounds = array<i64: 32, 512>}, {pipeline_mode = #tpu.pipeline_mode<synchronous>, transform_indices = @transform_7, window_bounds = array<i64: 1, 512>}, {pipeline_mode = #tpu.pipeline_mode<synchronous>, transform_indices = @transform_8, window_bounds = array<i64: 512, 128>}, {pipeline_mode = #tpu.pipeline_mode<synchronous>, transform_indices = @transform_9, window_bounds = array<i64: 1, 128>}, {transform_indices = @transform_10, window_bounds = array<i64: 1, 8, 128>}]} {
    %c0_i32 = arith.constant 0 : i32
    %0 = arith.cmpi eq, %arg1, %c0_i32 : i32
    %1 = arith.extui %0 : i1 to i32
    %c0_i32_0 = arith.constant 0 : i32
    %2 = arith.cmpi ne, %1, %c0_i32_0 : i32
    scf.if %2 {
      %c0_52 = arith.constant 0 : index
      %c0_53 = arith.constant 0 : index
      %c0_54 = arith.constant 0 : index
      %85 = vector.load %arg3[%c0_52, %c0_53, %c0_54] : memref<1x8x32xbf16, #tpu.memory_space<vmem>>, vector<1x8x32xbf16>
      %86 = vector.shape_cast %85 : vector<1x8x32xbf16> to vector<8x32xbf16>
      %c0_55 = arith.constant 0 : index
      %c0_56 = arith.constant 0 : index
      %c0_57 = arith.constant 0 : index
      %87 = vector.load %arg4[%c0_55, %c0_56, %c0_57] : memref<1x8x32xbf16, #tpu.memory_space<vmem>>, vector<1x8x32xbf16>
      %88 = vector.shape_cast %87 : vector<1x8x32xbf16> to vector<8x32xbf16>
      %c0_58 = arith.constant 0 : index
      %c0_59 = arith.constant 0 : index
      %89 = vector.load %arg6[%c0_58, %c0_59] : memref<32x512xbf16, #tpu.memory_space<vmem>>, vector<32x512xbf16>
      %cst_60 = arith.constant dense<0.000000e+00> : vector<8x512xf32>
      %90 = tpu.matmul %86, %89, %cst_60 {dimension_numbers = #tpu.dot_dimension_numbers<[1], [0], [0], [1], [0, 0, 1, 1], [], []>} : vector<8x32xbf16>, vector<32x512xbf16>, vector<8x512xf32> -> vector<8x512xf32>
      %91 = arith.truncf %90 : vector<8x512xf32> to vector<8x512xbf16>
      %c0_61 = arith.constant 0 : index
      %c0_62 = arith.constant 0 : index
      %92 = vector.load %arg13[%c0_61, %c0_62] : memref<8x512xbf16, #tpu.memory_space<vmem>>, vector<8x512xbf16>
      tpu.vector_store %arg13[%c0_61, %c0_62], %91 {strides = array<i32>} : memref<8x512xbf16, #tpu.memory_space<vmem>>, vector<8x512xbf16>,
      %c0_63 = arith.constant 0 : index
      %c0_64 = arith.constant 0 : index
      %93 = vector.load %arg7[%c0_63, %c0_64] : memref<32x512xbf16, #tpu.memory_space<vmem>>, vector<32x512xbf16>
      %cst_65 = arith.constant dense<0.000000e+00> : vector<8x512xf32>
      %94 = tpu.matmul %88, %93, %cst_65 {dimension_numbers = #tpu.dot_dimension_numbers<[1], [0], [0], [1], [0, 0, 1, 1], [], []>} : vector<8x32xbf16>, vector<32x512xbf16>, vector<8x512xf32> -> vector<8x512xf32>
      %c0_66 = arith.constant 0 : index
      %c0_67 = arith.constant 0 : index
      %95 = vector.load %arg8[%c0_66, %c0_67] : memref<32x512xbf16, #tpu.memory_space<vmem>>, vector<32x512xbf16>
      %cst_68 = arith.constant dense<0.000000e+00> : vector<8x512xf32>
      %96 = tpu.matmul %88, %95, %cst_68 {dimension_numbers = #tpu.dot_dimension_numbers<[1], [0], [0], [1], [0, 0, 1, 1], [], []>} : vector<8x32xbf16>, vector<32x512xbf16>, vector<8x512xf32> -> vector<8x512xf32>
      %c0_69 = arith.constant 0 : index
      %c0_70 = arith.constant 0 : index
      %97 = vector.load %arg9[%c0_69, %c0_70] : memref<1x512xf32, #tpu.memory_space<vmem>>, vector<1x512xf32>
      %98 = vector.broadcast %97 : vector<1x512xf32> to vector<8x512xf32>
      %99 = arith.addf %96, %98 : vector<8x512xf32>
      %100 = arith.negf %99 : vector<8x512xf32>
      %101 = math.exp %100 : vector<8x512xf32>
      %cst_71 = arith.constant 1.000000e+00 : f32
      %102 = vector.broadcast %cst_71 : f32 to vector<8x512xf32>
      %103 = arith.addf %102, %101 : vector<8x512xf32>
      %104 = arith.divf %102, %103 : vector<8x512xf32>
      %105 = arith.mulf %94, %104 : vector<8x512xf32>
      %106 = arith.truncf %105 : vector<8x512xf32> to vector<8x512xbf16>
      %c0_72 = arith.constant 0 : index
      %c0_73 = arith.constant 0 : index
      %107 = vector.load %arg14[%c0_72, %c0_73] : memref<8x512xbf16, #tpu.memory_space<vmem>>, vector<8x512xbf16>
      tpu.vector_store %arg14[%c0_72, %c0_73], %106 {strides = array<i32>} : memref<8x512xbf16, #tpu.memory_space<vmem>>, vector<8x512xbf16>,
    } else {
    }
    %c0 = arith.constant 0 : index
    %c0_1 = arith.constant 0 : index
    %c0_2 = arith.constant 0 : index
    %3 = vector.load %arg2[%c0, %c0_1, %c0_2] : memref<1x8x32xbf16, #tpu.memory_space<vmem>>, vector<1x8x32xbf16>
    %4 = vector.shape_cast %3 : vector<1x8x32xbf16> to vector<8x32xbf16>
    %c0_3 = arith.constant 0 : index
    %c0_4 = arith.constant 0 : index
    %5 = vector.load %arg5[%c0_3, %c0_4] : memref<32x512xbf16, #tpu.memory_space<vmem>>, vector<32x512xbf16>
    %cst = arith.constant dense<0.000000e+00> : vector<8x512xf32>
    %6 = tpu.matmul %4, %5, %cst {dimension_numbers = #tpu.dot_dimension_numbers<[1], [0], [0], [1], [0, 0, 1, 1], [], []>} : vector<8x32xbf16>, vector<32x512xbf16>, vector<8x512xf32> -> vector<8x512xf32>
    %7 = arith.truncf %6 : vector<8x512xf32> to vector<8x512xbf16>
    %8 = vector.extract_strided_slice %7 {offsets = [0, 0], sizes = [8, 128], strides = [1, 1]} : vector<8x512xbf16> to vector<8x128xbf16>
    %c0_5 = arith.constant 0 : index
    %c0_6 = arith.constant 0 : index
    %9 = vector.load %arg13[%c0_5, %c0_6] : memref<8x512xbf16, #tpu.memory_space<vmem>>, vector<8x128xbf16>
    %cst_7 = arith.constant dense<0.000000e+00> : vector<8x8xf32>
    %10 = tpu.matmul %8, %9, %cst_7 {dimension_numbers = #tpu.dot_dimension_numbers<[1], [1], [0], [0], [0, 0, 1, 0], [], []>} : vector<8x128xbf16>, vector<8x128xbf16>, vector<8x8xf32> -> vector<8x8xf32>
    %11 = vector.extract_strided_slice %7 {offsets = [0, 128], sizes = [8, 128], strides = [1, 1]} : vector<8x512xbf16> to vector<8x128xbf16>
    %c0_8 = arith.constant 0 : index
    %c128 = arith.constant 128 : index
    %12 = vector.load %arg13[%c0_8, %c128] : memref<8x512xbf16, #tpu.memory_space<vmem>>, vector<8x128xbf16>
    %cst_9 = arith.constant dense<0.000000e+00> : vector<8x8xf32>
    %13 = tpu.matmul %11, %12, %cst_9 {dimension_numbers = #tpu.dot_dimension_numbers<[1], [1], [0], [0], [0, 0, 1, 0], [], []>} : vector<8x128xbf16>, vector<8x128xbf16>, vector<8x8xf32> -> vector<8x8xf32>
    %14 = vector.extract_strided_slice %7 {offsets = [0, 256], sizes = [8, 128], strides = [1, 1]} : vector<8x512xbf16> to vector<8x128xbf16>
    %c0_10 = arith.constant 0 : index
    %c256 = arith.constant 256 : index
    %15 = vector.load %arg13[%c0_10, %c256] : memref<8x512xbf16, #tpu.memory_space<vmem>>, vector<8x128xbf16>
    %cst_11 = arith.constant dense<0.000000e+00> : vector<8x8xf32>
    %16 = tpu.matmul %14, %15, %cst_11 {dimension_numbers = #tpu.dot_dimension_numbers<[1], [1], [0], [0], [0, 0, 1, 0], [], []>} : vector<8x128xbf16>, vector<8x128xbf16>, vector<8x8xf32> -> vector<8x8xf32>
    %17 = vector.extract_strided_slice %7 {offsets = [0, 384], sizes = [8, 128], strides = [1, 1]} : vector<8x512xbf16> to vector<8x128xbf16>
    %c0_12 = arith.constant 0 : index
    %c384 = arith.constant 384 : index
    %18 = vector.load %arg13[%c0_12, %c384] : memref<8x512xbf16, #tpu.memory_space<vmem>>, vector<8x128xbf16>
    %cst_13 = arith.constant dense<0.000000e+00> : vector<8x8xf32>
    %19 = tpu.matmul %17, %18, %cst_13 {dimension_numbers = #tpu.dot_dimension_numbers<[1], [1], [0], [0], [0, 0, 1, 0], [], []>} : vector<8x128xbf16>, vector<8x128xbf16>, vector<8x8xf32> -> vector<8x8xf32>
    %cst_14 = arith.constant dense<0xFF800000> : vector<8xf32>
    %20 = vector.multi_reduction <maximumf>, %10, %cst_14 [1] : vector<8x8xf32> to vector<8xf32>
    %21 = vector.shape_cast %20 : vector<8xf32> to vector<8x1xf32>
    %22 = vector.broadcast %21 : vector<8x1xf32> to vector<8x8xf32>
    %23 = arith.subf %10, %22 : vector<8x8xf32>
    %24 = math.exp %23 : vector<8x8xf32>
    %cst_15 = arith.constant dense<0.000000e+00> : vector<8xf32>
    %25 = vector.multi_reduction <add>, %24, %cst_15 [1] : vector<8x8xf32> to vector<8xf32>
    %26 = vector.shape_cast %25 : vector<8xf32> to vector<8x1xf32>
    %27 = vector.broadcast %26 : vector<8x1xf32> to vector<8x8xf32>
    %28 = arith.divf %24, %27 : vector<8x8xf32>
    %29 = arith.truncf %28 : vector<8x8xf32> to vector<8x8xbf16>
    %c0_16 = arith.constant 0 : index
    %c0_17 = arith.constant 0 : index
    %30 = vector.load %arg14[%c0_16, %c0_17] : memref<8x512xbf16, #tpu.memory_space<vmem>>, vector<8x128xbf16>
    %cst_18 = arith.constant dense<0.000000e+00> : vector<8x128xf32>
    %31 = tpu.matmul %29, %30, %cst_18 {dimension_numbers = #tpu.dot_dimension_numbers<[1], [0], [0], [1], [0, 0, 1, 1], [], []>} : vector<8x8xbf16>, vector<8x128xbf16>, vector<8x128xf32> -> vector<8x128xf32>
    %32 = arith.truncf %31 : vector<8x128xf32> to vector<8x128xbf16>
    %c0_19 = arith.constant 0 : index
    %c0_20 = arith.constant 0 : index
    %33 = vector.load %arg15[%c0_19, %c0_20] : memref<8x512xbf16, #tpu.memory_space<vmem>>, vector<8x128xbf16>
    tpu.vector_store %arg15[%c0_19, %c0_20], %32 {strides = array<i32>} : memref<8x512xbf16, #tpu.memory_space<vmem>>, vector<8x128xbf16>,
    %cst_21 = arith.constant dense<0xFF800000> : vector<8xf32>
    %34 = vector.multi_reduction <maximumf>, %13, %cst_21 [1] : vector<8x8xf32> to vector<8xf32>
    %35 = vector.shape_cast %34 : vector<8xf32> to vector<8x1xf32>
    %36 = vector.broadcast %35 : vector<8x1xf32> to vector<8x8xf32>
    %37 = arith.subf %13, %36 : vector<8x8xf32>
    %38 = math.exp %37 : vector<8x8xf32>
    %cst_22 = arith.constant dense<0.000000e+00> : vector<8xf32>
    %39 = vector.multi_reduction <add>, %38, %cst_22 [1] : vector<8x8xf32> to vector<8xf32>
    %40 = vector.shape_cast %39 : vector<8xf32> to vector<8x1xf32>
    %41 = vector.broadcast %40 : vector<8x1xf32> to vector<8x8xf32>
    %42 = arith.divf %38, %41 : vector<8x8xf32>
    %43 = arith.truncf %42 : vector<8x8xf32> to vector<8x8xbf16>
    %c0_23 = arith.constant 0 : index
    %c128_24 = arith.constant 128 : index
    %44 = vector.load %arg14[%c0_23, %c128_24] : memref<8x512xbf16, #tpu.memory_space<vmem>>, vector<8x128xbf16>
    %cst_25 = arith.constant dense<0.000000e+00> : vector<8x128xf32>
    %45 = tpu.matmul %43, %44, %cst_25 {dimension_numbers = #tpu.dot_dimension_numbers<[1], [0], [0], [1], [0, 0, 1, 1], [], []>} : vector<8x8xbf16>, vector<8x128xbf16>, vector<8x128xf32> -> vector<8x128xf32>
    %46 = arith.truncf %45 : vector<8x128xf32> to vector<8x128xbf16>
    %c0_26 = arith.constant 0 : index
    %c128_27 = arith.constant 128 : index
    %47 = vector.load %arg15[%c0_26, %c128_27] : memref<8x512xbf16, #tpu.memory_space<vmem>>, vector<8x128xbf16>
    tpu.vector_store %arg15[%c0_26, %c128_27], %46 {strides = array<i32>} : memref<8x512xbf16, #tpu.memory_space<vmem>>, vector<8x128xbf16>,
    %cst_28 = arith.constant dense<0xFF800000> : vector<8xf32>
    %48 = vector.multi_reduction <maximumf>, %16, %cst_28 [1] : vector<8x8xf32> to vector<8xf32>
    %49 = vector.shape_cast %48 : vector<8xf32> to vector<8x1xf32>
    %50 = vector.broadcast %49 : vector<8x1xf32> to vector<8x8xf32>
    %51 = arith.subf %16, %50 : vector<8x8xf32>
    %52 = math.exp %51 : vector<8x8xf32>
    %cst_29 = arith.constant dense<0.000000e+00> : vector<8xf32>
    %53 = vector.multi_reduction <add>, %52, %cst_29 [1] : vector<8x8xf32> to vector<8xf32>
    %54 = vector.shape_cast %53 : vector<8xf32> to vector<8x1xf32>
    %55 = vector.broadcast %54 : vector<8x1xf32> to vector<8x8xf32>
    %56 = arith.divf %52, %55 : vector<8x8xf32>
    %57 = arith.truncf %56 : vector<8x8xf32> to vector<8x8xbf16>
    %c0_30 = arith.constant 0 : index
    %c256_31 = arith.constant 256 : index
    %58 = vector.load %arg14[%c0_30, %c256_31] : memref<8x512xbf16, #tpu.memory_space<vmem>>, vector<8x128xbf16>
    %cst_32 = arith.constant dense<0.000000e+00> : vector<8x128xf32>
    %59 = tpu.matmul %57, %58, %cst_32 {dimension_numbers = #tpu.dot_dimension_numbers<[1], [0], [0], [1], [0, 0, 1, 1], [], []>} : vector<8x8xbf16>, vector<8x128xbf16>, vector<8x128xf32> -> vector<8x128xf32>
    %60 = arith.truncf %59 : vector<8x128xf32> to vector<8x128xbf16>
    %c0_33 = arith.constant 0 : index
    %c256_34 = arith.constant 256 : index
    %61 = vector.load %arg15[%c0_33, %c256_34] : memref<8x512xbf16, #tpu.memory_space<vmem>>, vector<8x128xbf16>
    tpu.vector_store %arg15[%c0_33, %c256_34], %60 {strides = array<i32>} : memref<8x512xbf16, #tpu.memory_space<vmem>>, vector<8x128xbf16>,
    %cst_35 = arith.constant dense<0xFF800000> : vector<8xf32>
    %62 = vector.multi_reduction <maximumf>, %19, %cst_35 [1] : vector<8x8xf32> to vector<8xf32>
    %63 = vector.shape_cast %62 : vector<8xf32> to vector<8x1xf32>
    %64 = vector.broadcast %63 : vector<8x1xf32> to vector<8x8xf32>
    %65 = arith.subf %19, %64 : vector<8x8xf32>
    %66 = math.exp %65 : vector<8x8xf32>
    %cst_36 = arith.constant dense<0.000000e+00> : vector<8xf32>
    %67 = vector.multi_reduction <add>, %66, %cst_36 [1] : vector<8x8xf32> to vector<8xf32>
    %68 = vector.shape_cast %67 : vector<8xf32> to vector<8x1xf32>
    %69 = vector.broadcast %68 : vector<8x1xf32> to vector<8x8xf32>
    %70 = arith.divf %66, %69 : vector<8x8xf32>
    %71 = arith.truncf %70 : vector<8x8xf32> to vector<8x8xbf16>
    %c0_37 = arith.constant 0 : index
    %c384_38 = arith.constant 384 : index
    %72 = vector.load %arg14[%c0_37, %c384_38] : memref<8x512xbf16, #tpu.memory_space<vmem>>, vector<8x128xbf16>
    %cst_39 = arith.constant dense<0.000000e+00> : vector<8x128xf32>
    %73 = tpu.matmul %71, %72, %cst_39 {dimension_numbers = #tpu.dot_dimension_numbers<[1], [0], [0], [1], [0, 0, 1, 1], [], []>} : vector<8x8xbf16>, vector<8x128xbf16>, vector<8x128xf32> -> vector<8x128xf32>
    %74 = arith.truncf %73 : vector<8x128xf32> to vector<8x128xbf16>
    %c0_40 = arith.constant 0 : index
    %c384_41 = arith.constant 384 : index
    %75 = vector.load %arg15[%c0_40, %c384_41] : memref<8x512xbf16, #tpu.memory_space<vmem>>, vector<8x128xbf16>
    tpu.vector_store %arg15[%c0_40, %c384_41], %74 {strides = array<i32>} : memref<8x512xbf16, #tpu.memory_space<vmem>>, vector<8x128xbf16>,
    %c0_42 = arith.constant 0 : index
    %c0_43 = arith.constant 0 : index
    %76 = vector.load %arg15[%c0_42, %c0_43] : memref<8x512xbf16, #tpu.memory_space<vmem>>, vector<8x512xbf16>
    %c0_44 = arith.constant 0 : index
    %c0_45 = arith.constant 0 : index
    %77 = vector.load %arg10[%c0_44, %c0_45] : memref<512x128xbf16, #tpu.memory_space<vmem>>, vector<512x128xbf16>
    %cst_46 = arith.constant dense<0.000000e+00> : vector<8x128xf32>
    %78 = tpu.matmul %76, %77, %cst_46 {dimension_numbers = #tpu.dot_dimension_numbers<[1], [0], [0], [1], [0, 0, 1, 1], [], []>} : vector<8x512xbf16>, vector<512x128xbf16>, vector<8x128xf32> -> vector<8x128xf32>
    %c0_47 = arith.constant 0 : index
    %c0_48 = arith.constant 0 : index
    %79 = vector.load %arg11[%c0_47, %c0_48] : memref<1x128xf32, #tpu.memory_space<vmem>>, vector<1x128xf32>
    %80 = vector.broadcast %79 : vector<1x128xf32> to vector<8x128xf32>
    %81 = arith.addf %78, %80 : vector<8x128xf32>
    %c0_49 = arith.constant 0 : index
    %c0_50 = arith.constant 0 : index
    %c0_51 = arith.constant 0 : index
    %82 = vector.load %arg12[%c0_49, %c0_50, %c0_51] : memref<1x8x128xf32, #tpu.memory_space<vmem>>, vector<1x8x128xf32>
    %83 = vector.shape_cast %82 : vector<1x8x128xf32> to vector<8x128xf32>
    %84 = vector.shape_cast %81 : vector<8x128xf32> to vector<1x8x128xf32>
    tpu.vector_store %arg12[%c0_49, %c0_50, %c0_51], %84 {strides = array<i32>} : memref<1x8x128xf32, #tpu.memory_space<vmem>>, vector<1x8x128xf32>,
    return
  }
  func.func @transform_0(%arg0: i32, %arg1: i32) -> (i32, i32, i32) {
    %c0_i32 = arith.constant 0 : i32
    %c0_i32_0 = arith.constant 0 : i32
    return %arg0, %arg1, %c0_i32 : i32, i32, i32
  }
  func.func @transform_1(%arg0: i32, %arg1: i32) -> (i32, i32, i32) {
    %c0_i32 = arith.constant 0 : i32
    %c0_i32_0 = arith.constant 0 : i32
    %c0_i32_1 = arith.constant 0 : i32
    return %arg0, %c0_i32, %c0_i32_0 : i32, i32, i32
  }
  func.func @transform_2(%arg0: i32, %arg1: i32) -> (i32, i32, i32) {
    %c0_i32 = arith.constant 0 : i32
    %c0_i32_0 = arith.constant 0 : i32
    %c0_i32_1 = arith.constant 0 : i32
    return %arg0, %c0_i32, %c0_i32_0 : i32, i32, i32
  }
  func.func @transform_3(%arg0: i32, %arg1: i32) -> (i32, i32) {
    %c0_i32 = arith.constant 0 : i32
    %c0_i32_0 = arith.constant 0 : i32
    %c0_i32_1 = arith.constant 0 : i32
    return %c0_i32, %c0_i32_0 : i32, i32
  }
  func.func @transform_4(%arg0: i32, %arg1: i32) -> (i32, i32) {
    %c0_i32 = arith.constant 0 : i32
    %c0_i32_0 = arith.constant 0 : i32
    %c0_i32_1 = arith.constant 0 : i32
    return %c0_i32, %c0_i32_0 : i32, i32
  }
  func.func @transform_5(%arg0: i32, %arg1: i32) -> (i32, i32) {
    %c0_i32 = arith.constant 0 : i32
    %c0_i32_0 = arith.constant 0 : i32
    %c0_i32_1 = arith.constant 0 : i32
    return %c0_i32, %c0_i32_0 : i32, i32
  }
  func.func @transform_6(%arg0: i32, %arg1: i32) -> (i32, i32) {
    %c0_i32 = arith.constant 0 : i32
    %c0_i32_0 = arith.constant 0 : i32
    %c0_i32_1 = arith.constant 0 : i32
    return %c0_i32, %c0_i32_0 : i32, i32
  }
  func.func @transform_7(%arg0: i32, %arg1: i32) -> (i32, i32) {
    %c0_i32 = arith.constant 0 : i32
    %c0_i32_0 = arith.constant 0 : i32
    %c0_i32_1 = arith.constant 0 : i32
    return %c0_i32, %c0_i32_0 : i32, i32
  }
  func.func @transform_8(%arg0: i32, %arg1: i32) -> (i32, i32) {
    %c0_i32 = arith.constant 0 : i32
    %c0_i32_0 = arith.constant 0 : i32
    %c0_i32_1 = arith.constant 0 : i32
    return %c0_i32, %c0_i32_0 : i32, i32
  }
  func.func @transform_9(%arg0: i32, %arg1: i32) -> (i32, i32) {
    %c0_i32 = arith.constant 0 : i32
    %c0_i32_0 = arith.constant 0 : i32
    %c0_i32_1 = arith.constant 0 : i32
    return %c0_i32, %c0_i32_0 : i32, i32
  }
  func.func @transform_10(%arg0: i32, %arg1: i32) -> (i32, i32, i32) {
    %c0_i32 = arith.constant 0 : i32
    %c0_i32_0 = arith.constant 0 : i32
    return %arg0, %arg1, %c0_i32 : i32, i32, i32
  }
}

module attributes {stable_mosaic.version = 11 : i64} {
  func.func @_attention_kernel(%arg0: i32, %arg1: i32, %arg2: memref<1x8x32xbf16, #tpu.memory_space<vmem>>, %arg3: memref<1x8x32xbf16, #tpu.memory_space<vmem>>, %arg4: memref<1x8x32xbf16, #tpu.memory_space<vmem>>, %arg5: memref<32x512xbf16, #tpu.memory_space<vmem>>, %arg6: memref<32x512xbf16, #tpu.memory_space<vmem>>, %arg7: memref<32x512xbf16, #tpu.memory_space<vmem>>, %arg8: memref<32x512xbf16, #tpu.memory_space<vmem>>, %arg9: memref<1x512xf32, #tpu.memory_space<vmem>>, %arg10: memref<512x128xbf16, #tpu.memory_space<vmem>>, %arg11: memref<1x128xf32, #tpu.memory_space<vmem>>, %arg12: memref<1x8x128xf32, #tpu.memory_space<vmem>>, %arg13: memref<8x512xbf16, #tpu.memory_space<vmem>>, %arg14: memref<8x512xbf16, #tpu.memory_space<vmem>>, %arg15: memref<8x512xbf16, #tpu.memory_space<vmem>>) attributes {dimension_semantics = [#tpu.dimension_semantics<parallel>, #tpu.dimension_semantics<arbitrary>], iteration_bounds = array<i64: 2, 1>, scalar_prefetch = 0 : i64, scratch_operands = 3 : i64, tpu.core_type = #tpu.core_type<tc>, window_params = [{transform_indices = @transform_0, window_bounds = array<i64: 1, 8, 32>}, {transform_indices = @transform_1, window_bounds = array<i64: 1, 8, 32>}, {transform_indices = @transform_2, window_bounds = array<i64: 1, 8, 32>}, {pipeline_mode = #tpu.pipeline_mode<synchronous>, transform_indices = @transform_3, window_bounds = array<i64: 32, 512>}, {pipeline_mode = #tpu.pipeline_mode<synchronous>, transform_indices = @transform_4, window_bounds = array<i64: 32, 512>}, {pipeline_mode = #tpu.pipeline_mode<synchronous>, transform_indices = @transform_5, window_bounds = array<i64: 32, 512>}, {pipeline_mode = #tpu.pipeline_mode<synchronous>, transform_indices = @transform_6, window_bounds = array<i64: 32, 512>}, {pipeline_mode = #tpu.pipeline_mode<synchronous>, transform_indices = @transform_7, window_bounds = array<i64: 1, 512>}, {pipeline_mode = #tpu.pipeline_mode<synchronous>, transform_indices = @transform_8, window_bounds = array<i64: 512, 128>}, {pipeline_mode = #tpu.pipeline_mode<synchronous>, transform_indices = @transform_9, window_bounds = array<i64: 1, 128>}, {transform_indices = @transform_10, window_bounds = array<i64: 1, 8, 128>}]} {
    %c0_i32 = arith.constant 0 : i32
    %0 = arith.cmpi eq, %arg1, %c0_i32 : i32
    %1 = arith.extui %0 : i1 to i32
    %c0_i32_0 = arith.constant 0 : i32
    %2 = arith.cmpi ne, %1, %c0_i32_0 : i32
    scf.if %2 {
      %c0_52 = arith.constant 0 : index
      %c0_53 = arith.constant 0 : index
      %c0_54 = arith.constant 0 : index
      %85 = vector.load %arg3[%c0_52, %c0_53, %c0_54] : memref<1x8x32xbf16, #tpu.memory_space<vmem>>, vector<1x8x32xbf16>
      %86 = vector.shape_cast %85 : vector<1x8x32xbf16> to vector<8x32xbf16>
      %c0_55 = arith.constant 0 : index
      %c0_56 = arith.constant 0 : index
      %c0_57 = arith.constant 0 : index
      %87 = vector.load %arg4[%c0_55, %c0_56, %c0_57] : memref<1x8x32xbf16, #tpu.memory_space<vmem>>, vector<1x8x32xbf16>
      %88 = vector.shape_cast %87 : vector<1x8x32xbf16> to vector<8x32xbf16>
      %c0_58 = arith.constant 0 : index
      %c0_59 = arith.constant 0 : index
      %89 = vector.load %arg6[%c0_58, %c0_59] : memref<32x512xbf16, #tpu.memory_space<vmem>>, vector<32x512xbf16>
      %cst_60 = arith.constant dense<0.000000e+00> : vector<8x512xf32>
      %90 = tpu.matmul %86, %89, %cst_60 {dimension_numbers = #tpu.dot_dimension_numbers<[1], [0], [0], [1], [0, 0, 1, 1], [], []>} : vector<8x32xbf16>, vector<32x512xbf16>, vector<8x512xf32> -> vector<8x512xf32>
      %91 = arith.truncf %90 : vector<8x512xf32> to vector<8x512xbf16>
      %c0_61 = arith.constant 0 : index
      %c0_62 = arith.constant 0 : index
      %92 = vector.load %arg13[%c0_61, %c0_62] : memref<8x512xbf16, #tpu.memory_space<vmem>>, vector<8x512xbf16>
      tpu.vector_store %arg13[%c0_61, %c0_62], %91 {strides = array<i32>} : memref<8x512xbf16, #tpu.memory_space<vmem>>, vector<8x512xbf16>,
      %c0_63 = arith.constant 0 : index
      %c0_64 = arith.constant 0 : index
      %93 = vector.load %arg7[%c0_63, %c0_64] : memref<32x512xbf16, #tpu.memory_space<vmem>>, vector<32x512xbf16>
      %cst_65 = arith.constant dense<0.000000e+00> : vector<8x512xf32>
      %94 = tpu.matmul %88, %93, %cst_65 {dimension_numbers = #tpu.dot_dimension_numbers<[1], [0], [0], [1], [0, 0, 1, 1], [], []>} : vector<8x32xbf16>, vector<32x512xbf16>, vector<8x512xf32> -> vector<8x512xf32>
      %c0_66 = arith.constant 0 : index
      %c0_67 = arith.constant 0 : index
      %95 = vector.load %arg8[%c0_66, %c0_67] : memref<32x512xbf16, #tpu.memory_space<vmem>>, vector<32x512xbf16>
      %cst_68 = arith.constant dense<0.000000e+00> : vector<8x512xf32>
      %96 = tpu.matmul %88, %95, %cst_68 {dimension_numbers = #tpu.dot_dimension_numbers<[1], [0], [0], [1], [0, 0, 1, 1], [], []>} : vector<8x32xbf16>, vector<32x512xbf16>, vector<8x512xf32> -> vector<8x512xf32>
      %c0_69 = arith.constant 0 : index
      %c0_70 = arith.constant 0 : index
      %97 = vector.load %arg9[%c0_69, %c0_70] : memref<1x512xf32, #tpu.memory_space<vmem>>, vector<1x512xf32>
      %98 = vector.broadcast %97 : vector<1x512xf32> to vector<8x512xf32>
      %99 = arith.addf %96, %98 : vector<8x512xf32>
      %100 = arith.negf %99 : vector<8x512xf32>
      %101 = math.exp %100 : vector<8x512xf32>
      %cst_71 = arith.constant 1.000000e+00 : f32
      %102 = vector.broadcast %cst_71 : f32 to vector<8x512xf32>
      %103 = arith.addf %102, %101 : vector<8x512xf32>
      %104 = arith.divf %102, %103 : vector<8x512xf32>
      %105 = arith.mulf %94, %104 : vector<8x512xf32>
      %106 = arith.truncf %105 : vector<8x512xf32> to vector<8x512xbf16>
      %c0_72 = arith.constant 0 : index
      %c0_73 = arith.constant 0 : index
      %107 = vector.load %arg14[%c0_72, %c0_73] : memref<8x512xbf16, #tpu.memory_space<vmem>>, vector<8x512xbf16>
      tpu.vector_store %arg14[%c0_72, %c0_73], %106 {strides = array<i32>} : memref<8x512xbf16, #tpu.memory_space<vmem>>, vector<8x512xbf16>,
    } else {
    }
    %c0 = arith.constant 0 : index
    %c0_1 = arith.constant 0 : index
    %c0_2 = arith.constant 0 : index
    %3 = vector.load %arg2[%c0, %c0_1, %c0_2] : memref<1x8x32xbf16, #tpu.memory_space<vmem>>, vector<1x8x32xbf16>
    %4 = vector.shape_cast %3 : vector<1x8x32xbf16> to vector<8x32xbf16>
    %c0_3 = arith.constant 0 : index
    %c0_4 = arith.constant 0 : index
    %5 = vector.load %arg5[%c0_3, %c0_4] : memref<32x512xbf16, #tpu.memory_space<vmem>>, vector<32x512xbf16>
    %cst = arith.constant dense<0.000000e+00> : vector<8x512xf32>
    %6 = tpu.matmul %4, %5, %cst {dimension_numbers = #tpu.dot_dimension_numbers<[1], [0], [0], [1], [0, 0, 1, 1], [], []>} : vector<8x32xbf16>, vector<32x512xbf16>, vector<8x512xf32> -> vector<8x512xf32>
    %7 = arith.truncf %6 : vector<8x512xf32> to vector<8x512xbf16>
    %8 = vector.extract_strided_slice %7 {offsets = [0, 0], sizes = [8, 128], strides = [1, 1]} : vector<8x512xbf16> to vector<8x128xbf16>
    %c0_5 = arith.constant 0 : index
    %c0_6 = arith.constant 0 : index
    %9 = vector.load %arg13[%c0_5, %c0_6] : memref<8x512xbf16, #tpu.memory_space<vmem>>, vector<8x128xbf16>
    %cst_7 = arith.constant dense<0.000000e+00> : vector<8x8xf32>
    %10 = tpu.matmul %8, %9, %cst_7 {dimension_numbers = #tpu.dot_dimension_numbers<[1], [1], [0], [0], [0, 0, 1, 0], [], []>} : vector<8x128xbf16>, vector<8x128xbf16>, vector<8x8xf32> -> vector<8x8xf32>
    %11 = vector.extract_strided_slice %7 {offsets = [0, 128], sizes = [8, 128], strides = [1, 1]} : vector<8x512xbf16> to vector<8x128xbf16>
    %c0_8 = arith.constant 0 : index
    %c128 = arith.constant 128 : index
    %12 = vector.load %arg13[%c0_8, %c128] : memref<8x512xbf16, #tpu.memory_space<vmem>>, vector<8x128xbf16>
    %cst_9 = arith.constant dense<0.000000e+00> : vector<8x8xf32>
    %13 = tpu.matmul %11, %12, %cst_9 {dimension_numbers = #tpu.dot_dimension_numbers<[1], [1], [0], [0], [0, 0, 1, 0], [], []>} : vector<8x128xbf16>, vector<8x128xbf16>, vector<8x8xf32> -> vector<8x8xf32>
    %14 = vector.extract_strided_slice %7 {offsets = [0, 256], sizes = [8, 128], strides = [1, 1]} : vector<8x512xbf16> to vector<8x128xbf16>
    %c0_10 = arith.constant 0 : index
    %c256 = arith.constant 256 : index
    %15 = vector.load %arg13[%c0_10, %c256] : memref<8x512xbf16, #tpu.memory_space<vmem>>, vector<8x128xbf16>
    %cst_11 = arith.constant dense<0.000000e+00> : vector<8x8xf32>
    %16 = tpu.matmul %14, %15, %cst_11 {dimension_numbers = #tpu.dot_dimension_numbers<[1], [1], [0], [0], [0, 0, 1, 0], [], []>} : vector<8x128xbf16>, vector<8x128xbf16>, vector<8x8xf32> -> vector<8x8xf32>
    %17 = vector.extract_strided_slice %7 {offsets = [0, 384], sizes = [8, 128], strides = [1, 1]} : vector<8x512xbf16> to vector<8x128xbf16>
    %c0_12 = arith.constant 0 : index
    %c384 = arith.constant 384 : index
    %18 = vector.load %arg13[%c0_12, %c384] : memref<8x512xbf16, #tpu.memory_space<vmem>>, vector<8x128xbf16>
    %cst_13 = arith.constant dense<0.000000e+00> : vector<8x8xf32>
    %19 = tpu.matmul %17, %18, %cst_13 {dimension_numbers = #tpu.dot_dimension_numbers<[1], [1], [0], [0], [0, 0, 1, 0], [], []>} : vector<8x128xbf16>, vector<8x128xbf16>, vector<8x8xf32> -> vector<8x8xf32>
    %cst_14 = arith.constant dense<0xFF800000> : vector<8xf32>
    %20 = vector.multi_reduction <maximumf>, %10, %cst_14 [1] : vector<8x8xf32> to vector<8xf32>
    %21 = vector.shape_cast %20 : vector<8xf32> to vector<8x1xf32>
    %22 = vector.broadcast %21 : vector<8x1xf32> to vector<8x8xf32>
    %23 = arith.subf %10, %22 : vector<8x8xf32>
    %24 = math.exp %23 : vector<8x8xf32>
    %cst_15 = arith.constant dense<0.000000e+00> : vector<8xf32>
    %25 = vector.multi_reduction <add>, %24, %cst_15 [1] : vector<8x8xf32> to vector<8xf32>
    %26 = vector.shape_cast %25 : vector<8xf32> to vector<8x1xf32>
    %27 = vector.broadcast %26 : vector<8x1xf32> to vector<8x8xf32>
    %28 = arith.divf %24, %27 : vector<8x8xf32>
    %29 = arith.truncf %28 : vector<8x8xf32> to vector<8x8xbf16>
    %c0_16 = arith.constant 0 : index
    %c0_17 = arith.constant 0 : index
    %30 = vector.load %arg14[%c0_16, %c0_17] : memref<8x512xbf16, #tpu.memory_space<vmem>>, vector<8x128xbf16>
    %cst_18 = arith.constant dense<0.000000e+00> : vector<8x128xf32>
    %31 = tpu.matmul %29, %30, %cst_18 {dimension_numbers = #tpu.dot_dimension_numbers<[1], [0], [0], [1], [0, 0, 1, 1], [], []>} : vector<8x8xbf16>, vector<8x128xbf16>, vector<8x128xf32> -> vector<8x128xf32>
    %32 = arith.truncf %31 : vector<8x128xf32> to vector<8x128xbf16>
    %c0_19 = arith.constant 0 : index
    %c0_20 = arith.constant 0 : index
    %33 = vector.load %arg15[%c0_19, %c0_20] : memref<8x512xbf16, #tpu.memory_space<vmem>>, vector<8x128xbf16>
    tpu.vector_store %arg15[%c0_19, %c0_20], %32 {strides = array<i32>} : memref<8x512xbf16, #tpu.memory_space<vmem>>, vector<8x128xbf16>,
    %cst_21 = arith.constant dense<0xFF800000> : vector<8xf32>
    %34 = vector.multi_reduction <maximumf>, %13, %cst_21 [1] : vector<8x8xf32> to vector<8xf32>
    %35 = vector.shape_cast %34 : vector<8xf32> to vector<8x1xf32>
    %36 = vector.broadcast %35 : vector<8x1xf32> to vector<8x8xf32>
    %37 = arith.subf %13, %36 : vector<8x8xf32>
    %38 = math.exp %37 : vector<8x8xf32>
    %cst_22 = arith.constant dense<0.000000e+00> : vector<8xf32>
    %39 = vector.multi_reduction <add>, %38, %cst_22 [1] : vector<8x8xf32> to vector<8xf32>
    %40 = vector.shape_cast %39 : vector<8xf32> to vector<8x1xf32>
    %41 = vector.broadcast %40 : vector<8x1xf32> to vector<8x8xf32>
    %42 = arith.divf %38, %41 : vector<8x8xf32>
    %43 = arith.truncf %42 : vector<8x8xf32> to vector<8x8xbf16>
    %c0_23 = arith.constant 0 : index
    %c128_24 = arith.constant 128 : index
    %44 = vector.load %arg14[%c0_23, %c128_24] : memref<8x512xbf16, #tpu.memory_space<vmem>>, vector<8x128xbf16>
    %cst_25 = arith.constant dense<0.000000e+00> : vector<8x128xf32>
    %45 = tpu.matmul %43, %44, %cst_25 {dimension_numbers = #tpu.dot_dimension_numbers<[1], [0], [0], [1], [0, 0, 1, 1], [], []>} : vector<8x8xbf16>, vector<8x128xbf16>, vector<8x128xf32> -> vector<8x128xf32>
    %46 = arith.truncf %45 : vector<8x128xf32> to vector<8x128xbf16>
    %c0_26 = arith.constant 0 : index
    %c128_27 = arith.constant 128 : index
    %47 = vector.load %arg15[%c0_26, %c128_27] : memref<8x512xbf16, #tpu.memory_space<vmem>>, vector<8x128xbf16>
    tpu.vector_store %arg15[%c0_26, %c128_27], %46 {strides = array<i32>} : memref<8x512xbf16, #tpu.memory_space<vmem>>, vector<8x128xbf16>,
    %cst_28 = arith.constant dense<0xFF800000> : vector<8xf32>
    %48 = vector.multi_reduction <maximumf>, %16, %cst_28 [1] : vector<8x8xf32> to vector<8xf32>
    %49 = vector.shape_cast %48 : vector<8xf32> to vector<8x1xf32>
    %50 = vector.broadcast %49 : vector<8x1xf32> to vector<8x8xf32>
    %51 = arith.subf %16, %50 : vector<8x8xf32>
    %52 = math.exp %51 : vector<8x8xf32>
    %cst_29 = arith.constant dense<0.000000e+00> : vector<8xf32>
    %53 = vector.multi_reduction <add>, %52, %cst_29 [1] : vector<8x8xf32> to vector<8xf32>
    %54 = vector.shape_cast %53 : vector<8xf32> to vector<8x1xf32>
    %55 = vector.broadcast %54 : vector<8x1xf32> to vector<8x8xf32>
    %56 = arith.divf %52, %55 : vector<8x8xf32>
    %57 = arith.truncf %56 : vector<8x8xf32> to vector<8x8xbf16>
    %c0_30 = arith.constant 0 : index
    %c256_31 = arith.constant 256 : index
    %58 = vector.load %arg14[%c0_30, %c256_31] : memref<8x512xbf16, #tpu.memory_space<vmem>>, vector<8x128xbf16>
    %cst_32 = arith.constant dense<0.000000e+00> : vector<8x128xf32>
    %59 = tpu.matmul %57, %58, %cst_32 {dimension_numbers = #tpu.dot_dimension_numbers<[1], [0], [0], [1], [0, 0, 1, 1], [], []>} : vector<8x8xbf16>, vector<8x128xbf16>, vector<8x128xf32> -> vector<8x128xf32>
    %60 = arith.truncf %59 : vector<8x128xf32> to vector<8x128xbf16>
    %c0_33 = arith.constant 0 : index
    %c256_34 = arith.constant 256 : index
    %61 = vector.load %arg15[%c0_33, %c256_34] : memref<8x512xbf16, #tpu.memory_space<vmem>>, vector<8x128xbf16>
    tpu.vector_store %arg15[%c0_33, %c256_34], %60 {strides = array<i32>} : memref<8x512xbf16, #tpu.memory_space<vmem>>, vector<8x128xbf16>,
    %cst_35 = arith.constant dense<0xFF800000> : vector<8xf32>
    %62 = vector.multi_reduction <maximumf>, %19, %cst_35 [1] : vector<8x8xf32> to vector<8xf32>
    %63 = vector.shape_cast %62 : vector<8xf32> to vector<8x1xf32>
    %64 = vector.broadcast %63 : vector<8x1xf32> to vector<8x8xf32>
    %65 = arith.subf %19, %64 : vector<8x8xf32>
    %66 = math.exp %65 : vector<8x8xf32>
    %cst_36 = arith.constant dense<0.000000e+00> : vector<8xf32>
    %67 = vector.multi_reduction <add>, %66, %cst_36 [1] : vector<8x8xf32> to vector<8xf32>
    %68 = vector.shape_cast %67 : vector<8xf32> to vector<8x1xf32>
    %69 = vector.broadcast %68 : vector<8x1xf32> to vector<8x8xf32>
    %70 = arith.divf %66, %69 : vector<8x8xf32>
    %71 = arith.truncf %70 : vector<8x8xf32> to vector<8x8xbf16>
    %c0_37 = arith.constant 0 : index
    %c384_38 = arith.constant 384 : index
    %72 = vector.load %arg14[%c0_37, %c384_38] : memref<8x512xbf16, #tpu.memory_space<vmem>>, vector<8x128xbf16>
    %cst_39 = arith.constant dense<0.000000e+00> : vector<8x128xf32>
    %73 = tpu.matmul %71, %72, %cst_39 {dimension_numbers = #tpu.dot_dimension_numbers<[1], [0], [0], [1], [0, 0, 1, 1], [], []>} : vector<8x8xbf16>, vector<8x128xbf16>, vector<8x128xf32> -> vector<8x128xf32>
    %74 = arith.truncf %73 : vector<8x128xf32> to vector<8x128xbf16>
    %c0_40 = arith.constant 0 : index
    %c384_41 = arith.constant 384 : index
    %75 = vector.load %arg15[%c0_40, %c384_41] : memref<8x512xbf16, #tpu.memory_space<vmem>>, vector<8x128xbf16>
    tpu.vector_store %arg15[%c0_40, %c384_41], %74 {strides = array<i32>} : memref<8x512xbf16, #tpu.memory_space<vmem>>, vector<8x128xbf16>,
    %c0_42 = arith.constant 0 : index
    %c0_43 = arith.constant 0 : index
    %76 = vector.load %arg15[%c0_42, %c0_43] : memref<8x512xbf16, #tpu.memory_space<vmem>>, vector<8x512xbf16>
    %c0_44 = arith.constant 0 : index
    %c0_45 = arith.constant 0 : index
    %77 = vector.load %arg10[%c0_44, %c0_45] : memref<512x128xbf16, #tpu.memory_space<vmem>>, vector<512x128xbf16>
    %cst_46 = arith.constant dense<0.000000e+00> : vector<8x128xf32>
    %78 = tpu.matmul %76, %77, %cst_46 {dimension_numbers = #tpu.dot_dimension_numbers<[1], [0], [0], [1], [0, 0, 1, 1], [], []>} : vector<8x512xbf16>, vector<512x128xbf16>, vector<8x128xf32> -> vector<8x128xf32>
    %c0_47 = arith.constant 0 : index
    %c0_48 = arith.constant 0 : index
    %79 = vector.load %arg11[%c0_47, %c0_48] : memref<1x128xf32, #tpu.memory_space<vmem>>, vector<1x128xf32>
    %80 = vector.broadcast %79 : vector<1x128xf32> to vector<8x128xf32>
    %81 = arith.addf %78, %80 : vector<8x128xf32>
    %c0_49 = arith.constant 0 : index
    %c0_50 = arith.constant 0 : index
    %c0_51 = arith.constant 0 : index
    %82 = vector.load %arg12[%c0_49, %c0_50, %c0_51] : memref<1x8x128xf32, #tpu.memory_space<vmem>>, vector<1x8x128xf32>
    %83 = vector.shape_cast %82 : vector<1x8x128xf32> to vector<8x128xf32>
    %84 = vector.shape_cast %81 : vector<8x128xf32> to vector<1x8x128xf32>
    tpu.vector_store %arg12[%c0_49, %c0_50, %c0_51], %84 {strides = array<i32>} : memref<1x8x128xf32, #tpu.memory_space<vmem>>, vector<1x8x128xf32>,
    return
  }
  func.func @transform_0(%arg0: i32, %arg1: i32) -> (i32, i32, i32) {
    %c0_i32 = arith.constant 0 : i32
    %c0_i32_0 = arith.constant 0 : i32
    return %arg0, %arg1, %c0_i32 : i32, i32, i32
  }
  func.func @transform_1(%arg0: i32, %arg1: i32) -> (i32, i32, i32) {
    %c0_i32 = arith.constant 0 : i32
    %c0_i32_0 = arith.constant 0 : i32
    %c0_i32_1 = arith.constant 0 : i32
    return %arg0, %c0_i32, %c0_i32_0 : i32, i32, i32
  }
  func.func @transform_2(%arg0: i32, %arg1: i32) -> (i32, i32, i32) {
    %c0_i32 = arith.constant 0 : i32
    %c0_i32_0 = arith.constant 0 : i32
    %c0_i32_1 = arith.constant 0 : i32
    return %arg0, %c0_i32, %c0_i32_0 : i32, i32, i32
  }
  func.func @transform_3(%arg0: i32, %arg1: i32) -> (i32, i32) {
    %c0_i32 = arith.constant 0 : i32
    %c0_i32_0 = arith.constant 0 : i32
    %c0_i32_1 = arith.constant 0 : i32
    return %c0_i32, %c0_i32_0 : i32, i32
  }
  func.func @transform_4(%arg0: i32, %arg1: i32) -> (i32, i32) {
    %c0_i32 = arith.constant 0 : i32
    %c0_i32_0 = arith.constant 0 : i32
    %c0_i32_1 = arith.constant 0 : i32
    return %c0_i32, %c0_i32_0 : i32, i32
  }
  func.func @transform_5(%arg0: i32, %arg1: i32) -> (i32, i32) {
    %c0_i32 = arith.constant 0 : i32
    %c0_i32_0 = arith.constant 0 : i32
    %c0_i32_1 = arith.constant 0 : i32
    return %c0_i32, %c0_i32_0 : i32, i32
  }
  func.func @transform_6(%arg0: i32, %arg1: i32) -> (i32, i32) {
    %c0_i32 = arith.constant 0 : i32
    %c0_i32_0 = arith.constant 0 : i32
    %c0_i32_1 = arith.constant 0 : i32
    return %c0_i32, %c0_i32_0 : i32, i32
  }
  func.func @transform_7(%arg0: i32, %arg1: i32) -> (i32, i32) {
    %c0_i32 = arith.constant 0 : i32
    %c0_i32_0 = arith.constant 0 : i32
    %c0_i32_1 = arith.constant 0 : i32
    return %c0_i32, %c0_i32_0 : i32, i32
  }
  func.func @transform_8(%arg0: i32, %arg1: i32) -> (i32, i32) {
    %c0_i32 = arith.constant 0 : i32
    %c0_i32_0 = arith.constant 0 : i32
    %c0_i32_1 = arith.constant 0 : i32
    return %c0_i32, %c0_i32_0 : i32, i32
  }
  func.func @transform_9(%arg0: i32, %arg1: i32) -> (i32, i32) {
    %c0_i32 = arith.constant 0 : i32
    %c0_i32_0 = arith.constant 0 : i32
    %c0_i32_1 = arith.constant 0 : i32
    return %c0_i32, %c0_i32_0 : i32, i32
  }
  func.func @transform_10(%arg0: i32, %arg1: i32) -> (i32, i32, i32) {
    %c0_i32 = arith.constant 0 : i32
    %c0_i32_0 = arith.constant 0 : i32
    return %arg0, %arg1, %c0_i32 : i32, i32, i32
  }
}

</mosaic_0001>

<bundles_post_ra>
// kernel: tpu_custom_call.1
= control target key start
LH: loop header
LB: loop body
LE: loop exit
PB: predicated region body
PF: predicated region fallthrough
CT: control target
= control target key end

     0   :  { %s3474_s0 = inlined_call_operand.hbm [shape: bf16[2,8,32], index: 0, kind: input, shape index: {}]   ;;  %s3475_s1 = inlined_call_operand.hbm [shape: bf16[2,8,32], index: 1, kind: input, shape index: {}]   ;;  %s3476_s2 = inlined_call_operand.hbm [shape: bf16[2,8,32], index: 2, kind: input, shape index: {}]   ;;  %s3477_s3 = inlined_call_operand.hbm [shape: bf16[32,512], index: 3, kind: input, shape index: {}]   ;;  %s3478_s4 = inlined_call_operand.hbm [shape: bf16[32,512], index: 4, kind: input, shape index: {}]   ;;  %s3479_s5 = inlined_call_operand.hbm [shape: bf16[32,512], index: 5, kind: input, shape index: {}]   ;;  %s3480_s6 = inlined_call_operand.hbm [shape: bf16[32,512], index: 6, kind: input, shape index: {}]   ;;  %s3481_s7 = inlined_call_operand.vmem [shape: f32[1,512], index: 7, kind: input, shape index: {}]   ;;  %s3482_s8 = inlined_call_operand.hbm [shape: bf16[512,128], index: 8, kind: input, shape index: {}]   ;;  %s3483_s9 = inlined_call_operand.vmem [shape: f32[1,128], index: 9, kind: input, shape index: {}]   ;;  %s3484_s10 = inlined_call_operand.hbm [shape: f32[2,8,128], index: 10, kind: output, shape index: {}]  }
   0x1   :  { %3511 = sst [smem:[#allocation34_spill]] %s3475_s1 }
   0x2   :  { %3512 = sst [smem:[#allocation35_spill]] %s3477_s3 }
   0x3   :  { %3513 = sst [smem:[#allocation36_spill]] %s3478_s4 }
   0x4   :  { %3514 = sst [smem:[#allocation37_spill]] %s3479_s5 }
   0x5   :  { %3515 = sst [smem:[#allocation38_spill]] %s3483_s9 }
   0x6   :  { %3516 = sst [smem:[#allocation39_spill]] %s3484_s10 }
   0x7   :  { %15 = vsyncpa [#allocation6], 0 }
   0x8   :  { %17 = vsyncpa [#allocation6 + $0x1], 0 }
   0x9   :  { %18 = vsyncpa [#allocation9], 0 }
   0xa   :  { %20 = vsyncpa [#allocation9 + $0x1], 0 }
   0xb   :  { %21 = vsyncpa [#allocation12], 0 }
   0xc   :  { %22 = vsyncpa [#allocation15], 0 }
   0xd   :  { %23 = vsyncpa [#allocation18], 0 }
   0xe   :  { %24 = vsyncpa [#allocation7], 0 }
   0xf   :  { %26 = vsyncpa [#allocation7 + $0x1], 0  ;;  %s2998_s13 = smov 0   ;;  %s3000_s14 = smov 0  }
  0x10   :  { %s3002_s15 = smov 0   ;;  %s3004_s16 = smov 0  }
  0x11   :  { %s3006_s17 = smov 0   ;;  %s3008_s18 = smov 0  }
  0x12 LB: > { %3517 = sst [smem:[#allocation26_spill]] %s2905_s13  ;;  %s3029_s19 = sadd.s32 4294967295, %s2925_s18   ;;  %s2925_s18 = sphi %s3008_s18, %s32_s18   ;;  %s2921_s17 = sphi %s3006_s17, %s3566_s17   ;;  %s2917_s16 = sphi %s3004_s16, %s3565_s16   ;;  %s2913_s15 = sphi %s3002_s15, %s3569_s15   ;;  %s2909_s14 = sphi %s3000_s14, %s3568_s14   ;;  %s2905_s13 = sphi %s2998_s13, %s3567_s13  }
  0x13   : > { %3518 = sst [smem:[#allocation27_spill]] %s2917_s16  ;;  %p2123_p0 = scmp.ge.s32.totalorder %s2925_s18, 1 }
  0x14   : > { %3519 = sst [smem:[#allocation28_spill]] %s2921_s17  ;;  %p3495_p1 = scmp.eq.s32.totalorder %s3029_s19, 0 }
  0x15   : > { %3520 = sst [smem:[#allocation29_spill]] %s2925_s18  ;;  %p304_p2 = scmp.lt.s32.totalorder %s2925_s18, 3 }
  0x16   : > { %s2927_s21 = smov [#allocation11]   ;;  %s2928_s24 = smov [#allocation14]  }
  0x17   : > { %p3034_p3 = pnand %p2123_p0, %p304_p2  ;;  %s316_s22 = sshll.u32 %s2927_s21, 4  ;;  %s3038_s22 = int_to_ptr.vmem [resolvable:$true] %s316_s22 }
  0x18   : > { %s342_s25 = sshll.u32 %s2928_s24, 4  ;;  %s3523_s3 = sld [smem:[#allocation35_spill]]  ;;  %s3049_s25 = int_to_ptr.vmem [resolvable:$true] %s342_s25 }
  0x19   : > { %s3521_s20 = scalar_select %p3034_p3, 1, 0 }
  0x1a   : > { %p2379_p4 = pneg %p3034_p3 }
  0x1c   : > { %p3045_p6 = pnand %p2379_p4, %p3495_p1 }
  0x1e   : > { %s3522_s23 = scalar_select %p3045_p6, 1, 0 }
  0x1f   : > { %s2597_s28 = scalar_lea.hbm %s3523_s3, 1024  ;;  %p3059_p8 = pneg %p3045_p6 }
  0x20   : > { %p2598_p7 = scmp.ne.s32.totalorder %s3523_s3, %s2597_s28  ;;  %p2604_p11 = scmp.lt.u32.totalorder %s2597_s28, %s3523_s3 }
  0x21   : > { %s3524_s11 = scalar_select %p3059_p8, 1, 0 }
  0x22   : > { %p2600_p9 = pnand %p3059_p8, %p2598_p7 }
  0x24   : > { %p2601_p10 = pneg %p2600_p9 }
  0x26   : > { %p2606_p12 = pnand %p2604_p11, %p2601_p10 }
  0x28   : > { %2609 = shalt.err (!%p2606_p12)
}
  0x29   : > { %s2610_s24 = scalar_lea.vmem %s3038_s22, 1024  ;;  %p2618_p4 = scmp.lt.s32.totalorder %s3038_s22, %s3038_s22 }
  0x2a   : > { %p2611_p13 = scmp.ne.s32.totalorder %s3038_s22, %s2610_s24  ;;  %p2619_p5 = scmp.lt.s32.totalorder %s2610_s24, %s2610_s24 }
  0x2c   : > { %p2613_p0 = pnand %p2611_p13, %p3059_p8  ;;  %p2620_p7 = por %p2619_p5, %p2618_p4 }
  0x2e   : > { %p2614_p2 = pneg %p2613_p0 }
  0x30   : > { %p2621_p9 = pnand %p2620_p7, %p2614_p2 }
  0x32   : > { %2624 = shalt.err (!%p2621_p9)
}
  0x33   : > { %s3486_s26 = smov 256   ;;  %s3488_s27 = smov 16  }
  0x34   : > { %2382 = dma.hbm_to_vmem [thread:$0]  (!%p3045_p6), %s3523_s3, 1024, %s3038_s22, [#allocation12], %s3486_s26, %s3486_s26, %s3488_s27  }
  0x35   : > { %s3525_s5 = sld [smem:[#allocation37_spill]] }
  0x3b   : > { %s2625_s21 = scalar_lea.hbm %s3525_s5, 1024 }
  0x3c   : > { %p2626_p5 = scmp.ne.s32.totalorder %s3525_s5, %s2625_s21  ;;  %p2632_p12 = scmp.lt.u32.totalorder %s2625_s21, %s3525_s5 }
  0x3e   : > { %p2628_p10 = pnand %p2626_p5, %p3059_p8 }
  0x40   : > { %p2629_p11 = pneg %p2628_p10 }
  0x42   : > { %p2634_p13 = pnand %p2632_p12, %p2629_p11 }
  0x44   : > { %2637 = shalt.err (!%p2634_p13)
}
  0x45   : > { %s2638_s22 = scalar_lea.vmem %s3049_s25, 1024  ;;  %p2646_p7 = scmp.lt.s32.totalorder %s3049_s25, %s3049_s25 }
  0x46   : > { %p2639_p0 = scmp.ne.s32.totalorder %s3049_s25, %s2638_s22  ;;  %p2647_p9 = scmp.lt.s32.totalorder %s2638_s22, %s2638_s22 }
  0x48   : > { %p2641_p2 = pnand %p2639_p0, %p3059_p8  ;;  %p2648_p5 = por %p2647_p9, %p2646_p7 }
  0x4a   : > { %p2642_p4 = pneg %p2641_p2 }
  0x4c   : > { %p2649_p10 = pnand %p2648_p5, %p2642_p4 }
  0x4e   : > { %2652 = shalt.err (!%p2649_p10)
}
  0x4f   : > { %2388 = dma.hbm_to_vmem [thread:$0]  (!%p3045_p6), %s3525_s5, 1024, %s3049_s25, [#allocation15], %s3486_s26, %s3486_s26, %s3488_s27  }
  0x50   : > { %s2122_s16 = sadd.s32 4294967294, %s2925_s18   ;;  %s44_s28 = sadd.s32 1, %s2921_s17 }
  0x51   : > { %p46_p11 = scmp.ge.s32.totalorder %s44_s28, 2  ;;  %s53_s29 = sadd.s32 1, %s2913_s15 }
  0x52   : > { %p60_p12 = scmp.ne.s32.totalorder %s2913_s15, %s2909_s14  ;;  %p61_p13 = scmp.eq.s32.totalorder %s2925_s18, 0 }
  0x53   : > { %s3571_s28 = smov (%p46_p11, %s44_s28), 0  ;;  %p66_p2 = scmp.ne.s32.totalorder %s2909_s14, %s2905_s13 }
  0x54   : > { %3526 = sst [smem:[#allocation30_spill]] %s3571_s28  ;;  %p3117_p0 = por %p61_p13, %p60_p12 }
  0x55   : > { %s48_s25 = ssub.s32 %s2921_s17, %s3571_s28  ;;  %p291_p4 = scmp.eq.s32.totalorder %s3029_s19, 1 }
  0x56   : > { %p51_p7 = scmp.eq.s32.totalorder %s48_s25, 0  ;;  %p3128_p9 = por %p3495_p1, %p66_p2 }
  0x57   : > { %p3132_p5 = por %p291_p4, %p60_p12  ;;  %p297_p10 = scmp.eq.s32.totalorder %s2122_s16, 1 }
  0x58   : > { %s3528_s12 = scalar_select %p3128_p9, 1, 0 }
  0x59   : > { %s3529_s21 = scalar_select %p3132_p5, 1, 0 }
  0x5a   : > { %s3137_s24 = scalar_select %p51_p7, %s2913_s15, %s53_s29  }
  0x5b   : > { %3530 = sst [smem:[#allocation31_spill]] %s3529_s21  ;;  %p3139_p11 = por %p297_p10, %p66_p2 }
  0x5c   : > { %3531 = sst [smem:[#allocation32_spill]] %s3137_s24  ;;  %p2414_p13 = scmp.lt.s32.totalorder %s2925_s18, 2 }
  0x5d   : > { %s3532_s22 = scalar_select %p3139_p11, 1, 0 }
  0x5e   : > { %s3490_s9 = sand.u32 1, %s2913_s15   ;;  %s3146_s10 = sshll.u32 %s2921_s17, 6 }
  0x5f   : > { %3533 = sst [smem:[#allocation33_spill]] %s3532_s22  ;;  %s3150_s25 = sshll.u32 %s3490_s9, 2 }
  0x60   : > { %p3154_p12 = pnand %p2414_p13, %p3117_p0  ;;  %s407_s16 = sand.u32 1, %s2925_s18  }
  0x61   : > { %s3535_s1 = sld [smem:[#allocation34_spill]]  ;;  %s411_s5 = scalar_lea.vmem [#allocation8], %s3150_s25 }
  0x62   : > { %s3534_s26 = scalar_select %p3154_p12, 1, 0 }
  0x63   : > { %s418_s9 = sshll.u32 %s411_s5, 4  ;;  %s3168_s30 = scalar_lea.sflag [#allocation9], %s407_s16  ;;  %s3166_s9 = int_to_ptr.vmem [resolvable:$true] %s418_s9 }
  0x64   : > { %p3174_p2 = pneg %p3154_p12 }
  0x66   : > { %s3536_s17 = scalar_select %p3174_p2, 1, 0 }
  0x67   : > { %s3163_s3 = scalar_lea.hbm %s3535_s1, %s3146_s10  ;;  %s2658_s24 = scalar_lea.hbm %s3535_s1, 128 }
  0x68   : > { %s2653_s28 = scalar_lea.hbm %s3163_s3, 64  ;;  %p2659_p10 = scmp.lt.u32.totalorder %s3163_s3, %s3535_s1 }
  0x69   : > { %p2654_p0 = scmp.ne.s32.totalorder %s3163_s3, %s2653_s28  ;;  %p2660_p13 = scmp.lt.u32.totalorder %s2658_s24, %s2653_s28 }
  0x6a   : > { %p2662_p11 = scmp.lt.u32.totalorder %s2653_s28, %s3163_s3 }
  0x6b   : > { %p2656_p4 = pnand %p3174_p2, %p2654_p0  ;;  %p2661_p1 = por %p2660_p13, %p2659_p10 }
  0x6d   : > { %p2657_p7 = pneg %p2656_p4  ;;  %p2663_p5 = por %p2662_p11, %p2661_p1 }
  0x6f   : > { %p2664_p9 = pnand %p2663_p5, %p2657_p7 }
  0x71   : > { %2667 = shalt.err (!%p2664_p9)
}
  0x72   : > { %s2668_s16 = scalar_lea.vmem %s3166_s9, 64  ;;  %s2931_s27 = smov [#allocation8]  }
  0x73   : > { %p2669_p0 = scmp.ne.s32.totalorder %s3166_s9, %s2668_s16  ;;  %s2673_s29 = sshll.u32 %s2931_s27, 4  ;;  %s2674_s29 = int_to_ptr.vmem [resolvable:$false] %s2673_s29 }
  0x74   : > { %s2675_s18 = scalar_lea.vmem %s2674_s29, 128  ;;  %p2676_p6 = scmp.lt.s32.totalorder %s3166_s9, %s2674_s29 }
  0x75   : > { %p2671_p4 = pnand %p2669_p0, %p3174_p2  ;;  %p2677_p8 = scmp.lt.s32.totalorder %s2675_s18, %s2668_s16 }
  0x77   : > { %p2672_p3 = pneg %p2671_p4  ;;  %p2678_p10 = por %p2677_p8, %p2676_p6 }
  0x79   : > { %p2679_p13 = pnand %p2678_p10, %p2672_p3 }
  0x7b   : > { %2682 = shalt.err (!%p2679_p13)
}
  0x7c   : > { %2401 = dma.hbm_to_vmem [thread:$0]  (!%p3154_p12), %s3163_s3, 64, %s3166_s9, %s3168_s30  }
  0x7d   : > { %s2932_s28 = smov [#allocation13]   ;;  %s2933_s5 = smov [#allocation16]  }
  0x7e   : > { %s329_s24 = sshll.u32 %s2932_s28, 4  ;;  %s355_s1 = sshll.u32 %s2933_s5, 4  ;;  %s330_s24 = int_to_ptr.vmem [resolvable:$true] %s329_s24  ;;  %s356_s1 = int_to_ptr.vmem [resolvable:$true] %s355_s1 }
  0x7f   : > { %s3537_s4 = sld [smem:[#allocation36_spill]]  ;;  %p3538_p3 = scmp.ne.s32.totalorder %s3524_s11, 0 }
  0x85   : > { %s2683_s29 = scalar_lea.hbm %s3537_s4, 1024 }
  0x86   : > { %p2684_p1 = scmp.ne.s32.totalorder %s3537_s4, %s2683_s29  ;;  %p2690_p9 = scmp.lt.u32.totalorder %s2683_s29, %s3537_s4 }
  0x88   : > { %p2686_p6 = pnand %p2684_p1, %p3538_p3 }
  0x8a   : > { %p2687_p8 = pneg %p2686_p6 }
  0x8c   : > { %p2692_p5 = pnand %p2690_p9, %p2687_p8 }
  0x8e   : > { %2695 = shalt.err (!%p2692_p5)
}
  0x8f   : > { %s2696_s3 = scalar_lea.vmem %s330_s24, 1024  ;;  %p2704_p4 = scmp.lt.s32.totalorder %s330_s24, %s330_s24 }
  0x90   : > { %p2697_p11 = scmp.ne.s32.totalorder %s330_s24, %s2696_s3  ;;  %p2705_p10 = scmp.lt.s32.totalorder %s2696_s3, %s2696_s3 }
  0x92   : > { %p2699_p7 = pnand %p2697_p11, %p3538_p3  ;;  %p2706_p13 = por %p2705_p10, %p2704_p4 }
  0x94   : > { %p2700_p0 = pneg %p2699_p7 }
  0x96   : > { %p2707_p12 = pnand %p2706_p13, %p2700_p0 }
  0x98   : > { %2710 = shalt.err (!%p2707_p12)
}
  0x99   : > { %p3539_p1 = scmp.ne.s32.totalorder %s3522_s23, 0  ;;  %s3540_s22 = smov 16  }
  0x9a   : > { %s3541_s9 = smov 256   ;;  %s2711_s27 = scalar_lea.hbm %s3480_s6, 1024 }
  0x9b   : > { %2385 = dma.hbm_to_vmem [thread:$0]  (!%p3539_p1), %s3537_s4, 1024, %s330_s24, [#allocation12], %s3541_s9, %s3541_s9, %s3540_s22  }
  0x9c   : > { %p2712_p6 = scmp.ne.s32.totalorder %s3480_s6, %s2711_s27  ;;  %p2718_p9 = scmp.lt.u32.totalorder %s2711_s27, %s3480_s6 }
  0x9e   : > { %p2714_p12 = pnand %p2712_p6, %p3538_p3 }
  0xa0   : > { %p2715_p8 = pneg %p2714_p12 }
  0xa2   : > { %p2720_p5 = pnand %p2718_p9, %p2715_p8 }
  0xa4   : > { %2723 = shalt.err (!%p2720_p5)
}
  0xa5   : > { %s2724_s13 = scalar_lea.vmem %s356_s1, 1024  ;;  %p2732_p4 = scmp.lt.s32.totalorder %s356_s1, %s356_s1 }
  0xa6   : > { %p2725_p11 = scmp.ne.s32.totalorder %s356_s1, %s2724_s13  ;;  %p2733_p10 = scmp.lt.s32.totalorder %s2724_s13, %s2724_s13 }
  0xa8   : > { %p2727_p7 = pnand %p2725_p11, %p3538_p3  ;;  %p2734_p13 = por %p2733_p10, %p2732_p4 }
  0xaa   : > { %p2728_p0 = pneg %p2727_p7 }
  0xac   : > { %p2735_p2 = pnand %p2734_p13, %p2728_p0 }
  0xae   : > { %2738 = shalt.err (!%p2735_p2)
}
  0xaf   : > { %2391 = dma.hbm_to_vmem [thread:$0]  (!%p3539_p1), %s3480_s6, 1024, %s356_s1, [#allocation15], %s3541_s9, %s3541_s9, %s3540_s22  }
  0xb0   : > { %s2934_s28 = smov [#allocation17]   ;;  %s2739_s16 = scalar_lea.hbm %s3482_s8, 4096 }
  0xb1   : > { %s371_s5 = sshll.u32 %s2934_s28, 4  ;;  %p2740_p2 = scmp.ne.s32.totalorder %s3482_s8, %s2739_s16  ;;  %s372_s5 = int_to_ptr.vmem [resolvable:$true] %s371_s5 }
  0xb2   : > { %p2746_p8 = scmp.lt.u32.totalorder %s2739_s16, %s3482_s8 }
  0xb3   : > { %p2742_p6 = pnand %p2740_p2, %p3538_p3 }
  0xb5   : > { %p2743_p12 = pneg %p2742_p6 }
  0xb7   : > { %p2748_p9 = pnand %p2746_p8, %p2743_p12 }
  0xb9   : > { %2751 = shalt.err (!%p2748_p9)
}
  0xba   : > { %s2752_s1 = scalar_lea.vmem %s372_s5, 4096  ;;  %p2760_p0 = scmp.lt.s32.totalorder %s372_s5, %s372_s5 }
  0xbb   : > { %p2753_p5 = scmp.ne.s32.totalorder %s372_s5, %s2752_s1  ;;  %p2761_p4 = scmp.lt.s32.totalorder %s2752_s1, %s2752_s1 }
  0xbd   : > { %p2755_p11 = pnand %p2753_p5, %p3538_p3  ;;  %p2762_p10 = por %p2761_p4, %p2760_p0 }
  0xbf   : > { %p2756_p7 = pneg %p2755_p11 }
  0xc1   : > { %p2763_p13 = pnand %p2762_p10, %p2756_p7 }
  0xc3   : > { %2766 = shalt.err (!%p2763_p13)
}
  0xc4   : > { %s2935_s22 = smov 64   ;;  %s2936_s4 = smov 4  }
  0xc5   : > { %2394 = dma.hbm_to_vmem [thread:$0]  (!%p3539_p1), %s3482_s8, 4096, %s372_s5, [#allocation18], %s2935_s22, %s2935_s22, %s2936_s4  }
  0xc6   : > { %s3262_s28 = scalar_lea.hbm %s3474_s0, %s3146_s10  ;;  %s392_s27 = scalar_lea.vmem [#allocation5], %s3150_s25 }
  0xc7   : > { %s400_s29 = sshll.u32 %s392_s27, 4  ;;  %s3542_s16 = sand.u32 1, %s2913_s15   ;;  %s401_s29 = int_to_ptr.vmem [resolvable:$true] %s400_s29 }
  0xc8   : > { %s389_s18 = scalar_lea.sflag [#allocation6], %s3542_s16  ;;  %s2767_s3 = scalar_lea.hbm %s3262_s28, 64 }
  0xc9   : > { %p2768_p3 = scmp.ne.s32.totalorder %s3262_s28, %s2767_s3  ;;  %p3543_p2 = scmp.ne.s32.totalorder %s3536_s17, 0 }
  0xca   : > { %s2772_s13 = scalar_lea.hbm %s3474_s0, 128  ;;  %p2773_p1 = scmp.lt.u32.totalorder %s3262_s28, %s3474_s0 }
  0xcb   : > { %p2770_p6 = pnand %p2768_p3, %p3543_p2  ;;  %p2774_p8 = scmp.lt.u32.totalorder %s2772_s13, %s2767_s3 }
  0xcc   : > { %p2776_p5 = scmp.lt.u32.totalorder %s2767_s3, %s3262_s28 }
  0xcd   : > { %p2771_p12 = pneg %p2770_p6  ;;  %p2775_p9 = por %p2774_p8, %p2773_p1 }
  0xcf   : > { %p2777_p11 = por %p2776_p5, %p2775_p9 }
  0xd1   : > { %p2778_p7 = pnand %p2777_p11, %p2771_p12 }
  0xd3   : > { %2781 = shalt.err (!%p2778_p7)
}
  0xd4   : > { %s2782_s4 = scalar_lea.vmem %s401_s29, 64  ;;  %s2937_s9 = smov [#allocation5]  }
  0xd5   : > { %p2783_p0 = scmp.ne.s32.totalorder %s401_s29, %s2782_s4  ;;  %s2787_s24 = sshll.u32 %s2937_s9, 4  ;;  %s2788_s24 = int_to_ptr.vmem [resolvable:$false] %s2787_s24 }
  0xd6   : > { %s2789_s11 = scalar_lea.vmem %s2788_s24, 128  ;;  %p2790_p13 = scmp.lt.s32.totalorder %s401_s29, %s2788_s24 }
  0xd7   : > { %p2785_p4 = pnand %p2783_p0, %p3543_p2  ;;  %p2791_p3 = scmp.lt.s32.totalorder %s2789_s11, %s2782_s4 }
  0xd9   : > { %p2786_p10 = pneg %p2785_p4  ;;  %p2792_p6 = por %p2791_p3, %p2790_p13 }
  0xdb   : > { %p2793_p1 = pnand %p2792_p6, %p2786_p10 }
  0xdd   : > { %2796 = shalt.err (!%p2793_p1)
}
  0xde   : > { %p3544_p8 = scmp.ne.s32.totalorder %s3534_s26, 0  ;;  %s3288_s16 = scalar_lea.hbm %s3476_s2, %s3146_s10 }
  0xdf   : > { %s429_s3 = scalar_lea.vmem [#allocation10], %s3150_s25  ;;  %s2797_s5 = scalar_lea.hbm %s3288_s16, 64 }
  0xe0   : > { %2398 = dma.hbm_to_vmem [thread:$0]  (!%p3544_p8), %s3262_s28, 64, %s401_s29, %s389_s18  }
  0xe1   : > { %s436_s23 = sshll.u32 %s429_s3, 4  ;;  %p2798_p12 = scmp.ne.s32.totalorder %s3288_s16, %s2797_s5  ;;  %s437_s23 = int_to_ptr.vmem [resolvable:$true] %s436_s23 }
  0xe2   : > { %s2802_s28 = scalar_lea.hbm %s3476_s2, 128  ;;  %p2803_p11 = scmp.lt.u32.totalorder %s3288_s16, %s3476_s2 }
  0xe3   : > { %p2800_p9 = pnand %p2798_p12, %p3543_p2  ;;  %p2804_p7 = scmp.lt.u32.totalorder %s2802_s28, %s2797_s5 }
  0xe4   : > { %p2806_p4 = scmp.lt.u32.totalorder %s2797_s5, %s3288_s16 }
  0xe5   : > { %p2801_p5 = pneg %p2800_p9  ;;  %p2805_p0 = por %p2804_p7, %p2803_p11 }
  0xe7   : > { %p2807_p10 = por %p2806_p4, %p2805_p0 }
  0xe9   : > { %p2808_p13 = pnand %p2807_p10, %p2801_p5 }
  0xeb   : > { %2811 = shalt.err (!%p2808_p13)
}
  0xec   : > { %s2812_s10 = scalar_lea.vmem %s437_s23, 64  ;;  %s2938_s25 = smov [#allocation10]  }
  0xed   : > { %p2813_p3 = scmp.ne.s32.totalorder %s437_s23, %s2812_s10  ;;  %s2817_s22 = sshll.u32 %s2938_s25, 4  ;;  %s2818_s22 = int_to_ptr.vmem [resolvable:$false] %s2817_s22 }
  0xee   : > { %s2819_s4 = scalar_lea.vmem %s2818_s22, 128  ;;  %p2820_p12 = scmp.lt.s32.totalorder %s437_s23, %s2818_s22 }
  0xef   : > { %p2815_p6 = pnand %p2813_p3, %p3543_p2  ;;  %p2821_p9 = scmp.lt.s32.totalorder %s2819_s4, %s2812_s10 }
  0xf1   : > { %p2816_p1 = pneg %p2815_p6  ;;  %p2822_p8 = por %p2821_p9, %p2820_p12 }
  0xf3   : > { %p2823_p7 = pnand %p2822_p8, %p2816_p1 }
  0xf5   : > { %2826 = shalt.err (!%p2823_p7)
}
  0xf6   : > { %p3545_p11 = scmp.ne.s32.totalorder %s3534_s26, 0  ;;  %p3546_p5 = scmp.ne.s32.totalorder %s3521_s20, 0 }
  0xf7   : > { %s3312_s17 = sand.u32 (!%p3546_p5), 1, %s2909_s14   ;;  %p3547_p2 = scmp.ne.s32.totalorder (!%p3546_p5), %s3528_s12, 0 }
  0xf8   : > { %2404 = dma.hbm_to_vmem [thread:$0]  (!%p3545_p11), %s3288_s16, 64, %s437_s23, %s3168_s30  }
  0xf9   : > { %445 = sbr.rel (%p3546_p5) target bundleno = 1514 (0x5ea), region = 60  ;;  %s3315_s9 = sshll.u32 (!%p3546_p5), %s3312_s17, 2 }
  0xfa   : > { %s448_s24 = scalar_lea.sflag (!%p3546_p5), [#allocation6], %s3312_s17  ;;  %s451_s11 = scalar_lea.vmem (!%p3546_p5), [#allocation5], %s3315_s9 }
 0x100   : > { %2880 = dma.done.wait (%p3547_p2), %s448_s24, 64  }
 0x101   : > { %2882 = vsyncadd (%p3547_p2), %s448_s24, 4294967232  ;;  %s456_s20 = sand.u32 1, %s3029_s19   ;;  %s460_s30 = scalar_lea.vmem [#allocation8], %s3315_s9 }
 0x102   : > { %s457_s26 = scalar_lea.sflag [#allocation9], %s456_s20 }
 0x103   : > { %2884 = dma.done.wait (%p3547_p2), %s457_s26, 128  }
 0x104   : > { %2886 = vsyncadd (%p3547_p2), %s457_s26, 4294967168  ;;  %s469_s21 = scalar_lea.vmem [#allocation10], %s3315_s9  ;;  %p3548_p8 = scmp.eq.s32.totalorder %s3029_s19, 0 }
 0x106   : > { %2888 = dma.done.wait (%p3548_p8), [#allocation12], 2048   ;;  %p3549_p0 = pmov %p3548_p8 }
 0x108   : > { %2890 = vsyncadd (%p3549_p0), [#allocation12], 4294965248  ;;  %p3550_p4 = pmov %p3549_p0 }
 0x109   : > { %p3551_p10 = pmov %p3549_p0 }
 0x10a   : > { %2892 = dma.done.wait (%p3550_p4), [#allocation15], 2048  }
 0x10b   : > { %2894 = vsyncadd (%p3551_p10), [#allocation15], 4294965248  ;;  %p3552_p13 = pmov %p3549_p0 }
 0x10c   : > { %p3553_p3 = pmov %p3549_p0 }
 0x10d   : > { %2896 = dma.done.wait (%p3552_p13), [#allocation18], 4096  }
 0x10e   : > { %2898 = vsyncadd (%p3553_p3), [#allocation18], 4294963200  ;;  %v2939_v0 = vmov 0   ;;  %v2481_v1 = vld [vmem:[#allocation13 + $0x4] ss:$16 sps:$4 sm:$0xff]   ;;  %vm591_vm0 = vcmask 261120   ;;  %v838_v41 = vlaneseq }
 0x10f   : > { %627 = vmatprep.mubr.bf16.mxu0 %v2939_v0  ;;  %668 = vmatprep.mubr.bf16.mxu1 %v2939_v0  ;;  %v2483_v2 = vld [vmem:[#allocation13 + $0xc] ss:$16 sps:$4 sm:$0xff]   ;;  %v2485_v3 = vld [vmem:[#allocation13] ss:$16 sps:$4 sm:$0xff]   ;;  %v2486_v4 = vld [vmem:[#allocation13 + $0x8] ss:$16 sps:$4 sm:$0xff]  }
 0x110   : > { %595 = vmatprep.subr.bf16.mxu0 %v2481_v1  ;;  %636 = vmatprep.subr.bf16.mxu1 %v2483_v2  ;;  %v2487_v5 = vld [vmem:[#allocation13 + $0x24] ss:$16 sps:$4 sm:$0xff]   ;;  %v2489_v6 = vld [vmem:[#allocation13 + $0x2c] ss:$16 sps:$4 sm:$0xff]   ;;  %v2491_v7 = vld [vmem:[#allocation13 + $0x20] ss:$16 sps:$4 sm:$0xff]  }
 0x111   : > { %596 = vmatpush1.bf16.msra.mxu0 %v2485_v3  ;;  %637 = vmatpush1.bf16.msra.mxu1 %v2486_v4  ;;  %v2492_v8 = vld [vmem:[#allocation13 + $0x28] ss:$16 sps:$4 sm:$0xff]   ;;  %v541_v9 = vld [vmem:[%s460_s30] sm:$0xf]  ;;  %v2498_v13 = vld [vmem:[#allocation14 + $0xc] ss:$16 sps:$4 sm:$0xff]  }
 0x112   : > { %597 = vmatprep.subr.bf16.mxu0 %v2487_v5  ;;  %638 = vmatprep.subr.bf16.mxu1 %v2489_v6  ;;  %v2493_v10 = vld [vmem:[#allocation14] ss:$16 sps:$4 sm:$0xff]   ;;  %v2495_v11 = vld [vmem:[#allocation14 + $0x4] ss:$16 sps:$4 sm:$0xff]   ;;  %v2496_v12 = vld [vmem:[#allocation14 + $0x8] ss:$16 sps:$4 sm:$0xff]  }
 0x113   : > { %v2501_v14 = vld [vmem:[#allocation14 + $0x24] ss:$16 sps:$4 sm:$0xff]   ;;  %v2504_v15 = vld [vmem:[#allocation14 + $0x2c] ss:$16 sps:$4 sm:$0xff]   ;;  %v2499_v16 = vld [vmem:[#allocation14 + $0x20] ss:$16 sps:$4 sm:$0xff]  }
 0x114   : > { %v2502_v17 = vld [vmem:[#allocation14 + $0x28] ss:$16 sps:$4 sm:$0xff]   ;;  %v2507_v18 = vld [vmem:[#allocation16 + $0x4] ss:$16 sps:$4 sm:$0xff]   ;;  %v2510_v19 = vld [vmem:[#allocation16 + $0xc] ss:$16 sps:$4 sm:$0xff]  }
 0x115   : > { %598 = vmatpush1.bf16.msra.mxu0 %v2491_v7  ;;  %639 = vmatpush1.bf16.msra.mxu1 %v2492_v8  ;;  %v542_v20 = vld [vmem:[%s469_s21] sm:$0xf]  ;;  %v2505_v21 = vld [vmem:[#allocation16] ss:$16 sps:$4 sm:$0xff]   ;;  %v2513_v23 = vld [vmem:[#allocation16 + $0x24] ss:$16 sps:$4 sm:$0xff]  }
 0x116   : > { %746 = vmatprep.subr.bf16.mxu0 %v2495_v11  ;;  %787 = vmatprep.subr.bf16.mxu1 %v2498_v13  ;;  %v2508_v22 = vld [vmem:[#allocation16 + $0x8] ss:$16 sps:$4 sm:$0xff]   ;;  %v2516_v24 = vld [vmem:[#allocation16 + $0x2c] ss:$16 sps:$4 sm:$0xff]   ;;  %v2511_v25 = vld [vmem:[#allocation16 + $0x20] ss:$16 sps:$4 sm:$0xff]  }
 0x117   : > { %v2514_v26 = vld [vmem:[#allocation16 + $0x28] ss:$16 sps:$4 sm:$0xff]   ;;  %v2519_v27 = vld [vmem:[#allocation11 + $0x4] ss:$16 sps:$4 sm:$0xff]   ;;  %v2525_v28 = vld [vmem:[#allocation11 + $0xc] ss:$16 sps:$4 sm:$0xff]  }
 0x118   : > { %2154 = vmatmul.mubr.msk.bf16.vlgmr.msra.gmra.mrb[0].mxu0 %vm591_vm0, %v541_v9  ;;  %2155 = vmatmul.mubr.msk.bf16.vlgmr.msra.gmra.mrb[0].mxu1 %vm591_vm0, %v541_v9  ;;  %v2517_v29 = vld [vmem:[#allocation11] ss:$16 sps:$4 sm:$0xff]   ;;  %v2522_v30 = vld [vmem:[#allocation11 + $0x24] ss:$16 sps:$4 sm:$0xff]   ;;  %v2523_v31 = vld [vmem:[#allocation11 + $0x8] ss:$16 sps:$4 sm:$0xff]  }
 0x119   : > { %747 = vmatpush1.bf16.msra.mxu0 %v2493_v10  ;;  %788 = vmatpush1.bf16.msra.mxu1 %v2496_v12  ;;  %v2528_v32 = vld [vmem:[#allocation11 + $0x2c] ss:$16 sps:$4 sm:$0xff]   ;;  %v2520_v33 = vld [vmem:[#allocation11 + $0x20] ss:$16 sps:$4 sm:$0xff]   ;;  %v2526_v34 = vld [vmem:[#allocation11 + $0x28] ss:$16 sps:$4 sm:$0xff]  }
 0x11a   : > { %748 = vmatprep.subr.bf16.mxu0 %v2501_v14  ;;  %789 = vmatprep.subr.bf16.mxu1 %v2504_v15  ;;  %v1026_v35 = vld [vmem:[%s451_s11] sm:$0xf]  ;;  %v2940_v36 = vmov 0.0   ;;  %vm2941_vm1 = vmmov 0   ;;  %v839_v48 = vshrl.u32 %v838_v41, 7  ;;  %vm1346_vm2 = vcmask 1043456  }
 0x11b   : > { %778 = vmatprep.mubr.bf16.mxu0 %v2939_v0  ;;  %819 = vmatprep.mubr.bf16.mxu1 %v2939_v0  ;;  %v836_v57 = vld [vmem:[%s3481_s7] sm:$0xf]  ;;  %vm1329_vm3 = vcmask 64512   ;;  %s3554_s27 = sld [smem:[#allocation27_spill]]  ;;  %s2145_s16 = sshll.u32 %s3312_s17, 3 }
 0x11c   : > { %v840_v53 = vsub.s32 0, %v839_v48  ;;  %v848_v54 = vsub.s32 2, %v839_v48  ;;  %v844_v58 = vsub.s32 1, %v839_v48  ;;  %v852_v59 = vsub.s32 3, %v839_v48  ;;  %s3555_s5 = sld [smem:[#allocation38_spill]]  ;;  %s535_s28 = scalar_lea.vmem [#allocation19], %s2145_s16 }
 0x11d   : > { %749 = vmatpush1.bf16.msra.mxu0 %v2499_v16  ;;  %790 = vmatpush1.bf16.msra.mxu1 %v2502_v17  ;;  %s3556_s13 = sld [smem:[#allocation31_spill]]  ;;  %s1950_s29 = sshll.u32 %s535_s28, 4  ;;  %s3427_s29 = int_to_ptr.vmem [resolvable:$true] %s1950_s29 }
 0x11e   : > { %898 = vmatprep.subr.bf16.mxu0 %v2507_v18  ;;  %939 = vmatprep.subr.bf16.mxu1 %v2510_v19  ;;  %v849_v1 = vrot.slane %v836_v57, %v848_v54  ;;  %v845_v2 = vrot.slane %v836_v57, %v844_v58  ;;  %v853_v3 = vrot.slane %v836_v57, %v852_v59  ;;  %s3557_s25 = sld [smem:[#allocation39_spill]]  ;;  %s1936_s4 = scalar_lea.sflag [#allocation7], %s3312_s17 }
 0x11f   : > { %s2827_s9 = scalar_lea.vmem %s3427_s29, 128  ;;  %s2942_s24 = smov [#allocation19]  }
 0x120   : > { %2166 = vmatmul.mubr.msk.bf16.vlgmr.msra.gmra.mrb[4].mxu0 %vm591_vm0, %v542_v20  ;;  %2167 = vmatmul.mubr.msk.bf16.vlgmr.msra.gmra.mrb[4].mxu1 %vm591_vm0, %v542_v20  ;;  %p2828_p6 = scmp.ne.s32.totalorder %s3427_s29, %s2827_s9  ;;  %s2831_s11 = sshll.u32 %s2942_s24, 4  ;;  %s2832_s11 = int_to_ptr.vmem [resolvable:$false] %s2831_s11 }
 0x121   : > { %899 = vmatpush1.bf16.msra.mxu0 %v2505_v21  ;;  %940 = vmatpush1.bf16.msra.mxu1 %v2508_v22  ;;  %s2236_s1 = sshll.u32 %s3554_s27, 7  ;;  %s2833_s20 = scalar_lea.vmem %s2832_s11, 256 }
 0x122   : > { %900 = vmatprep.subr.bf16.mxu0 %v2513_v23  ;;  %941 = vmatprep.subr.bf16.mxu1 %v2516_v24  ;;  %p2834_p7 = scmp.lt.s32.totalorder %s3427_s29, %s2832_s11  ;;  %p2835_p11 = scmp.lt.s32.totalorder %s2833_s20, %s2827_s9 }
 0x123   : > { %930 = vmatprep.mubr.bf16.mxu0 %v2939_v0  ;;  %971 = vmatprep.mubr.bf16.mxu1 %v2939_v0  ;;  %p3558_p1 = scmp.ne.s32.totalorder %s3556_s13, 0 }
 0x124   : > { %s3425_s22 = scalar_lea.hbm %s3557_s25, %s2236_s1  ;;  %p2836_p5 = por %p2835_p11, %p2834_p7 }
 0x125   : > { %901 = vmatpush1.bf16.msra.mxu0 %v2511_v25  ;;  %942 = vmatpush1.bf16.msra.mxu1 %v2514_v26  ;;  %p2829_p12 = pnand %p2828_p6, %p3558_p1 }
 0x126   : > { %1079 = vmatprep.subr.bf16.mxu0 %v2519_v27  ;;  %1120 = vmatprep.subr.bf16.mxu1 %v2525_v28 }
 0x127   : > { %p2830_p9 = pneg %p2829_p12 }
 0x128   : > { %2176 = vmatmul.mubr.msk.bf16.vlgmr.msra.gmra.mrb[8].mxu0 %vm591_vm0, %v542_v20  ;;  %2177 = vmatmul.mubr.msk.bf16.vlgmr.msra.gmra.mrb[8].mxu1 %vm591_vm0, %v542_v20 }
 0x129   : > { %1080 = vmatpush1.bf16.msra.mxu0 %v2517_v29  ;;  %1111 = vmatprep.mubr.bf16.mxu0 %v2939_v0  ;;  %p2837_p2 = pnand %p2836_p5, %p2830_p9 }
 0x12a   : > { %1081 = vmatprep.subr.bf16.mxu0 %v2522_v30  ;;  %1121 = vmatpush1.bf16.msra.mxu1 %v2523_v31 }
 0x12b   : > { %1122 = vmatprep.subr.bf16.mxu1 %v2528_v32  ;;  %1152 = vmatprep.mubr.bf16.mxu1 %v2939_v0  ;;  %v841_v0 = vrot.slane %v836_v57, %v840_v53 }
 0x12d   : > { %1082 = vmatpush1.bf16.msra.mxu0 %v2520_v33 }
 0x12e   : > { %1123 = vmatpush1.bf16.msra.mxu1 %v2526_v34  ;;  %2303 = vmatprep.subr.bf16.mxu0 %v2940_v36 }
 0x12f   : > { %2309 = vmatprep.subr.bf16.mxu1 %v2940_v36 }
 0x130   : > { %2192 = vmatmul.mubr.msk.bf16.vlgmr.msra.gmra.mrb[12].mxu0 %vm591_vm0, %v1026_v35 }
 0x131   : > { %2193 = vmatmul.mubr.msk.bf16.vlgmr.msra.gmra.mrb[12].mxu1 %vm591_vm0, %v1026_v35  ;;  %2305 = vmatprep.mubr.msk.bf16.mxu0 %vm2941_vm1, %v2940_v36 }
 0x132   : > { %2311 = vmatprep.mubr.msk.bf16.mxu1 %vm2941_vm1, %v2940_v36 }
 0x1eb   : > { %v629_v37 = vpop.f32.mrb[0].mxu0  ;;  %v670_v38 = vpop.f32.mrb[0].mxu1 }
 0x1ec   : > { %v631_v39 = vpop.f32.mrb[1].mxu0  ;;  %v672_v40 = vpop.f32.mrb[1].mxu1 }
 0x1ed   : > { %v2239_v42 = vpack.c.bf16 %v631_v39, %v629_v37  ;;  %v633_v43 = vpop.f32.mrb[2].mxu0  ;;  %v2240_v44 = vpack.c.bf16 %v672_v40, %v670_v38  ;;  %v674_v45 = vpop.f32.mrb[2].mxu1 }
 0x1ee   : > { %v634_v46 = vpop.f32.mrb[3].mxu0  ;;  %v675_v47 = vpop.f32.mrb[3].mxu1 }
 0x1ef   : > { %693 = vst [vmem:[#allocation2] sm:$0xff] %v2239_v42  ;;  %694 = vst [vmem:[#allocation2 + $0x8] sm:$0xff] %v2240_v44 }
 0x1f3   : > { %v3368_v49 = vpop.f32.mrb[4].mxu0  ;;  %v3370_v50 = vpop.f32.mrb[4].mxu1 }
 0x1f4   : > { %v3372_v51 = vpop.f32.mrb[5].mxu0  ;;  %v3374_v52 = vpop.f32.mrb[5].mxu1 }
 0x1f5   : > { %v784_v55 = vpop.f32.mrb[6].mxu0  ;;  %v825_v56 = vpop.f32.mrb[6].mxu1 }
 0x1f6   : > { %v785_v60 = vpop.f32.mrb[7].mxu0  ;;  %v1165_v61 = vld [vmem:[#allocation2] sm:$0xf]  ;;  %v1206_v62 = vld [vmem:[#allocation2 + $0x4] sm:$0xf]  ;;  %v826_v63 = vpop.f32.mrb[7].mxu1 }
 0x1f7   : > { %2304 = vmatpush3.bf16.xpose.msra.mxu0 %v1165_v61  ;;  %2310 = vmatpush3.bf16.xpose.msra.mxu1 %v1206_v62  ;;  %v1247_v28 = vld [vmem:[#allocation2 + $0x8] sm:$0xf]  ;;  %v1288_v30 = vld [vmem:[#allocation2 + $0xc] sm:$0xf] }
 0x1f8   : > { %2315 = vmatprep.subr.bf16.mxu0 %v2940_v36  ;;  %2321 = vmatprep.subr.bf16.mxu1 %v2940_v36 }
 0x1fb   : > { %v932_v4 = vpop.f32.mrb[8].mxu0  ;;  %v973_v5 = vpop.f32.mrb[8].mxu1 }
 0x1fc   : > { %v933_v6 = vadd.f32 %v932_v4, %v841_v0  ;;  %v974_v7 = vadd.f32 %v973_v5, %v849_v1  ;;  %v934_v8 = vpop.f32.mrb[9].mxu0  ;;  %v975_v9 = vpop.f32.mrb[9].mxu1 }
 0x1fd   : > { %v935_v10 = vadd.f32 %v934_v8, %v845_v2  ;;  %v976_v11 = vadd.f32 %v975_v9, %v853_v3  ;;  %v936_v12 = vpop.f32.mrb[10].mxu0  ;;  %v977_v13 = vpop.f32.mrb[10].mxu1 }
 0x1fe   : > { %v2178_v14 = vmul.f32 -1.442695, %v933_v6  ;;  %v2180_v15 = vmul.f32 -1.442695, %v974_v7  ;;  %v937_v16 = vpop.f32.mrb[11].mxu0  ;;  %v978_v17 = vpop.f32.mrb[11].mxu1 }
 0x1ff   : > { %v2179_v18 = vmul.f32 -1.442695, %v935_v10  ;;  %v2181_v19 = vmul.f32 -1.442695, %v976_v11 }
 0x200   : > { %2565 = vpow2.f32 %v2178_v14 }
 0x201   : > { %2567 = vpow2.f32 %v2180_v15 }
 0x202   : > { %2569 = vpow2.f32 %v2179_v18 }
 0x203   : > { %2571 = vpow2.f32 %v2181_v19  ;;  %v1113_v20 = vpop.f32.mrb[12].mxu0 }
 0x204   : > { %v1161_v21 = vpack.c.bf16 %v1113_v20, %v1113_v20  ;;  %v1115_v22 = vpop.f32.mrb[13].mxu0  ;;  %v1154_v23 = vpop.f32.mrb[12].mxu1 }
 0x205   : > { %v1162_v24 = vpack.c.bf16 %v1115_v22, %v1115_v22  ;;  %v1117_v25 = vpop.f32.mrb[14].mxu0  ;;  %v1156_v26 = vpop.f32.mrb[13].mxu1  ;;  %v1163_v33 = vpack.c.bf16 %v1154_v23, %v1154_v23 }
 0x206   : > { %v1118_v27 = vpop.f32.mrb[15].mxu0  ;;  %2306 = vmatmul.mubr.bf16.vlgmr.msra.gmra.mrb[16].mxu0 %v1161_v21  ;;  %v1158_v29 = vpop.f32.mrb[14].mxu1  ;;  %v1164_v37 = vpack.c.bf16 %v1156_v26, %v1156_v26 }
 0x207   : > { %2316 = vmatpush3.bf16.xpose.msra.mxu0 %v1247_v28  ;;  %2312 = vmatmul.mubr.bf16.vlgmr.msra.gmra.mrb[16].mxu1 %v1162_v24  ;;  %v1159_v31 = vpop.f32.mrb[15].mxu1 }
 0x208   : > { %2322 = vmatpush3.bf16.xpose.msra.mxu1 %v1288_v30  ;;  %2317 = vmatprep.mubr.msk.bf16.mxu0 %vm2941_vm1, %v2940_v36 }
 0x209   : > { %2323 = vmatprep.mubr.msk.bf16.mxu1 %vm2941_vm1, %v2940_v36  ;;  %2327 = vmatprep.subr.bf16.mxu0 %v2940_v36 }
 0x20a   : > { %v2566_v32 = vpop.eup %2565  ;;  %2333 = vmatprep.subr.bf16.mxu1 %v2940_v36 }
 0x20b   : > { %v2568_v34 = vpop.eup %2567  ;;  %v992_v35 = vadd.f32 1.0, %v2566_v32 }
 0x20c   : > { %v2570_v38 = vpop.eup %2569  ;;  %v994_v39 = vadd.f32 1.0, %v2568_v34 }
 0x20d   : > { %v2572_v40 = vpop.eup %2571  ;;  %2573 = vrcp.f32 %v992_v35  ;;  %v993_v41 = vadd.f32 1.0, %v2570_v38 }
 0x20e   : > { %2575 = vrcp.f32 %v994_v39  ;;  %v995_v42 = vadd.f32 1.0, %v2572_v40  ;;  %2318 = vmatmul.mubr.bf16.vlgmr.msra.gmra.mrb[20].mxu0 %v1163_v33 }
 0x20f   : > { %2577 = vrcp.f32 %v993_v41  ;;  %2324 = vmatmul.mubr.bf16.vlgmr.msra.gmra.mrb[20].mxu1 %v1164_v37  ;;  %2329 = vmatprep.mubr.msk.bf16.mxu0 %vm2941_vm1, %v2940_v36 }
 0x210   : > { %2579 = vrcp.f32 %v995_v42  ;;  %2335 = vmatprep.mubr.msk.bf16.mxu1 %vm2941_vm1, %v2940_v36  ;;  %v2529_v42 = vld [vmem:[#allocation17 + $0x40] sm:$0xff]  }
 0x217   : > { %v2574_v43 = vpop.eup %2573 }
 0x218   : > { %v2576_v44 = vpop.eup %2575  ;;  %v1004_v45 = vmul.f32 %v2574_v43, %v3368_v49 }
 0x219   : > { %v2578_v46 = vpop.eup %2577  ;;  %v1006_v47 = vmul.f32 %v2576_v44, %v3370_v50 }
 0x21a   : > { %v2580_v48 = vpop.eup %2579  ;;  %v1005_v53 = vmul.f32 %v2578_v46, %v3372_v51 }
 0x21b   : > { %v1007_v54 = vmul.f32 %v2580_v48, %v3374_v52  ;;  %v2534_v48 = vld [vmem:[#allocation17 + $0xc0] sm:$0xff]  }
 0x21c   : > { %v2241_v55 = vpack.c.bf16 %v1005_v53, %v1004_v45 }
 0x21d   : > { %v2242_v56 = vpack.c.bf16 %v1007_v54, %v1006_v47 }
 0x21e   : > { %1024 = vst [vmem:[#allocation3] sm:$0xff] %v2241_v55 }
 0x21f   : > { %1025 = vst [vmem:[#allocation3 + $0x8] sm:$0xff] %v2242_v56  ;;  %v2530_v56 = vld [vmem:[#allocation17] sm:$0xff]  }
 0x225   : > { %v1342_v57 = vld [vmem:[#allocation3] sm:$0xf]  ;;  %v1404_v58 = vld [vmem:[#allocation3 + $0x4] sm:$0xf] }
 0x226   : > { %v1348_v59 = vsel %vm1346_vm2, %v1342_v57, 0  ;;  %v1409_v60 = vsel %vm1346_vm2, %v1404_v58, 0  ;;  %v1465_v40 = vld [vmem:[#allocation3 + $0x8] sm:$0xf]  ;;  %v1526_v46 = vld [vmem:[#allocation3 + $0xc] sm:$0xf] }
 0x227   : > { %2328 = vmatpush3.bf16.msra.mxu0 %v1348_v59  ;;  %2334 = vmatpush3.bf16.msra.mxu1 %v1409_v60  ;;  %v1470_v45 = vsel %vm1346_vm2, %v1465_v40, 0  ;;  %v1531_v55 = vsel %vm1346_vm2, %v1526_v46, 0  ;;  %v2531_v58 = vld [vmem:[#allocation17 + $0x48] sm:$0xff]  }
 0x228   : > { %2339 = vmatprep.subr.bf16.mxu0 %v2940_v36  ;;  %2345 = vmatprep.subr.bf16.mxu1 %v2940_v36 }
 0x2d9   : > { %v1200_v49 = vpop.f32.mrb[16].mxu0 }
 0x2da   : > { %v2307_v50 = vpop.f32.mrb[17].mxu0  ;;  %v1241_v51 = vpop.f32.mrb[16].mxu1  ;;  %v1330_v52 = vsel %vm1329_vm3, %v1200_v49, -inf }
 0x2db   : > { %v2313_v61 = vpop.f32.mrb[17].mxu1  ;;  %1331 = vmax.xlane.f32.xlu0 %v1330_v52  ;;  %v1203_v62 = vpop.f32.mrb[18].mxu0  ;;  %v1392_v2 = vsel %vm1329_vm3, %v1241_v51, -inf  ;;  %v2536_v50 = vld [vmem:[#allocation17 + $0x80] sm:$0xff]   ;;  %v2533_v52 = vld [vmem:[#allocation17 + $0x50] sm:$0xff]  }
 0x2dc   : > { %v2308_v63 = vpop.f32.mrb[19].mxu0  ;;  %v1244_v0 = vpop.f32.mrb[18].mxu1  ;;  %v2538_v61 = vld [vmem:[#allocation17 + $0xc8] sm:$0xff]   ;;  %v2535_v62 = vld [vmem:[#allocation17 + $0x10] sm:$0xff]  }
 0x2dd   : > { %v2314_v1 = vpop.f32.mrb[19].mxu1  ;;  %v2537_v63 = vld [vmem:[#allocation17 + $0x58] sm:$0xff]  }
 0x2de   : > { %v2539_v0 = vld [vmem:[#allocation17 + $0x18] sm:$0xff]   ;;  %v2541_v1 = vld [vmem:[#allocation17 + $0x60] sm:$0xff]  }
 0x2df   : > { %1393 = vmax.xlane.f32.xlu0 %v1392_v2  ;;  %v2542_v2 = vld [vmem:[#allocation17 + $0xd0] sm:$0xff]  }
 0x2e1   : > { %v1282_v3 = vpop.f32.mrb[20].mxu0 }
 0x2e2   : > { %v2319_v4 = vpop.f32.mrb[21].mxu0  ;;  %v1323_v5 = vpop.f32.mrb[20].mxu1  ;;  %v1453_v6 = vsel %vm1329_vm3, %v1282_v3, -inf }
 0x2e3   : > { %v2325_v7 = vpop.f32.mrb[21].mxu1  ;;  %1454 = vmax.xlane.f32.xlu1 %v1453_v6  ;;  %v1285_v8 = vpop.f32.mrb[22].mxu0  ;;  %v1514_v12 = vsel %vm1329_vm3, %v1323_v5, -inf  ;;  %v2544_v4 = vld [vmem:[#allocation17 + $0x90] sm:$0xff]   ;;  %v2546_v6 = vld [vmem:[#allocation17 + $0xd8] sm:$0xff]  }
 0x2e4   : > { %v2320_v9 = vpop.f32.mrb[23].mxu0  ;;  %v1326_v10 = vpop.f32.mrb[22].mxu1  ;;  %v2547_v7 = vld [vmem:[#allocation17 + $0x28] sm:$0xff]   ;;  %v2548_v8 = vld [vmem:[#allocation17 + $0x98] sm:$0xff]  }
 0x2e5   : > { %v2326_v11 = vpop.f32.mrb[23].mxu1  ;;  %v2549_v9 = vld [vmem:[#allocation17 + $0x70] sm:$0xff]   ;;  %v2550_v10 = vld [vmem:[#allocation17 + $0xe0] sm:$0xff]  }
 0x2e6   : > { %v2551_v11 = vld [vmem:[#allocation17 + $0x30] sm:$0xff]  }
 0x2e7   : > { %1515 = vmax.xlane.f32.xlu1 %v1514_v12  ;;  %v2552_v12 = vld [vmem:[#allocation17 + $0xa0] sm:$0xff]  }
 0x368   : > { %v1332_v13 = vpop.xlane.xlu0 %1331 }
 0x369   : > { %v1333_v14 = vsub.f32 %v1200_v49, %v1332_v13  ;;  %v2532_v49 = vld [vmem:[#allocation17 + $0x8] sm:$0xff]   ;;  %v2553_v13 = vld [vmem:[#allocation17 + $0x78] sm:$0xff]  }
 0x36b   : > { %v1334_v15 = vmul.f32 1.442695, %v1333_v14  ;;  %v2554_v14 = vld [vmem:[#allocation17 + $0xe8] sm:$0xff]  }
 0x36c   : > { %v1394_v16 = vpop.xlane.xlu0 %1393 }
 0x36d   : > { %2581 = vpow2.f32 %v1334_v15  ;;  %v1395_v17 = vsub.f32 %v1241_v51, %v1394_v16  ;;  %v2555_v15 = vld [vmem:[#allocation17 + $0x38] sm:$0xff]   ;;  %v2556_v16 = vld [vmem:[#allocation17 + $0xa8] sm:$0xff]  }
 0x36f   : > { %v1396_v18 = vmul.f32 1.442695, %v1395_v17  ;;  %v2559_v17 = vld [vmem:[#allocation17 + $0xf0] sm:$0xff]  }
 0x370   : > { %v1455_v19 = vpop.xlane.xlu1 %1454 }
 0x371   : > { %2583 = vpow2.f32 %v1396_v18  ;;  %v1456_v20 = vsub.f32 %v1282_v3, %v1455_v19  ;;  %v2543_v3 = vld [vmem:[#allocation17 + $0x20] sm:$0xff]   ;;  %v2560_v18 = vld [vmem:[#allocation17 + $0xb0] sm:$0xff]   ;;  %v2561_v19 = vld [vmem:[#allocation17 + $0xf8] sm:$0xff]  }
 0x373   : > { %v1457_v21 = vmul.f32 1.442695, %v1456_v20  ;;  %v2562_v20 = vld [vmem:[#allocation17 + $0xb8] sm:$0xff]  }
 0x374   : > { %v1516_v22 = vpop.xlane.xlu1 %1515 }
 0x375   : > { %2585 = vpow2.f32 %v1457_v21  ;;  %v1517_v23 = vsub.f32 %v1323_v5, %v1516_v22  ;;  %v2545_v5 = vld [vmem:[#allocation17 + $0x68] sm:$0xff]  }
 0x377   : > { %v2582_v24 = vpop.eup %2581  ;;  %v1518_v25 = vmul.f32 1.442695, %v1517_v23 }
 0x378   : > { %v1336_v26 = vsel %vm1329_vm3, %v2582_v24, 0.0 }
 0x379   : > { %2587 = vpow2.f32 %v1518_v25  ;;  %1337 = vadd.xlane.f32.xlu0 %v1336_v26 }
 0x37b   : > { %v2584_v27 = vpop.eup %2583 }
 0x37c   : > { %v1398_v28 = vsel %vm1329_vm3, %v2584_v27, 0.0 }
 0x37d   : > { %1399 = vadd.xlane.f32.xlu1 %v1398_v28 }
 0x37f   : > { %v2586_v29 = vpop.eup %2585 }
 0x380   : > { %v1459_v30 = vsel %vm1329_vm3, %v2586_v29, 0.0 }
 0x381   : > { %1460 = vadd.xlane.f32.xlu0 %v1459_v30 }
 0x383   : > { %v2588_v31 = vpop.eup %2587 }
 0x384   : > { %v1520_v32 = vsel %vm1329_vm3, %v2588_v31, 0.0 }
 0x385   : > { %1521 = vadd.xlane.f32.xlu1 %v1520_v32 }
 0x406   : > { %v1338_v33 = vpop.xlane.xlu0 %1337 }
 0x407   : > { %2589 = vrcp.f32 %v1338_v33 }
 0x40a   : > { %v1400_v34 = vpop.xlane.xlu1 %1399 }
 0x40b   : > { %2591 = vrcp.f32 %v1400_v34 }
 0x40e   : > { %v1461_v35 = vpop.xlane.xlu0 %1460 }
 0x40f   : > { %2593 = vrcp.f32 %v1461_v35 }
 0x411   : > { %v2590_v37 = vpop.eup %2589 }
 0x412   : > { %v1340_v38 = vmul.f32 %v2590_v37, %v2582_v24  ;;  %v1522_v39 = vpop.xlane.xlu1 %1521 }
 0x413   : > { %2595 = vrcp.f32 %v1522_v39 }
 0x414   : > { %v1341_v41 = vpack.c.bf16 %v1340_v38, %v1340_v38 }
 0x415   : > { %v2592_v43 = vpop.eup %2591 }
 0x416   : > { %v1402_v44 = vmul.f32 %v2592_v43, %v2584_v27  ;;  %2330 = vmatmul.mubr.msk.bf16.vlgmr.msra.gmra.mrb[24].mxu0 %vm1329_vm3, %v1341_v41 }
 0x417   : > { %2340 = vmatpush3.bf16.msra.mxu0 %v1470_v45  ;;  %2341 = vmatprep.mubr.msk.bf16.mxu0 %vm2941_vm1, %v2940_v36 }
 0x418   : > { %v1403_v47 = vpack.c.bf16 %v1402_v44, %v1402_v44  ;;  %2259 = vmatprep.subr.bf16.mxu0 %v2529_v42 }
 0x419   : > { %v2594_v53 = vpop.eup %2593 }
 0x41a   : > { %v1463_v54 = vmul.f32 %v2594_v53, %v2586_v29  ;;  %2336 = vmatmul.mubr.msk.bf16.vlgmr.msra.gmra.mrb[24].mxu1 %vm1329_vm3, %v1403_v47 }
 0x41b   : > { %2346 = vmatpush3.bf16.msra.mxu1 %v1531_v55  ;;  %2347 = vmatprep.mubr.msk.bf16.mxu1 %vm2941_vm1, %v2940_v36  ;;  %v2540_v36 = vld [vmem:[#allocation17 + $0x88] sm:$0xff]  }
 0x41c   : > { %v1464_v57 = vpack.c.bf16 %v1463_v54, %v1463_v54  ;;  %2281 = vmatprep.subr.bf16.mxu1 %v2534_v48 }
 0x41d   : > { %v2596_v59 = vpop.eup %2595 }
 0x41e   : > { %v1524_v60 = vmul.f32 %v2596_v59, %v2588_v31  ;;  %2342 = vmatmul.mubr.msk.bf16.vlgmr.msra.gmra.mrb[28].mxu0 %vm1329_vm3, %v1464_v57  ;;  %v2198_v57 = vld [vmem:[%s3555_s5] ss:$0 sm:$0xff] }
 0x41f   : > { %2260 = vmatpush3.bf16.msra.mxu0 %v2530_v56 }
 0x420   : > { %v1525_v51 = vpack.c.bf16 %v1524_v60, %v1524_v60  ;;  %2261 = vmatprep.subr.bf16.mxu0 %v2531_v58 }
 0x422   : > { %2348 = vmatmul.mubr.msk.bf16.vlgmr.msra.gmra.mrb[28].mxu1 %vm1329_vm3, %v1525_v51 }
 0x423   : > { %2262 = vmatpush3.bf16.msra.mxu0 %v2532_v49  ;;  %2282 = vmatpush3.bf16.msra.mxu1 %v2536_v50 }
 0x424   : > { %2263 = vmatprep.subr.bf16.mxu0 %v2533_v52  ;;  %2283 = vmatprep.subr.bf16.mxu1 %v2538_v61 }
 0x427   : > { %2264 = vmatpush3.bf16.msra.mxu0 %v2535_v62  ;;  %2284 = vmatpush3.bf16.msra.mxu1 %v2540_v36 }
 0x428   : > { %2265 = vmatprep.subr.bf16.mxu0 %v2537_v63  ;;  %2285 = vmatprep.subr.bf16.mxu1 %v2542_v2 }
 0x42b   : > { %2266 = vmatpush3.bf16.msra.mxu0 %v2539_v0  ;;  %2286 = vmatpush3.bf16.msra.mxu1 %v2544_v4 }
 0x42c   : > { %2267 = vmatprep.subr.bf16.mxu0 %v2541_v1  ;;  %2287 = vmatprep.subr.bf16.mxu1 %v2546_v6 }
 0x42f   : > { %2268 = vmatpush3.bf16.msra.mxu0 %v2543_v3  ;;  %2288 = vmatpush3.bf16.msra.mxu1 %v2548_v8 }
 0x430   : > { %2269 = vmatprep.subr.bf16.mxu0 %v2545_v5  ;;  %2289 = vmatprep.subr.bf16.mxu1 %v2550_v10 }
 0x433   : > { %2270 = vmatpush3.bf16.msra.mxu0 %v2547_v7  ;;  %2290 = vmatpush3.bf16.msra.mxu1 %v2552_v12 }
 0x434   : > { %2271 = vmatprep.subr.bf16.mxu0 %v2549_v9  ;;  %2291 = vmatprep.subr.bf16.mxu1 %v2554_v14 }
 0x437   : > { %2272 = vmatpush3.bf16.msra.mxu0 %v2551_v11  ;;  %2292 = vmatpush3.bf16.msra.mxu1 %v2556_v16 }
 0x438   : > { %2273 = vmatprep.subr.bf16.mxu0 %v2553_v13  ;;  %2293 = vmatprep.subr.bf16.mxu1 %v2559_v17 }
 0x43b   : > { %2274 = vmatpush3.bf16.msra.mxu0 %v2555_v15  ;;  %2294 = vmatpush3.bf16.msra.mxu1 %v2560_v18 }
 0x43c   : > { %2295 = vmatprep.subr.bf16.mxu1 %v2561_v19 }
 0x43f   : > { %2296 = vmatpush3.bf16.msra.mxu1 %v2562_v20 }
 0x4e9   : > { %v1384_v21 = vpop.f32.mrb[24].mxu0 }
 0x4ea   : > { %v1390_v22 = vpack.c.bf16 %v1384_v21, %v1384_v21  ;;  %v2331_v23 = vpop.f32.mrb[25].mxu0 }
 0x4eb   : > { %v1387_v24 = vpop.f32.mrb[26].mxu0 }
 0x4ec   : > { %1391 = vst [vmem:[#allocation4] sm:$0xf] %v1390_v22  ;;  %v2332_v25 = vpop.f32.mrb[27].mxu0 }
 0x4ed   : > { %v1445_v26 = vpop.f32.mrb[24].mxu1 }
 0x4ee   : > { %v1451_v27 = vpack.c.bf16 %v1445_v26, %v1445_v26  ;;  %v2337_v28 = vpop.f32.mrb[25].mxu1 }
 0x4ef   : > { %v1448_v29 = vpop.f32.mrb[26].mxu1 }
 0x4f0   : > { %1452 = vst [vmem:[#allocation4 + $0x4] sm:$0xf] %v1451_v27  ;;  %v2338_v30 = vpop.f32.mrb[27].mxu1 }
 0x4f1   : > { %v1506_v31 = vpop.f32.mrb[28].mxu0 }
 0x4f2   : > { %v1512_v32 = vpack.c.bf16 %v1506_v31, %v1506_v31  ;;  %v2343_v33 = vpop.f32.mrb[29].mxu0 }
 0x4f3   : > { %v1509_v34 = vpop.f32.mrb[30].mxu0 }
 0x4f4   : > { %1513 = vst [vmem:[#allocation4 + $0x8] sm:$0xf] %v1512_v32  ;;  %v2344_v35 = vpop.f32.mrb[31].mxu0 }
 0x4f5   : > { %v1567_v37 = vpop.f32.mrb[28].mxu1 }
 0x4f6   : > { %v1573_v38 = vpack.c.bf16 %v1567_v37, %v1567_v37  ;;  %v2349_v39 = vpop.f32.mrb[29].mxu1 }
 0x4f7   : > { %v1570_v40 = vpop.f32.mrb[30].mxu1  ;;  %v1575_v41 = vld [vmem:[#allocation4] sm:$0xff] }
 0x4f8   : > { %1574 = vst [vmem:[#allocation4 + $0xc] sm:$0xf] %v1573_v38  ;;  %v2350_v42 = vpop.f32.mrb[31].mxu1  ;;  %v2199_v43 = vcombine.low %v1575_v41, %v1575_v41  ;;  %v2200_v44 = vcombine.high %v1575_v41, %v1575_v41 }
 0x4fa   : > { %1886 = vmatprep.mubr.bf16.mxu0 %v2200_v44 }
 0x4fb   : > { %1887 = vmatmul.mubr.bf16.vlgmr.msra.gmra.mrb[32].mxu0 %v2199_v43 }
 0x4ff   : > { %v1576_v45 = vld [vmem:[#allocation4 + $0x8] sm:$0xff] }
 0x500   : > { %v2201_v46 = vcombine.low %v1576_v45, %v1576_v45  ;;  %v2202_v47 = vcombine.high %v1576_v45, %v1576_v45 }
 0x502   : > { %1926 = vmatprep.mubr.bf16.mxu1 %v2202_v47 }
 0x503   : > { %1927 = vmatmul.mubr.bf16.vlgmr.msra.gmra.mrb[32].mxu1 %v2201_v46 }
 0x5ce   : > { %v2275_v48 = vpop.f32.mrb[32].mxu0 }
 0x5cf   : > { %v2276_v53 = vpop.f32.mrb[33].mxu0 }
 0x5d0   : > { %v2277_v54 = vadd.f32 %v2276_v53, %v2275_v48  ;;  %v2278_v55 = vpop.f32.mrb[34].mxu0 }
 0x5d1   : > { %v2279_v56 = vpop.f32.mrb[35].mxu0 }
 0x5d2   : > { %v1889_v60 = vadd.f32 %v2277_v54, %v2198_v57 }
 0x5d6   : > { %v2297_v58 = vpop.f32.mrb[32].mxu1 }
 0x5d7   : > { %v2298_v59 = vpop.f32.mrb[33].mxu1 }
 0x5d8   : > { %v2299_v49 = vadd.f32 %v2298_v59, %v2297_v58  ;;  %v2300_v50 = vpop.f32.mrb[34].mxu1 }
 0x5d9   : > { %v2301_v51 = vpop.f32.mrb[35].mxu1 }
 0x5da   : > { %v1929_v52 = vadd.f32 %v2299_v49, %v1889_v60 }
 0x5dc   : > { %1934 = vst [vmem:[%s535_s28] sm:$0xff] %v1929_v52 }
 0x5dd   : > { %2840 = shalt.err (!%p2837_p2)
}
 0x5de   : > { %s2841_s17 = scalar_lea.hbm %s3425_s22, 128  ;;  %s2845_s21 = scalar_lea.hbm %s3557_s25, 256 }
 0x5df   : > { %p2842_p8 = scmp.ne.s32.totalorder %s3425_s22, %s2841_s17  ;;  %p2846_p10 = scmp.lt.u32.totalorder %s3425_s22, %s3557_s25 }
 0x5e0   : > { %p2847_p13 = scmp.lt.u32.totalorder %s2845_s21, %s2841_s17  ;;  %p2849_p6 = scmp.lt.u32.totalorder %s2841_s17, %s3425_s22 }
 0x5e1   : > { %p2843_p0 = pnand %p2842_p8, %p3558_p1 }
 0x5e2   : > { %p2848_p3 = por %p2847_p13, %p2846_p10 }
 0x5e3   : > { %p2844_p4 = pneg %p2843_p0 }
 0x5e4   : > { %p2850_p12 = por %p2849_p6, %p2848_p3 }
 0x5e6   : > { %p2851_p9 = pnand %p2850_p12, %p2844_p4 }
 0x5e8   : > { %2854 = shalt.err (!%p2851_p9)
}
 0x5e9   : > { %2377 = dma.vmem_to_hbm [thread:$0]  (%p3558_p1), %s3427_s29, 128, %s3425_s22, %s1936_s4  }
 0x5ea PF: > { %s3559_s27 = sld [smem:[#allocation26_spill]]  ;;  %s3560_s16 = sld [smem:[#allocation33_spill]] }
 0x5eb   : > { %s3561_s3 = sld [smem:[#allocation29_spill]] }
 0x5f0   : > { %s1962_s23 = sand.u32 1, %s3559_s27   ;;  %p3562_p7 = scmp.ne.s32.totalorder %s3560_s16, 0 }
 0x5f1   : > { %p3563_p11 = scmp.ge.s32.totalorder %s3561_s3, 2  ;;  %s1963_s5 = scalar_lea.sflag [#allocation7], %s1962_s23 }
 0x5f3   : > { %p2406_p5 = pnand %p3563_p11, %p3562_p7 }
 0x5f5   : > { %2900 = dma.done.wait (!%p2406_p5), %s1963_s5, 128  }
 0x5f6   : > { %2902 = vsyncadd (!%p2406_p5), %s1963_s5, 4294967168  ;;  %s32_s18 = sadd.s32 1, %s3561_s3   ;;  %s3564_s1 = sld [smem:[#allocation32_spill]] }
 0x5f7   : > { %p29_p2 = scmp.ge.s32.totalorder %s32_s18, 4   ;;  %s3565_s16 = sld [smem:[#allocation28_spill]] }
 0x5f8   : > { %s3566_s17 = sld [smem:[#allocation30_spill]]  ;;  %s3567_s13 = smov %s2909_s14 }
 0x5f9   : > { %s3568_s14 = smov %s2913_s15  ;;  %31 = sbr.rel (!%p29_p2) target bundleno = 18 (0x12), region = 153 }
 0x5fc   : > { %s3569_s15 = smov %s3564_s1 }
 0x600   :  { %1968 = vsyncpa [#allocation6], 1 }
 0x601   :  { %1970 = vsyncpa [#allocation6 + $0x1], 1 }
 0x602   :  { %1971 = vsyncpa [#allocation9], 1 }
 0x603   :  { %1973 = vsyncpa [#allocation9 + $0x1], 1 }
 0x604   :  { %1974 = vsyncpa [#allocation12], 1 }
 0x605   :  { %1975 = vsyncpa [#allocation15], 1 }
 0x606   :  { %1976 = vsyncpa [#allocation18], 1 }
 0x607   :  { %1977 = vsyncpa [#allocation7], 1 }
 0x608   :  { %1979 = vsyncpa [#allocation7 + $0x1], 1 }

// kernel: tpu_custom_call.1
= control target key start
LH: loop header
LB: loop body
LE: loop exit
PB: predicated region body
PF: predicated region fallthrough
CT: control target
= control target key end

     0   :  { %s3474_s0 = inlined_call_operand.hbm [shape: bf16[2,8,32], index: 0, kind: input, shape index: {}]   ;;  %s3475_s1 = inlined_call_operand.hbm [shape: bf16[2,8,32], index: 1, kind: input, shape index: {}]   ;;  %s3476_s2 = inlined_call_operand.hbm [shape: bf16[2,8,32], index: 2, kind: input, shape index: {}]   ;;  %s3477_s3 = inlined_call_operand.hbm [shape: bf16[32,512], index: 3, kind: input, shape index: {}]   ;;  %s3478_s4 = inlined_call_operand.hbm [shape: bf16[32,512], index: 4, kind: input, shape index: {}]   ;;  %s3479_s5 = inlined_call_operand.hbm [shape: bf16[32,512], index: 5, kind: input, shape index: {}]   ;;  %s3480_s6 = inlined_call_operand.hbm [shape: bf16[32,512], index: 6, kind: input, shape index: {}]   ;;  %s3481_s7 = inlined_call_operand.vmem [shape: f32[1,512], index: 7, kind: input, shape index: {}]   ;;  %s3482_s8 = inlined_call_operand.hbm [shape: bf16[512,128], index: 8, kind: input, shape index: {}]   ;;  %s3483_s9 = inlined_call_operand.vmem [shape: f32[1,128], index: 9, kind: input, shape index: {}]   ;;  %s3484_s10 = inlined_call_operand.hbm [shape: f32[2,8,128], index: 10, kind: output, shape index: {}]  }
   0x1   :  { %3511 = sst [smem:[#allocation34_spill]] %s3475_s1 }
   0x2   :  { %3512 = sst [smem:[#allocation35_spill]] %s3477_s3 }
   0x3   :  { %3513 = sst [smem:[#allocation36_spill]] %s3478_s4 }
   0x4   :  { %3514 = sst [smem:[#allocation37_spill]] %s3479_s5 }
   0x5   :  { %3515 = sst [smem:[#allocation38_spill]] %s3483_s9 }
   0x6   :  { %3516 = sst [smem:[#allocation39_spill]] %s3484_s10 }
   0x7   :  { %15 = vsyncpa [#allocation6], 0 }
   0x8   :  { %17 = vsyncpa [#allocation6 + $0x1], 0 }
   0x9   :  { %18 = vsyncpa [#allocation9], 0 }
   0xa   :  { %20 = vsyncpa [#allocation9 + $0x1], 0 }
   0xb   :  { %21 = vsyncpa [#allocation12], 0 }
   0xc   :  { %22 = vsyncpa [#allocation15], 0 }
   0xd   :  { %23 = vsyncpa [#allocation18], 0 }
   0xe   :  { %24 = vsyncpa [#allocation7], 0 }
   0xf   :  { %26 = vsyncpa [#allocation7 + $0x1], 0  ;;  %s2998_s13 = smov 0   ;;  %s3000_s14 = smov 0  }
  0x10   :  { %s3002_s15 = smov 0   ;;  %s3004_s16 = smov 0  }
  0x11   :  { %s3006_s17 = smov 0   ;;  %s3008_s18 = smov 0  }
  0x12 LB: > { %3517 = sst [smem:[#allocation26_spill]] %s2905_s13  ;;  %s3029_s19 = sadd.s32 4294967295, %s2925_s18   ;;  %s2925_s18 = sphi %s3008_s18, %s32_s18   ;;  %s2921_s17 = sphi %s3006_s17, %s3566_s17   ;;  %s2917_s16 = sphi %s3004_s16, %s3565_s16   ;;  %s2913_s15 = sphi %s3002_s15, %s3569_s15   ;;  %s2909_s14 = sphi %s3000_s14, %s3568_s14   ;;  %s2905_s13 = sphi %s2998_s13, %s3567_s13  }
  0x13   : > { %3518 = sst [smem:[#allocation27_spill]] %s2917_s16  ;;  %p2123_p0 = scmp.ge.s32.totalorder %s2925_s18, 1 }
  0x14   : > { %3519 = sst [smem:[#allocation28_spill]] %s2921_s17  ;;  %p3495_p1 = scmp.eq.s32.totalorder %s3029_s19, 0 }
  0x15   : > { %3520 = sst [smem:[#allocation29_spill]] %s2925_s18  ;;  %p304_p2 = scmp.lt.s32.totalorder %s2925_s18, 3 }
  0x16   : > { %s2927_s21 = smov [#allocation11]   ;;  %s2928_s24 = smov [#allocation14]  }
  0x17   : > { %p3034_p3 = pnand %p2123_p0, %p304_p2  ;;  %s316_s22 = sshll.u32 %s2927_s21, 4  ;;  %s3038_s22 = int_to_ptr.vmem [resolvable:$true] %s316_s22 }
  0x18   : > { %s342_s25 = sshll.u32 %s2928_s24, 4  ;;  %s3523_s3 = sld [smem:[#allocation35_spill]]  ;;  %s3049_s25 = int_to_ptr.vmem [resolvable:$true] %s342_s25 }
  0x19   : > { %s3521_s20 = scalar_select %p3034_p3, 1, 0 }
  0x1a   : > { %p2379_p4 = pneg %p3034_p3 }
  0x1c   : > { %p3045_p6 = pnand %p2379_p4, %p3495_p1 }
  0x1e   : > { %s3522_s23 = scalar_select %p3045_p6, 1, 0 }
  0x1f   : > { %s2597_s28 = scalar_lea.hbm %s3523_s3, 1024  ;;  %p3059_p8 = pneg %p3045_p6 }
  0x20   : > { %p2598_p7 = scmp.ne.s32.totalorder %s3523_s3, %s2597_s28  ;;  %p2604_p11 = scmp.lt.u32.totalorder %s2597_s28, %s3523_s3 }
  0x21   : > { %s3524_s11 = scalar_select %p3059_p8, 1, 0 }
  0x22   : > { %p2600_p9 = pnand %p3059_p8, %p2598_p7 }
  0x24   : > { %p2601_p10 = pneg %p2600_p9 }
  0x26   : > { %p2606_p12 = pnand %p2604_p11, %p2601_p10 }
  0x28   : > { %2609 = shalt.err (!%p2606_p12)
}
  0x29   : > { %s2610_s24 = scalar_lea.vmem %s3038_s22, 1024  ;;  %p2618_p4 = scmp.lt.s32.totalorder %s3038_s22, %s3038_s22 }
  0x2a   : > { %p2611_p13 = scmp.ne.s32.totalorder %s3038_s22, %s2610_s24  ;;  %p2619_p5 = scmp.lt.s32.totalorder %s2610_s24, %s2610_s24 }
  0x2c   : > { %p2613_p0 = pnand %p2611_p13, %p3059_p8  ;;  %p2620_p7 = por %p2619_p5, %p2618_p4 }
  0x2e   : > { %p2614_p2 = pneg %p2613_p0 }
  0x30   : > { %p2621_p9 = pnand %p2620_p7, %p2614_p2 }
  0x32   : > { %2624 = shalt.err (!%p2621_p9)
}
  0x33   : > { %s3486_s26 = smov 256   ;;  %s3488_s27 = smov 16  }
  0x34   : > { %2382 = dma.hbm_to_vmem [thread:$0]  (!%p3045_p6), %s3523_s3, 1024, %s3038_s22, [#allocation12], %s3486_s26, %s3486_s26, %s3488_s27  }
  0x35   : > { %s3525_s5 = sld [smem:[#allocation37_spill]] }
  0x3b   : > { %s2625_s21 = scalar_lea.hbm %s3525_s5, 1024 }
  0x3c   : > { %p2626_p5 = scmp.ne.s32.totalorder %s3525_s5, %s2625_s21  ;;  %p2632_p12 = scmp.lt.u32.totalorder %s2625_s21, %s3525_s5 }
  0x3e   : > { %p2628_p10 = pnand %p2626_p5, %p3059_p8 }
  0x40   : > { %p2629_p11 = pneg %p2628_p10 }
  0x42   : > { %p2634_p13 = pnand %p2632_p12, %p2629_p11 }
  0x44   : > { %2637 = shalt.err (!%p2634_p13)
}
  0x45   : > { %s2638_s22 = scalar_lea.vmem %s3049_s25, 1024  ;;  %p2646_p7 = scmp.lt.s32.totalorder %s3049_s25, %s3049_s25 }
  0x46   : > { %p2639_p0 = scmp.ne.s32.totalorder %s3049_s25, %s2638_s22  ;;  %p2647_p9 = scmp.lt.s32.totalorder %s2638_s22, %s2638_s22 }
  0x48   : > { %p2641_p2 = pnand %p2639_p0, %p3059_p8  ;;  %p2648_p5 = por %p2647_p9, %p2646_p7 }
  0x4a   : > { %p2642_p4 = pneg %p2641_p2 }
  0x4c   : > { %p2649_p10 = pnand %p2648_p5, %p2642_p4 }
  0x4e   : > { %2652 = shalt.err (!%p2649_p10)
}
  0x4f   : > { %2388 = dma.hbm_to_vmem [thread:$0]  (!%p3045_p6), %s3525_s5, 1024, %s3049_s25, [#allocation15], %s3486_s26, %s3486_s26, %s3488_s27  }
  0x50   : > { %s2122_s16 = sadd.s32 4294967294, %s2925_s18   ;;  %s44_s28 = sadd.s32 1, %s2921_s17 }
  0x51   : > { %p46_p11 = scmp.ge.s32.totalorder %s44_s28, 2  ;;  %s53_s29 = sadd.s32 1, %s2913_s15 }
  0x52   : > { %p60_p12 = scmp.ne.s32.totalorder %s2913_s15, %s2909_s14  ;;  %p61_p13 = scmp.eq.s32.totalorder %s2925_s18, 0 }
  0x53   : > { %s3571_s28 = smov (%p46_p11, %s44_s28), 0  ;;  %p66_p2 = scmp.ne.s32.totalorder %s2909_s14, %s2905_s13 }
  0x54   : > { %3526 = sst [smem:[#allocation30_spill]] %s3571_s28  ;;  %p3117_p0 = por %p61_p13, %p60_p12 }
  0x55   : > { %s48_s25 = ssub.s32 %s2921_s17, %s3571_s28  ;;  %p291_p4 = scmp.eq.s32.totalorder %s3029_s19, 1 }
  0x56   : > { %p51_p7 = scmp.eq.s32.totalorder %s48_s25, 0  ;;  %p3128_p9 = por %p3495_p1, %p66_p2 }
  0x57   : > { %p3132_p5 = por %p291_p4, %p60_p12  ;;  %p297_p10 = scmp.eq.s32.totalorder %s2122_s16, 1 }
  0x58   : > { %s3528_s12 = scalar_select %p3128_p9, 1, 0 }
  0x59   : > { %s3529_s21 = scalar_select %p3132_p5, 1, 0 }
  0x5a   : > { %s3137_s24 = scalar_select %p51_p7, %s2913_s15, %s53_s29  }
  0x5b   : > { %3530 = sst [smem:[#allocation31_spill]] %s3529_s21  ;;  %p3139_p11 = por %p297_p10, %p66_p2 }
  0x5c   : > { %3531 = sst [smem:[#allocation32_spill]] %s3137_s24  ;;  %p2414_p13 = scmp.lt.s32.totalorder %s2925_s18, 2 }
  0x5d   : > { %s3532_s22 = scalar_select %p3139_p11, 1, 0 }
  0x5e   : > { %s3490_s9 = sand.u32 1, %s2913_s15   ;;  %s3146_s10 = sshll.u32 %s2921_s17, 6 }
  0x5f   : > { %3533 = sst [smem:[#allocation33_spill]] %s3532_s22  ;;  %s3150_s25 = sshll.u32 %s3490_s9, 2 }
  0x60   : > { %p3154_p12 = pnand %p2414_p13, %p3117_p0  ;;  %s407_s16 = sand.u32 1, %s2925_s18  }
  0x61   : > { %s3535_s1 = sld [smem:[#allocation34_spill]]  ;;  %s411_s5 = scalar_lea.vmem [#allocation8], %s3150_s25 }
  0x62   : > { %s3534_s26 = scalar_select %p3154_p12, 1, 0 }
  0x63   : > { %s418_s9 = sshll.u32 %s411_s5, 4  ;;  %s3168_s30 = scalar_lea.sflag [#allocation9], %s407_s16  ;;  %s3166_s9 = int_to_ptr.vmem [resolvable:$true] %s418_s9 }
  0x64   : > { %p3174_p2 = pneg %p3154_p12 }
  0x66   : > { %s3536_s17 = scalar_select %p3174_p2, 1, 0 }
  0x67   : > { %s3163_s3 = scalar_lea.hbm %s3535_s1, %s3146_s10  ;;  %s2658_s24 = scalar_lea.hbm %s3535_s1, 128 }
  0x68   : > { %s2653_s28 = scalar_lea.hbm %s3163_s3, 64  ;;  %p2659_p10 = scmp.lt.u32.totalorder %s3163_s3, %s3535_s1 }
  0x69   : > { %p2654_p0 = scmp.ne.s32.totalorder %s3163_s3, %s2653_s28  ;;  %p2660_p13 = scmp.lt.u32.totalorder %s2658_s24, %s2653_s28 }
  0x6a   : > { %p2662_p11 = scmp.lt.u32.totalorder %s2653_s28, %s3163_s3 }
  0x6b   : > { %p2656_p4 = pnand %p3174_p2, %p2654_p0  ;;  %p2661_p1 = por %p2660_p13, %p2659_p10 }
  0x6d   : > { %p2657_p7 = pneg %p2656_p4  ;;  %p2663_p5 = por %p2662_p11, %p2661_p1 }
  0x6f   : > { %p2664_p9 = pnand %p2663_p5, %p2657_p7 }
  0x71   : > { %2667 = shalt.err (!%p2664_p9)
}
  0x72   : > { %s2668_s16 = scalar_lea.vmem %s3166_s9, 64  ;;  %s2931_s27 = smov [#allocation8]  }
  0x73   : > { %p2669_p0 = scmp.ne.s32.totalorder %s3166_s9, %s2668_s16  ;;  %s2673_s29 = sshll.u32 %s2931_s27, 4  ;;  %s2674_s29 = int_to_ptr.vmem [resolvable:$false] %s2673_s29 }
  0x74   : > { %s2675_s18 = scalar_lea.vmem %s2674_s29, 128  ;;  %p2676_p6 = scmp.lt.s32.totalorder %s3166_s9, %s2674_s29 }
  0x75   : > { %p2671_p4 = pnand %p2669_p0, %p3174_p2  ;;  %p2677_p8 = scmp.lt.s32.totalorder %s2675_s18, %s2668_s16 }
  0x77   : > { %p2672_p3 = pneg %p2671_p4  ;;  %p2678_p10 = por %p2677_p8, %p2676_p6 }
  0x79   : > { %p2679_p13 = pnand %p2678_p10, %p2672_p3 }
  0x7b   : > { %2682 = shalt.err (!%p2679_p13)
}
  0x7c   : > { %2401 = dma.hbm_to_vmem [thread:$0]  (!%p3154_p12), %s3163_s3, 64, %s3166_s9, %s3168_s30  }
  0x7d   : > { %s2932_s28 = smov [#allocation13]   ;;  %s2933_s5 = smov [#allocation16]  }
  0x7e   : > { %s329_s24 = sshll.u32 %s2932_s28, 4  ;;  %s355_s1 = sshll.u32 %s2933_s5, 4  ;;  %s330_s24 = int_to_ptr.vmem [resolvable:$true] %s329_s24  ;;  %s356_s1 = int_to_ptr.vmem [resolvable:$true] %s355_s1 }
  0x7f   : > { %s3537_s4 = sld [smem:[#allocation36_spill]]  ;;  %p3538_p3 = scmp.ne.s32.totalorder %s3524_s11, 0 }
  0x85   : > { %s2683_s29 = scalar_lea.hbm %s3537_s4, 1024 }
  0x86   : > { %p2684_p1 = scmp.ne.s32.totalorder %s3537_s4, %s2683_s29  ;;  %p2690_p9 = scmp.lt.u32.totalorder %s2683_s29, %s3537_s4 }
  0x88   : > { %p2686_p6 = pnand %p2684_p1, %p3538_p3 }
  0x8a   : > { %p2687_p8 = pneg %p2686_p6 }
  0x8c   : > { %p2692_p5 = pnand %p2690_p9, %p2687_p8 }
  0x8e   : > { %2695 = shalt.err (!%p2692_p5)
}
  0x8f   : > { %s2696_s3 = scalar_lea.vmem %s330_s24, 1024  ;;  %p2704_p4 = scmp.lt.s32.totalorder %s330_s24, %s330_s24 }
  0x90   : > { %p2697_p11 = scmp.ne.s32.totalorder %s330_s24, %s2696_s3  ;;  %p2705_p10 = scmp.lt.s32.totalorder %s2696_s3, %s2696_s3 }
  0x92   : > { %p2699_p7 = pnand %p2697_p11, %p3538_p3  ;;  %p2706_p13 = por %p2705_p10, %p2704_p4 }
  0x94   : > { %p2700_p0 = pneg %p2699_p7 }
  0x96   : > { %p2707_p12 = pnand %p2706_p13, %p2700_p0 }
  0x98   : > { %2710 = shalt.err (!%p2707_p12)
}
  0x99   : > { %p3539_p1 = scmp.ne.s32.totalorder %s3522_s23, 0  ;;  %s3540_s22 = smov 16  }
  0x9a   : > { %s3541_s9 = smov 256   ;;  %s2711_s27 = scalar_lea.hbm %s3480_s6, 1024 }
  0x9b   : > { %2385 = dma.hbm_to_vmem [thread:$0]  (!%p3539_p1), %s3537_s4, 1024, %s330_s24, [#allocation12], %s3541_s9, %s3541_s9, %s3540_s22  }
  0x9c   : > { %p2712_p6 = scmp.ne.s32.totalorder %s3480_s6, %s2711_s27  ;;  %p2718_p9 = scmp.lt.u32.totalorder %s2711_s27, %s3480_s6 }
  0x9e   : > { %p2714_p12 = pnand %p2712_p6, %p3538_p3 }
  0xa0   : > { %p2715_p8 = pneg %p2714_p12 }
  0xa2   : > { %p2720_p5 = pnand %p2718_p9, %p2715_p8 }
  0xa4   : > { %2723 = shalt.err (!%p2720_p5)
}
  0xa5   : > { %s2724_s13 = scalar_lea.vmem %s356_s1, 1024  ;;  %p2732_p4 = scmp.lt.s32.totalorder %s356_s1, %s356_s1 }
  0xa6   : > { %p2725_p11 = scmp.ne.s32.totalorder %s356_s1, %s2724_s13  ;;  %p2733_p10 = scmp.lt.s32.totalorder %s2724_s13, %s2724_s13 }
  0xa8   : > { %p2727_p7 = pnand %p2725_p11, %p3538_p3  ;;  %p2734_p13 = por %p2733_p10, %p2732_p4 }
  0xaa   : > { %p2728_p0 = pneg %p2727_p7 }
  0xac   : > { %p2735_p2 = pnand %p2734_p13, %p2728_p0 }
  0xae   : > { %2738 = shalt.err (!%p2735_p2)
}
  0xaf   : > { %2391 = dma.hbm_to_vmem [thread:$0]  (!%p3539_p1), %s3480_s6, 1024, %s356_s1, [#allocation15], %s3541_s9, %s3541_s9, %s3540_s22  }
  0xb0   : > { %s2934_s28 = smov [#allocation17]   ;;  %s2739_s16 = scalar_lea.hbm %s3482_s8, 4096 }
  0xb1   : > { %s371_s5 = sshll.u32 %s2934_s28, 4  ;;  %p2740_p2 = scmp.ne.s32.totalorder %s3482_s8, %s2739_s16  ;;  %s372_s5 = int_to_ptr.vmem [resolvable:$true] %s371_s5 }
  0xb2   : > { %p2746_p8 = scmp.lt.u32.totalorder %s2739_s16, %s3482_s8 }
  0xb3   : > { %p2742_p6 = pnand %p2740_p2, %p3538_p3 }
  0xb5   : > { %p2743_p12 = pneg %p2742_p6 }
  0xb7   : > { %p2748_p9 = pnand %p2746_p8, %p2743_p12 }
  0xb9   : > { %2751 = shalt.err (!%p2748_p9)
}
  0xba   : > { %s2752_s1 = scalar_lea.vmem %s372_s5, 4096  ;;  %p2760_p0 = scmp.lt.s32.totalorder %s372_s5, %s372_s5 }
  0xbb   : > { %p2753_p5 = scmp.ne.s32.totalorder %s372_s5, %s2752_s1  ;;  %p2761_p4 = scmp.lt.s32.totalorder %s2752_s1, %s2752_s1 }
  0xbd   : > { %p2755_p11 = pnand %p2753_p5, %p3538_p3  ;;  %p2762_p10 = por %p2761_p4, %p2760_p0 }
  0xbf   : > { %p2756_p7 = pneg %p2755_p11 }
  0xc1   : > { %p2763_p13 = pnand %p2762_p10, %p2756_p7 }
  0xc3   : > { %2766 = shalt.err (!%p2763_p13)
}
  0xc4   : > { %s2935_s22 = smov 64   ;;  %s2936_s4 = smov 4  }
  0xc5   : > { %2394 = dma.hbm_to_vmem [thread:$0]  (!%p3539_p1), %s3482_s8, 4096, %s372_s5, [#allocation18], %s2935_s22, %s2935_s22, %s2936_s4  }
  0xc6   : > { %s3262_s28 = scalar_lea.hbm %s3474_s0, %s3146_s10  ;;  %s392_s27 = scalar_lea.vmem [#allocation5], %s3150_s25 }
  0xc7   : > { %s400_s29 = sshll.u32 %s392_s27, 4  ;;  %s3542_s16 = sand.u32 1, %s2913_s15   ;;  %s401_s29 = int_to_ptr.vmem [resolvable:$true] %s400_s29 }
  0xc8   : > { %s389_s18 = scalar_lea.sflag [#allocation6], %s3542_s16  ;;  %s2767_s3 = scalar_lea.hbm %s3262_s28, 64 }
  0xc9   : > { %p2768_p3 = scmp.ne.s32.totalorder %s3262_s28, %s2767_s3  ;;  %p3543_p2 = scmp.ne.s32.totalorder %s3536_s17, 0 }
  0xca   : > { %s2772_s13 = scalar_lea.hbm %s3474_s0, 128  ;;  %p2773_p1 = scmp.lt.u32.totalorder %s3262_s28, %s3474_s0 }
  0xcb   : > { %p2770_p6 = pnand %p2768_p3, %p3543_p2  ;;  %p2774_p8 = scmp.lt.u32.totalorder %s2772_s13, %s2767_s3 }
  0xcc   : > { %p2776_p5 = scmp.lt.u32.totalorder %s2767_s3, %s3262_s28 }
  0xcd   : > { %p2771_p12 = pneg %p2770_p6  ;;  %p2775_p9 = por %p2774_p8, %p2773_p1 }
  0xcf   : > { %p2777_p11 = por %p2776_p5, %p2775_p9 }
  0xd1   : > { %p2778_p7 = pnand %p2777_p11, %p2771_p12 }
  0xd3   : > { %2781 = shalt.err (!%p2778_p7)
}
  0xd4   : > { %s2782_s4 = scalar_lea.vmem %s401_s29, 64  ;;  %s2937_s9 = smov [#allocation5]  }
  0xd5   : > { %p2783_p0 = scmp.ne.s32.totalorder %s401_s29, %s2782_s4  ;;  %s2787_s24 = sshll.u32 %s2937_s9, 4  ;;  %s2788_s24 = int_to_ptr.vmem [resolvable:$false] %s2787_s24 }
  0xd6   : > { %s2789_s11 = scalar_lea.vmem %s2788_s24, 128  ;;  %p2790_p13 = scmp.lt.s32.totalorder %s401_s29, %s2788_s24 }
  0xd7   : > { %p2785_p4 = pnand %p2783_p0, %p3543_p2  ;;  %p2791_p3 = scmp.lt.s32.totalorder %s2789_s11, %s2782_s4 }
  0xd9   : > { %p2786_p10 = pneg %p2785_p4  ;;  %p2792_p6 = por %p2791_p3, %p2790_p13 }
  0xdb   : > { %p2793_p1 = pnand %p2792_p6, %p2786_p10 }
  0xdd   : > { %2796 = shalt.err (!%p2793_p1)
}
  0xde   : > { %p3544_p8 = scmp.ne.s32.totalorder %s3534_s26, 0  ;;  %s3288_s16 = scalar_lea.hbm %s3476_s2, %s3146_s10 }
  0xdf   : > { %s429_s3 = scalar_lea.vmem [#allocation10], %s3150_s25  ;;  %s2797_s5 = scalar_lea.hbm %s3288_s16, 64 }
  0xe0   : > { %2398 = dma.hbm_to_vmem [thread:$0]  (!%p3544_p8), %s3262_s28, 64, %s401_s29, %s389_s18  }
  0xe1   : > { %s436_s23 = sshll.u32 %s429_s3, 4  ;;  %p2798_p12 = scmp.ne.s32.totalorder %s3288_s16, %s2797_s5  ;;  %s437_s23 = int_to_ptr.vmem [resolvable:$true] %s436_s23 }
  0xe2   : > { %s2802_s28 = scalar_lea.hbm %s3476_s2, 128  ;;  %p2803_p11 = scmp.lt.u32.totalorder %s3288_s16, %s3476_s2 }
  0xe3   : > { %p2800_p9 = pnand %p2798_p12, %p3543_p2  ;;  %p2804_p7 = scmp.lt.u32.totalorder %s2802_s28, %s2797_s5 }
  0xe4   : > { %p2806_p4 = scmp.lt.u32.totalorder %s2797_s5, %s3288_s16 }
  0xe5   : > { %p2801_p5 = pneg %p2800_p9  ;;  %p2805_p0 = por %p2804_p7, %p2803_p11 }
  0xe7   : > { %p2807_p10 = por %p2806_p4, %p2805_p0 }
  0xe9   : > { %p2808_p13 = pnand %p2807_p10, %p2801_p5 }
  0xeb   : > { %2811 = shalt.err (!%p2808_p13)
}
  0xec   : > { %s2812_s10 = scalar_lea.vmem %s437_s23, 64  ;;  %s2938_s25 = smov [#allocation10]  }
  0xed   : > { %p2813_p3 = scmp.ne.s32.totalorder %s437_s23, %s2812_s10  ;;  %s2817_s22 = sshll.u32 %s2938_s25, 4  ;;  %s2818_s22 = int_to_ptr.vmem [resolvable:$false] %s2817_s22 }
  0xee   : > { %s2819_s4 = scalar_lea.vmem %s2818_s22, 128  ;;  %p2820_p12 = scmp.lt.s32.totalorder %s437_s23, %s2818_s22 }
  0xef   : > { %p2815_p6 = pnand %p2813_p3, %p3543_p2  ;;  %p2821_p9 = scmp.lt.s32.totalorder %s2819_s4, %s2812_s10 }
  0xf1   : > { %p2816_p1 = pneg %p2815_p6  ;;  %p2822_p8 = por %p2821_p9, %p2820_p12 }
  0xf3   : > { %p2823_p7 = pnand %p2822_p8, %p2816_p1 }
  0xf5   : > { %2826 = shalt.err (!%p2823_p7)
}
  0xf6   : > { %p3545_p11 = scmp.ne.s32.totalorder %s3534_s26, 0  ;;  %p3546_p5 = scmp.ne.s32.totalorder %s3521_s20, 0 }
  0xf7   : > { %s3312_s17 = sand.u32 (!%p3546_p5), 1, %s2909_s14   ;;  %p3547_p2 = scmp.ne.s32.totalorder (!%p3546_p5), %s3528_s12, 0 }
  0xf8   : > { %2404 = dma.hbm_to_vmem [thread:$0]  (!%p3545_p11), %s3288_s16, 64, %s437_s23, %s3168_s30  }
  0xf9   : > { %445 = sbr.rel (%p3546_p5) target bundleno = 1514 (0x5ea), region = 60  ;;  %s3315_s9 = sshll.u32 (!%p3546_p5), %s3312_s17, 2 }
  0xfa   : > { %s448_s24 = scalar_lea.sflag (!%p3546_p5), [#allocation6], %s3312_s17  ;;  %s451_s11 = scalar_lea.vmem (!%p3546_p5), [#allocation5], %s3315_s9 }
 0x100   : > { %2880 = dma.done.wait (%p3547_p2), %s448_s24, 64  }
 0x101   : > { %2882 = vsyncadd (%p3547_p2), %s448_s24, 4294967232  ;;  %s456_s20 = sand.u32 1, %s3029_s19   ;;  %s460_s30 = scalar_lea.vmem [#allocation8], %s3315_s9 }
 0x102   : > { %s457_s26 = scalar_lea.sflag [#allocation9], %s456_s20 }
 0x103   : > { %2884 = dma.done.wait (%p3547_p2), %s457_s26, 128  }
 0x104   : > { %2886 = vsyncadd (%p3547_p2), %s457_s26, 4294967168  ;;  %s469_s21 = scalar_lea.vmem [#allocation10], %s3315_s9  ;;  %p3548_p8 = scmp.eq.s32.totalorder %s3029_s19, 0 }
 0x106   : > { %2888 = dma.done.wait (%p3548_p8), [#allocation12], 2048   ;;  %p3549_p0 = pmov %p3548_p8 }
 0x108   : > { %2890 = vsyncadd (%p3549_p0), [#allocation12], 4294965248  ;;  %p3550_p4 = pmov %p3549_p0 }
 0x109   : > { %p3551_p10 = pmov %p3549_p0 }
 0x10a   : > { %2892 = dma.done.wait (%p3550_p4), [#allocation15], 2048  }
 0x10b   : > { %2894 = vsyncadd (%p3551_p10), [#allocation15], 4294965248  ;;  %p3552_p13 = pmov %p3549_p0 }
 0x10c   : > { %p3553_p3 = pmov %p3549_p0 }
 0x10d   : > { %2896 = dma.done.wait (%p3552_p13), [#allocation18], 4096  }
 0x10e   : > { %2898 = vsyncadd (%p3553_p3), [#allocation18], 4294963200  ;;  %v2939_v0 = vmov 0   ;;  %v2481_v1 = vld [vmem:[#allocation13 + $0x4] ss:$16 sps:$4 sm:$0xff]   ;;  %vm591_vm0 = vcmask 261120   ;;  %v838_v41 = vlaneseq }
 0x10f   : > { %627 = vmatprep.mubr.bf16.mxu0 %v2939_v0  ;;  %668 = vmatprep.mubr.bf16.mxu1 %v2939_v0  ;;  %v2483_v2 = vld [vmem:[#allocation13 + $0xc] ss:$16 sps:$4 sm:$0xff]   ;;  %v2485_v3 = vld [vmem:[#allocation13] ss:$16 sps:$4 sm:$0xff]   ;;  %v2486_v4 = vld [vmem:[#allocation13 + $0x8] ss:$16 sps:$4 sm:$0xff]  }
 0x110   : > { %595 = vmatprep.subr.bf16.mxu0 %v2481_v1  ;;  %636 = vmatprep.subr.bf16.mxu1 %v2483_v2  ;;  %v2487_v5 = vld [vmem:[#allocation13 + $0x24] ss:$16 sps:$4 sm:$0xff]   ;;  %v2489_v6 = vld [vmem:[#allocation13 + $0x2c] ss:$16 sps:$4 sm:$0xff]   ;;  %v2491_v7 = vld [vmem:[#allocation13 + $0x20] ss:$16 sps:$4 sm:$0xff]  }
 0x111   : > { %596 = vmatpush1.bf16.msra.mxu0 %v2485_v3  ;;  %637 = vmatpush1.bf16.msra.mxu1 %v2486_v4  ;;  %v2492_v8 = vld [vmem:[#allocation13 + $0x28] ss:$16 sps:$4 sm:$0xff]   ;;  %v541_v9 = vld [vmem:[%s460_s30] sm:$0xf]  ;;  %v2498_v13 = vld [vmem:[#allocation14 + $0xc] ss:$16 sps:$4 sm:$0xff]  }
 0x112   : > { %597 = vmatprep.subr.bf16.mxu0 %v2487_v5  ;;  %638 = vmatprep.subr.bf16.mxu1 %v2489_v6  ;;  %v2493_v10 = vld [vmem:[#allocation14] ss:$16 sps:$4 sm:$0xff]   ;;  %v2495_v11 = vld [vmem:[#allocation14 + $0x4] ss:$16 sps:$4 sm:$0xff]   ;;  %v2496_v12 = vld [vmem:[#allocation14 + $0x8] ss:$16 sps:$4 sm:$0xff]  }
 0x113   : > { %v2501_v14 = vld [vmem:[#allocation14 + $0x24] ss:$16 sps:$4 sm:$0xff]   ;;  %v2504_v15 = vld [vmem:[#allocation14 + $0x2c] ss:$16 sps:$4 sm:$0xff]   ;;  %v2499_v16 = vld [vmem:[#allocation14 + $0x20] ss:$16 sps:$4 sm:$0xff]  }
 0x114   : > { %v2502_v17 = vld [vmem:[#allocation14 + $0x28] ss:$16 sps:$4 sm:$0xff]   ;;  %v2507_v18 = vld [vmem:[#allocation16 + $0x4] ss:$16 sps:$4 sm:$0xff]   ;;  %v2510_v19 = vld [vmem:[#allocation16 + $0xc] ss:$16 sps:$4 sm:$0xff]  }
 0x115   : > { %598 = vmatpush1.bf16.msra.mxu0 %v2491_v7  ;;  %639 = vmatpush1.bf16.msra.mxu1 %v2492_v8  ;;  %v542_v20 = vld [vmem:[%s469_s21] sm:$0xf]  ;;  %v2505_v21 = vld [vmem:[#allocation16] ss:$16 sps:$4 sm:$0xff]   ;;  %v2513_v23 = vld [vmem:[#allocation16 + $0x24] ss:$16 sps:$4 sm:$0xff]  }
 0x116   : > { %746 = vmatprep.subr.bf16.mxu0 %v2495_v11  ;;  %787 = vmatprep.subr.bf16.mxu1 %v2498_v13  ;;  %v2508_v22 = vld [vmem:[#allocation16 + $0x8] ss:$16 sps:$4 sm:$0xff]   ;;  %v2516_v24 = vld [vmem:[#allocation16 + $0x2c] ss:$16 sps:$4 sm:$0xff]   ;;  %v2511_v25 = vld [vmem:[#allocation16 + $0x20] ss:$16 sps:$4 sm:$0xff]  }
 0x117   : > { %v2514_v26 = vld [vmem:[#allocation16 + $0x28] ss:$16 sps:$4 sm:$0xff]   ;;  %v2519_v27 = vld [vmem:[#allocation11 + $0x4] ss:$16 sps:$4 sm:$0xff]   ;;  %v2525_v28 = vld [vmem:[#allocation11 + $0xc] ss:$16 sps:$4 sm:$0xff]  }
 0x118   : > { %2154 = vmatmul.mubr.msk.bf16.vlgmr.msra.gmra.mrb[0].mxu0 %vm591_vm0, %v541_v9  ;;  %2155 = vmatmul.mubr.msk.bf16.vlgmr.msra.gmra.mrb[0].mxu1 %vm591_vm0, %v541_v9  ;;  %v2517_v29 = vld [vmem:[#allocation11] ss:$16 sps:$4 sm:$0xff]   ;;  %v2522_v30 = vld [vmem:[#allocation11 + $0x24] ss:$16 sps:$4 sm:$0xff]   ;;  %v2523_v31 = vld [vmem:[#allocation11 + $0x8] ss:$16 sps:$4 sm:$0xff]  }
 0x119   : > { %747 = vmatpush1.bf16.msra.mxu0 %v2493_v10  ;;  %788 = vmatpush1.bf16.msra.mxu1 %v2496_v12  ;;  %v2528_v32 = vld [vmem:[#allocation11 + $0x2c] ss:$16 sps:$4 sm:$0xff]   ;;  %v2520_v33 = vld [vmem:[#allocation11 + $0x20] ss:$16 sps:$4 sm:$0xff]   ;;  %v2526_v34 = vld [vmem:[#allocation11 + $0x28] ss:$16 sps:$4 sm:$0xff]  }
 0x11a   : > { %748 = vmatprep.subr.bf16.mxu0 %v2501_v14  ;;  %789 = vmatprep.subr.bf16.mxu1 %v2504_v15  ;;  %v1026_v35 = vld [vmem:[%s451_s11] sm:$0xf]  ;;  %v2940_v36 = vmov 0.0   ;;  %vm2941_vm1 = vmmov 0   ;;  %v839_v48 = vshrl.u32 %v838_v41, 7  ;;  %vm1346_vm2 = vcmask 1043456  }
 0x11b   : > { %778 = vmatprep.mubr.bf16.mxu0 %v2939_v0  ;;  %819 = vmatprep.mubr.bf16.mxu1 %v2939_v0  ;;  %v836_v57 = vld [vmem:[%s3481_s7] sm:$0xf]  ;;  %vm1329_vm3 = vcmask 64512   ;;  %s3554_s27 = sld [smem:[#allocation27_spill]]  ;;  %s2145_s16 = sshll.u32 %s3312_s17, 3 }
 0x11c   : > { %v840_v53 = vsub.s32 0, %v839_v48  ;;  %v848_v54 = vsub.s32 2, %v839_v48  ;;  %v844_v58 = vsub.s32 1, %v839_v48  ;;  %v852_v59 = vsub.s32 3, %v839_v48  ;;  %s3555_s5 = sld [smem:[#allocation38_spill]]  ;;  %s535_s28 = scalar_lea.vmem [#allocation19], %s2145_s16 }
 0x11d   : > { %749 = vmatpush1.bf16.msra.mxu0 %v2499_v16  ;;  %790 = vmatpush1.bf16.msra.mxu1 %v2502_v17  ;;  %s3556_s13 = sld [smem:[#allocation31_spill]]  ;;  %s1950_s29 = sshll.u32 %s535_s28, 4  ;;  %s3427_s29 = int_to_ptr.vmem [resolvable:$true] %s1950_s29 }
 0x11e   : > { %898 = vmatprep.subr.bf16.mxu0 %v2507_v18  ;;  %939 = vmatprep.subr.bf16.mxu1 %v2510_v19  ;;  %v849_v1 = vrot.slane %v836_v57, %v848_v54  ;;  %v845_v2 = vrot.slane %v836_v57, %v844_v58  ;;  %v853_v3 = vrot.slane %v836_v57, %v852_v59  ;;  %s3557_s25 = sld [smem:[#allocation39_spill]]  ;;  %s1936_s4 = scalar_lea.sflag [#allocation7], %s3312_s17 }
 0x11f   : > { %s2827_s9 = scalar_lea.vmem %s3427_s29, 128  ;;  %s2942_s24 = smov [#allocation19]  }
 0x120   : > { %2166 = vmatmul.mubr.msk.bf16.vlgmr.msra.gmra.mrb[4].mxu0 %vm591_vm0, %v542_v20  ;;  %2167 = vmatmul.mubr.msk.bf16.vlgmr.msra.gmra.mrb[4].mxu1 %vm591_vm0, %v542_v20  ;;  %p2828_p6 = scmp.ne.s32.totalorder %s3427_s29, %s2827_s9  ;;  %s2831_s11 = sshll.u32 %s2942_s24, 4  ;;  %s2832_s11 = int_to_ptr.vmem [resolvable:$false] %s2831_s11 }
 0x121   : > { %899 = vmatpush1.bf16.msra.mxu0 %v2505_v21  ;;  %940 = vmatpush1.bf16.msra.mxu1 %v2508_v22  ;;  %s2236_s1 = sshll.u32 %s3554_s27, 7  ;;  %s2833_s20 = scalar_lea.vmem %s2832_s11, 256 }
 0x122   : > { %900 = vmatprep.subr.bf16.mxu0 %v2513_v23  ;;  %941 = vmatprep.subr.bf16.mxu1 %v2516_v24  ;;  %p2834_p7 = scmp.lt.s32.totalorder %s3427_s29, %s2832_s11  ;;  %p2835_p11 = scmp.lt.s32.totalorder %s2833_s20, %s2827_s9 }
 0x123   : > { %930 = vmatprep.mubr.bf16.mxu0 %v2939_v0  ;;  %971 = vmatprep.mubr.bf16.mxu1 %v2939_v0  ;;  %p3558_p1 = scmp.ne.s32.totalorder %s3556_s13, 0 }
 0x124   : > { %s3425_s22 = scalar_lea.hbm %s3557_s25, %s2236_s1  ;;  %p2836_p5 = por %p2835_p11, %p2834_p7 }
 0x125   : > { %901 = vmatpush1.bf16.msra.mxu0 %v2511_v25  ;;  %942 = vmatpush1.bf16.msra.mxu1 %v2514_v26  ;;  %p2829_p12 = pnand %p2828_p6, %p3558_p1 }
 0x126   : > { %1079 = vmatprep.subr.bf16.mxu0 %v2519_v27  ;;  %1120 = vmatprep.subr.bf16.mxu1 %v2525_v28 }
 0x127   : > { %p2830_p9 = pneg %p2829_p12 }
 0x128   : > { %2176 = vmatmul.mubr.msk.bf16.vlgmr.msra.gmra.mrb[8].mxu0 %vm591_vm0, %v542_v20  ;;  %2177 = vmatmul.mubr.msk.bf16.vlgmr.msra.gmra.mrb[8].mxu1 %vm591_vm0, %v542_v20 }
 0x129   : > { %1080 = vmatpush1.bf16.msra.mxu0 %v2517_v29  ;;  %1111 = vmatprep.mubr.bf16.mxu0 %v2939_v0  ;;  %p2837_p2 = pnand %p2836_p5, %p2830_p9 }
 0x12a   : > { %1081 = vmatprep.subr.bf16.mxu0 %v2522_v30  ;;  %1121 = vmatpush1.bf16.msra.mxu1 %v2523_v31 }
 0x12b   : > { %1122 = vmatprep.subr.bf16.mxu1 %v2528_v32  ;;  %1152 = vmatprep.mubr.bf16.mxu1 %v2939_v0  ;;  %v841_v0 = vrot.slane %v836_v57, %v840_v53 }
 0x12d   : > { %1082 = vmatpush1.bf16.msra.mxu0 %v2520_v33 }
 0x12e   : > { %1123 = vmatpush1.bf16.msra.mxu1 %v2526_v34  ;;  %2303 = vmatprep.subr.bf16.mxu0 %v2940_v36 }
 0x12f   : > { %2309 = vmatprep.subr.bf16.mxu1 %v2940_v36 }
 0x130   : > { %2192 = vmatmul.mubr.msk.bf16.vlgmr.msra.gmra.mrb[12].mxu0 %vm591_vm0, %v1026_v35 }
 0x131   : > { %2193 = vmatmul.mubr.msk.bf16.vlgmr.msra.gmra.mrb[12].mxu1 %vm591_vm0, %v1026_v35  ;;  %2305 = vmatprep.mubr.msk.bf16.mxu0 %vm2941_vm1, %v2940_v36 }
 0x132   : > { %2311 = vmatprep.mubr.msk.bf16.mxu1 %vm2941_vm1, %v2940_v36 }
 0x1eb   : > { %v629_v37 = vpop.f32.mrb[0].mxu0  ;;  %v670_v38 = vpop.f32.mrb[0].mxu1 }
 0x1ec   : > { %v631_v39 = vpop.f32.mrb[1].mxu0  ;;  %v672_v40 = vpop.f32.mrb[1].mxu1 }
 0x1ed   : > { %v2239_v42 = vpack.c.bf16 %v631_v39, %v629_v37  ;;  %v633_v43 = vpop.f32.mrb[2].mxu0  ;;  %v2240_v44 = vpack.c.bf16 %v672_v40, %v670_v38  ;;  %v674_v45 = vpop.f32.mrb[2].mxu1 }
 0x1ee   : > { %v634_v46 = vpop.f32.mrb[3].mxu0  ;;  %v675_v47 = vpop.f32.mrb[3].mxu1 }
 0x1ef   : > { %693 = vst [vmem:[#allocation2] sm:$0xff] %v2239_v42  ;;  %694 = vst [vmem:[#allocation2 + $0x8] sm:$0xff] %v2240_v44 }
 0x1f3   : > { %v3368_v49 = vpop.f32.mrb[4].mxu0  ;;  %v3370_v50 = vpop.f32.mrb[4].mxu1 }
 0x1f4   : > { %v3372_v51 = vpop.f32.mrb[5].mxu0  ;;  %v3374_v52 = vpop.f32.mrb[5].mxu1 }
 0x1f5   : > { %v784_v55 = vpop.f32.mrb[6].mxu0  ;;  %v825_v56 = vpop.f32.mrb[6].mxu1 }
 0x1f6   : > { %v785_v60 = vpop.f32.mrb[7].mxu0  ;;  %v1165_v61 = vld [vmem:[#allocation2] sm:$0xf]  ;;  %v1206_v62 = vld [vmem:[#allocation2 + $0x4] sm:$0xf]  ;;  %v826_v63 = vpop.f32.mrb[7].mxu1 }
 0x1f7   : > { %2304 = vmatpush3.bf16.xpose.msra.mxu0 %v1165_v61  ;;  %2310 = vmatpush3.bf16.xpose.msra.mxu1 %v1206_v62  ;;  %v1247_v28 = vld [vmem:[#allocation2 + $0x8] sm:$0xf]  ;;  %v1288_v30 = vld [vmem:[#allocation2 + $0xc] sm:$0xf] }
 0x1f8   : > { %2315 = vmatprep.subr.bf16.mxu0 %v2940_v36  ;;  %2321 = vmatprep.subr.bf16.mxu1 %v2940_v36 }
 0x1fb   : > { %v932_v4 = vpop.f32.mrb[8].mxu0  ;;  %v973_v5 = vpop.f32.mrb[8].mxu1 }
 0x1fc   : > { %v933_v6 = vadd.f32 %v932_v4, %v841_v0  ;;  %v974_v7 = vadd.f32 %v973_v5, %v849_v1  ;;  %v934_v8 = vpop.f32.mrb[9].mxu0  ;;  %v975_v9 = vpop.f32.mrb[9].mxu1 }
 0x1fd   : > { %v935_v10 = vadd.f32 %v934_v8, %v845_v2  ;;  %v976_v11 = vadd.f32 %v975_v9, %v853_v3  ;;  %v936_v12 = vpop.f32.mrb[10].mxu0  ;;  %v977_v13 = vpop.f32.mrb[10].mxu1 }
 0x1fe   : > { %v2178_v14 = vmul.f32 -1.442695, %v933_v6  ;;  %v2180_v15 = vmul.f32 -1.442695, %v974_v7  ;;  %v937_v16 = vpop.f32.mrb[11].mxu0  ;;  %v978_v17 = vpop.f32.mrb[11].mxu1 }
 0x1ff   : > { %v2179_v18 = vmul.f32 -1.442695, %v935_v10  ;;  %v2181_v19 = vmul.f32 -1.442695, %v976_v11 }
 0x200   : > { %2565 = vpow2.f32 %v2178_v14 }
 0x201   : > { %2567 = vpow2.f32 %v2180_v15 }
 0x202   : > { %2569 = vpow2.f32 %v2179_v18 }
 0x203   : > { %2571 = vpow2.f32 %v2181_v19  ;;  %v1113_v20 = vpop.f32.mrb[12].mxu0 }
 0x204   : > { %v1161_v21 = vpack.c.bf16 %v1113_v20, %v1113_v20  ;;  %v1115_v22 = vpop.f32.mrb[13].mxu0  ;;  %v1154_v23 = vpop.f32.mrb[12].mxu1 }
 0x205   : > { %v1162_v24 = vpack.c.bf16 %v1115_v22, %v1115_v22  ;;  %v1117_v25 = vpop.f32.mrb[14].mxu0  ;;  %v1156_v26 = vpop.f32.mrb[13].mxu1  ;;  %v1163_v33 = vpack.c.bf16 %v1154_v23, %v1154_v23 }
 0x206   : > { %v1118_v27 = vpop.f32.mrb[15].mxu0  ;;  %2306 = vmatmul.mubr.bf16.vlgmr.msra.gmra.mrb[16].mxu0 %v1161_v21  ;;  %v1158_v29 = vpop.f32.mrb[14].mxu1  ;;  %v1164_v37 = vpack.c.bf16 %v1156_v26, %v1156_v26 }
 0x207   : > { %2316 = vmatpush3.bf16.xpose.msra.mxu0 %v1247_v28  ;;  %2312 = vmatmul.mubr.bf16.vlgmr.msra.gmra.mrb[16].mxu1 %v1162_v24  ;;  %v1159_v31 = vpop.f32.mrb[15].mxu1 }
 0x208   : > { %2322 = vmatpush3.bf16.xpose.msra.mxu1 %v1288_v30  ;;  %2317 = vmatprep.mubr.msk.bf16.mxu0 %vm2941_vm1, %v2940_v36 }
 0x209   : > { %2323 = vmatprep.mubr.msk.bf16.mxu1 %vm2941_vm1, %v2940_v36  ;;  %2327 = vmatprep.subr.bf16.mxu0 %v2940_v36 }
 0x20a   : > { %v2566_v32 = vpop.eup %2565  ;;  %2333 = vmatprep.subr.bf16.mxu1 %v2940_v36 }
 0x20b   : > { %v2568_v34 = vpop.eup %2567  ;;  %v992_v35 = vadd.f32 1.0, %v2566_v32 }
 0x20c   : > { %v2570_v38 = vpop.eup %2569  ;;  %v994_v39 = vadd.f32 1.0, %v2568_v34 }
 0x20d   : > { %v2572_v40 = vpop.eup %2571  ;;  %2573 = vrcp.f32 %v992_v35  ;;  %v993_v41 = vadd.f32 1.0, %v2570_v38 }
 0x20e   : > { %2575 = vrcp.f32 %v994_v39  ;;  %v995_v42 = vadd.f32 1.0, %v2572_v40  ;;  %2318 = vmatmul.mubr.bf16.vlgmr.msra.gmra.mrb[20].mxu0 %v1163_v33 }
 0x20f   : > { %2577 = vrcp.f32 %v993_v41  ;;  %2324 = vmatmul.mubr.bf16.vlgmr.msra.gmra.mrb[20].mxu1 %v1164_v37  ;;  %2329 = vmatprep.mubr.msk.bf16.mxu0 %vm2941_vm1, %v2940_v36 }
 0x210   : > { %2579 = vrcp.f32 %v995_v42  ;;  %2335 = vmatprep.mubr.msk.bf16.mxu1 %vm2941_vm1, %v2940_v36  ;;  %v2529_v42 = vld [vmem:[#allocation17 + $0x40] sm:$0xff]  }
 0x217   : > { %v2574_v43 = vpop.eup %2573 }
 0x218   : > { %v2576_v44 = vpop.eup %2575  ;;  %v1004_v45 = vmul.f32 %v2574_v43, %v3368_v49 }
 0x219   : > { %v2578_v46 = vpop.eup %2577  ;;  %v1006_v47 = vmul.f32 %v2576_v44, %v3370_v50 }
 0x21a   : > { %v2580_v48 = vpop.eup %2579  ;;  %v1005_v53 = vmul.f32 %v2578_v46, %v3372_v51 }
 0x21b   : > { %v1007_v54 = vmul.f32 %v2580_v48, %v3374_v52  ;;  %v2534_v48 = vld [vmem:[#allocation17 + $0xc0] sm:$0xff]  }
 0x21c   : > { %v2241_v55 = vpack.c.bf16 %v1005_v53, %v1004_v45 }
 0x21d   : > { %v2242_v56 = vpack.c.bf16 %v1007_v54, %v1006_v47 }
 0x21e   : > { %1024 = vst [vmem:[#allocation3] sm:$0xff] %v2241_v55 }
 0x21f   : > { %1025 = vst [vmem:[#allocation3 + $0x8] sm:$0xff] %v2242_v56  ;;  %v2530_v56 = vld [vmem:[#allocation17] sm:$0xff]  }
 0x225   : > { %v1342_v57 = vld [vmem:[#allocation3] sm:$0xf]  ;;  %v1404_v58 = vld [vmem:[#allocation3 + $0x4] sm:$0xf] }
 0x226   : > { %v1348_v59 = vsel %vm1346_vm2, %v1342_v57, 0  ;;  %v1409_v60 = vsel %vm1346_vm2, %v1404_v58, 0  ;;  %v1465_v40 = vld [vmem:[#allocation3 + $0x8] sm:$0xf]  ;;  %v1526_v46 = vld [vmem:[#allocation3 + $0xc] sm:$0xf] }
 0x227   : > { %2328 = vmatpush3.bf16.msra.mxu0 %v1348_v59  ;;  %2334 = vmatpush3.bf16.msra.mxu1 %v1409_v60  ;;  %v1470_v45 = vsel %vm1346_vm2, %v1465_v40, 0  ;;  %v1531_v55 = vsel %vm1346_vm2, %v1526_v46, 0  ;;  %v2531_v58 = vld [vmem:[#allocation17 + $0x48] sm:$0xff]  }
 0x228   : > { %2339 = vmatprep.subr.bf16.mxu0 %v2940_v36  ;;  %2345 = vmatprep.subr.bf16.mxu1 %v2940_v36 }
 0x2d9   : > { %v1200_v49 = vpop.f32.mrb[16].mxu0 }
 0x2da   : > { %v2307_v50 = vpop.f32.mrb[17].mxu0  ;;  %v1241_v51 = vpop.f32.mrb[16].mxu1  ;;  %v1330_v52 = vsel %vm1329_vm3, %v1200_v49, -inf }
 0x2db   : > { %v2313_v61 = vpop.f32.mrb[17].mxu1  ;;  %1331 = vmax.xlane.f32.xlu0 %v1330_v52  ;;  %v1203_v62 = vpop.f32.mrb[18].mxu0  ;;  %v1392_v2 = vsel %vm1329_vm3, %v1241_v51, -inf  ;;  %v2536_v50 = vld [vmem:[#allocation17 + $0x80] sm:$0xff]   ;;  %v2533_v52 = vld [vmem:[#allocation17 + $0x50] sm:$0xff]  }
 0x2dc   : > { %v2308_v63 = vpop.f32.mrb[19].mxu0  ;;  %v1244_v0 = vpop.f32.mrb[18].mxu1  ;;  %v2538_v61 = vld [vmem:[#allocation17 + $0xc8] sm:$0xff]   ;;  %v2535_v62 = vld [vmem:[#allocation17 + $0x10] sm:$0xff]  }
 0x2dd   : > { %v2314_v1 = vpop.f32.mrb[19].mxu1  ;;  %v2537_v63 = vld [vmem:[#allocation17 + $0x58] sm:$0xff]  }
 0x2de   : > { %v2539_v0 = vld [vmem:[#allocation17 + $0x18] sm:$0xff]   ;;  %v2541_v1 = vld [vmem:[#allocation17 + $0x60] sm:$0xff]  }
 0x2df   : > { %1393 = vmax.xlane.f32.xlu0 %v1392_v2  ;;  %v2542_v2 = vld [vmem:[#allocation17 + $0xd0] sm:$0xff]  }
 0x2e1   : > { %v1282_v3 = vpop.f32.mrb[20].mxu0 }
 0x2e2   : > { %v2319_v4 = vpop.f32.mrb[21].mxu0  ;;  %v1323_v5 = vpop.f32.mrb[20].mxu1  ;;  %v1453_v6 = vsel %vm1329_vm3, %v1282_v3, -inf }
 0x2e3   : > { %v2325_v7 = vpop.f32.mrb[21].mxu1  ;;  %1454 = vmax.xlane.f32.xlu1 %v1453_v6  ;;  %v1285_v8 = vpop.f32.mrb[22].mxu0  ;;  %v1514_v12 = vsel %vm1329_vm3, %v1323_v5, -inf  ;;  %v2544_v4 = vld [vmem:[#allocation17 + $0x90] sm:$0xff]   ;;  %v2546_v6 = vld [vmem:[#allocation17 + $0xd8] sm:$0xff]  }
 0x2e4   : > { %v2320_v9 = vpop.f32.mrb[23].mxu0  ;;  %v1326_v10 = vpop.f32.mrb[22].mxu1  ;;  %v2547_v7 = vld [vmem:[#allocation17 + $0x28] sm:$0xff]   ;;  %v2548_v8 = vld [vmem:[#allocation17 + $0x98] sm:$0xff]  }
 0x2e5   : > { %v2326_v11 = vpop.f32.mrb[23].mxu1  ;;  %v2549_v9 = vld [vmem:[#allocation17 + $0x70] sm:$0xff]   ;;  %v2550_v10 = vld [vmem:[#allocation17 + $0xe0] sm:$0xff]  }
 0x2e6   : > { %v2551_v11 = vld [vmem:[#allocation17 + $0x30] sm:$0xff]  }
 0x2e7   : > { %1515 = vmax.xlane.f32.xlu1 %v1514_v12  ;;  %v2552_v12 = vld [vmem:[#allocation17 + $0xa0] sm:$0xff]  }
 0x368   : > { %v1332_v13 = vpop.xlane.xlu0 %1331 }
 0x369   : > { %v1333_v14 = vsub.f32 %v1200_v49, %v1332_v13  ;;  %v2532_v49 = vld [vmem:[#allocation17 + $0x8] sm:$0xff]   ;;  %v2553_v13 = vld [vmem:[#allocation17 + $0x78] sm:$0xff]  }
 0x36b   : > { %v1334_v15 = vmul.f32 1.442695, %v1333_v14  ;;  %v2554_v14 = vld [vmem:[#allocation17 + $0xe8] sm:$0xff]  }
 0x36c   : > { %v1394_v16 = vpop.xlane.xlu0 %1393 }
 0x36d   : > { %2581 = vpow2.f32 %v1334_v15  ;;  %v1395_v17 = vsub.f32 %v1241_v51, %v1394_v16  ;;  %v2555_v15 = vld [vmem:[#allocation17 + $0x38] sm:$0xff]   ;;  %v2556_v16 = vld [vmem:[#allocation17 + $0xa8] sm:$0xff]  }
 0x36f   : > { %v1396_v18 = vmul.f32 1.442695, %v1395_v17  ;;  %v2559_v17 = vld [vmem:[#allocation17 + $0xf0] sm:$0xff]  }
 0x370   : > { %v1455_v19 = vpop.xlane.xlu1 %1454 }
 0x371   : > { %2583 = vpow2.f32 %v1396_v18  ;;  %v1456_v20 = vsub.f32 %v1282_v3, %v1455_v19  ;;  %v2543_v3 = vld [vmem:[#allocation17 + $0x20] sm:$0xff]   ;;  %v2560_v18 = vld [vmem:[#allocation17 + $0xb0] sm:$0xff]   ;;  %v2561_v19 = vld [vmem:[#allocation17 + $0xf8] sm:$0xff]  }
 0x373   : > { %v1457_v21 = vmul.f32 1.442695, %v1456_v20  ;;  %v2562_v20 = vld [vmem:[#allocation17 + $0xb8] sm:$0xff]  }
 0x374   : > { %v1516_v22 = vpop.xlane.xlu1 %1515 }
 0x375   : > { %2585 = vpow2.f32 %v1457_v21  ;;  %v1517_v23 = vsub.f32 %v1323_v5, %v1516_v22  ;;  %v2545_v5 = vld [vmem:[#allocation17 + $0x68] sm:$0xff]  }
 0x377   : > { %v2582_v24 = vpop.eup %2581  ;;  %v1518_v25 = vmul.f32 1.442695, %v1517_v23 }
 0x378   : > { %v1336_v26 = vsel %vm1329_vm3, %v2582_v24, 0.0 }
 0x379   : > { %2587 = vpow2.f32 %v1518_v25  ;;  %1337 = vadd.xlane.f32.xlu0 %v1336_v26 }
 0x37b   : > { %v2584_v27 = vpop.eup %2583 }
 0x37c   : > { %v1398_v28 = vsel %vm1329_vm3, %v2584_v27, 0.0 }
 0x37d   : > { %1399 = vadd.xlane.f32.xlu1 %v1398_v28 }
 0x37f   : > { %v2586_v29 = vpop.eup %2585 }
 0x380   : > { %v1459_v30 = vsel %vm1329_vm3, %v2586_v29, 0.0 }
 0x381   : > { %1460 = vadd.xlane.f32.xlu0 %v1459_v30 }
 0x383   : > { %v2588_v31 = vpop.eup %2587 }
 0x384   : > { %v1520_v32 = vsel %vm1329_vm3, %v2588_v31, 0.0 }
 0x385   : > { %1521 = vadd.xlane.f32.xlu1 %v1520_v32 }
 0x406   : > { %v1338_v33 = vpop.xlane.xlu0 %1337 }
 0x407   : > { %2589 = vrcp.f32 %v1338_v33 }
 0x40a   : > { %v1400_v34 = vpop.xlane.xlu1 %1399 }
 0x40b   : > { %2591 = vrcp.f32 %v1400_v34 }
 0x40e   : > { %v1461_v35 = vpop.xlane.xlu0 %1460 }
 0x40f   : > { %2593 = vrcp.f32 %v1461_v35 }
 0x411   : > { %v2590_v37 = vpop.eup %2589 }
 0x412   : > { %v1340_v38 = vmul.f32 %v2590_v37, %v2582_v24  ;;  %v1522_v39 = vpop.xlane.xlu1 %1521 }
 0x413   : > { %2595 = vrcp.f32 %v1522_v39 }
 0x414   : > { %v1341_v41 = vpack.c.bf16 %v1340_v38, %v1340_v38 }
 0x415   : > { %v2592_v43 = vpop.eup %2591 }
 0x416   : > { %v1402_v44 = vmul.f32 %v2592_v43, %v2584_v27  ;;  %2330 = vmatmul.mubr.msk.bf16.vlgmr.msra.gmra.mrb[24].mxu0 %vm1329_vm3, %v1341_v41 }
 0x417   : > { %2340 = vmatpush3.bf16.msra.mxu0 %v1470_v45  ;;  %2341 = vmatprep.mubr.msk.bf16.mxu0 %vm2941_vm1, %v2940_v36 }
 0x418   : > { %v1403_v47 = vpack.c.bf16 %v1402_v44, %v1402_v44  ;;  %2259 = vmatprep.subr.bf16.mxu0 %v2529_v42 }
 0x419   : > { %v2594_v53 = vpop.eup %2593 }
 0x41a   : > { %v1463_v54 = vmul.f32 %v2594_v53, %v2586_v29  ;;  %2336 = vmatmul.mubr.msk.bf16.vlgmr.msra.gmra.mrb[24].mxu1 %vm1329_vm3, %v1403_v47 }
 0x41b   : > { %2346 = vmatpush3.bf16.msra.mxu1 %v1531_v55  ;;  %2347 = vmatprep.mubr.msk.bf16.mxu1 %vm2941_vm1, %v2940_v36  ;;  %v2540_v36 = vld [vmem:[#allocation17 + $0x88] sm:$0xff]  }
 0x41c   : > { %v1464_v57 = vpack.c.bf16 %v1463_v54, %v1463_v54  ;;  %2281 = vmatprep.subr.bf16.mxu1 %v2534_v48 }
 0x41d   : > { %v2596_v59 = vpop.eup %2595 }
 0x41e   : > { %v1524_v60 = vmul.f32 %v2596_v59, %v2588_v31  ;;  %2342 = vmatmul.mubr.msk.bf16.vlgmr.msra.gmra.mrb[28].mxu0 %vm1329_vm3, %v1464_v57  ;;  %v2198_v57 = vld [vmem:[%s3555_s5] ss:$0 sm:$0xff] }
 0x41f   : > { %2260 = vmatpush3.bf16.msra.mxu0 %v2530_v56 }
 0x420   : > { %v1525_v51 = vpack.c.bf16 %v1524_v60, %v1524_v60  ;;  %2261 = vmatprep.subr.bf16.mxu0 %v2531_v58 }
 0x422   : > { %2348 = vmatmul.mubr.msk.bf16.vlgmr.msra.gmra.mrb[28].mxu1 %vm1329_vm3, %v1525_v51 }
 0x423   : > { %2262 = vmatpush3.bf16.msra.mxu0 %v2532_v49  ;;  %2282 = vmatpush3.bf16.msra.mxu1 %v2536_v50 }
 0x424   : > { %2263 = vmatprep.subr.bf16.mxu0 %v2533_v52  ;;  %2283 = vmatprep.subr.bf16.mxu1 %v2538_v61 }
 0x427   : > { %2264 = vmatpush3.bf16.msra.mxu0 %v2535_v62  ;;  %2284 = vmatpush3.bf16.msra.mxu1 %v2540_v36 }
 0x428   : > { %2265 = vmatprep.subr.bf16.mxu0 %v2537_v63  ;;  %2285 = vmatprep.subr.bf16.mxu1 %v2542_v2 }
 0x42b   : > { %2266 = vmatpush3.bf16.msra.mxu0 %v2539_v0  ;;  %2286 = vmatpush3.bf16.msra.mxu1 %v2544_v4 }
 0x42c   : > { %2267 = vmatprep.subr.bf16.mxu0 %v2541_v1  ;;  %2287 = vmatprep.subr.bf16.mxu1 %v2546_v6 }
 0x42f   : > { %2268 = vmatpush3.bf16.msra.mxu0 %v2543_v3  ;;  %2288 = vmatpush3.bf16.msra.mxu1 %v2548_v8 }
 0x430   : > { %2269 = vmatprep.subr.bf16.mxu0 %v2545_v5  ;;  %2289 = vmatprep.subr.bf16.mxu1 %v2550_v10 }
 0x433   : > { %2270 = vmatpush3.bf16.msra.mxu0 %v2547_v7  ;;  %2290 = vmatpush3.bf16.msra.mxu1 %v2552_v12 }
 0x434   : > { %2271 = vmatprep.subr.bf16.mxu0 %v2549_v9  ;;  %2291 = vmatprep.subr.bf16.mxu1 %v2554_v14 }
 0x437   : > { %2272 = vmatpush3.bf16.msra.mxu0 %v2551_v11  ;;  %2292 = vmatpush3.bf16.msra.mxu1 %v2556_v16 }
 0x438   : > { %2273 = vmatprep.subr.bf16.mxu0 %v2553_v13  ;;  %2293 = vmatprep.subr.bf16.mxu1 %v2559_v17 }
 0x43b   : > { %2274 = vmatpush3.bf16.msra.mxu0 %v2555_v15  ;;  %2294 = vmatpush3.bf16.msra.mxu1 %v2560_v18 }
 0x43c   : > { %2295 = vmatprep.subr.bf16.mxu1 %v2561_v19 }
 0x43f   : > { %2296 = vmatpush3.bf16.msra.mxu1 %v2562_v20 }
 0x4e9   : > { %v1384_v21 = vpop.f32.mrb[24].mxu0 }
 0x4ea   : > { %v1390_v22 = vpack.c.bf16 %v1384_v21, %v1384_v21  ;;  %v2331_v23 = vpop.f32.mrb[25].mxu0 }
 0x4eb   : > { %v1387_v24 = vpop.f32.mrb[26].mxu0 }
 0x4ec   : > { %1391 = vst [vmem:[#allocation4] sm:$0xf] %v1390_v22  ;;  %v2332_v25 = vpop.f32.mrb[27].mxu0 }
 0x4ed   : > { %v1445_v26 = vpop.f32.mrb[24].mxu1 }
 0x4ee   : > { %v1451_v27 = vpack.c.bf16 %v1445_v26, %v1445_v26  ;;  %v2337_v28 = vpop.f32.mrb[25].mxu1 }
 0x4ef   : > { %v1448_v29 = vpop.f32.mrb[26].mxu1 }
 0x4f0   : > { %1452 = vst [vmem:[#allocation4 + $0x4] sm:$0xf] %v1451_v27  ;;  %v2338_v30 = vpop.f32.mrb[27].mxu1 }
 0x4f1   : > { %v1506_v31 = vpop.f32.mrb[28].mxu0 }
 0x4f2   : > { %v1512_v32 = vpack.c.bf16 %v1506_v31, %v1506_v31  ;;  %v2343_v33 = vpop.f32.mrb[29].mxu0 }
 0x4f3   : > { %v1509_v34 = vpop.f32.mrb[30].mxu0 }
 0x4f4   : > { %1513 = vst [vmem:[#allocation4 + $0x8] sm:$0xf] %v1512_v32  ;;  %v2344_v35 = vpop.f32.mrb[31].mxu0 }
 0x4f5   : > { %v1567_v37 = vpop.f32.mrb[28].mxu1 }
 0x4f6   : > { %v1573_v38 = vpack.c.bf16 %v1567_v37, %v1567_v37  ;;  %v2349_v39 = vpop.f32.mrb[29].mxu1 }
 0x4f7   : > { %v1570_v40 = vpop.f32.mrb[30].mxu1  ;;  %v1575_v41 = vld [vmem:[#allocation4] sm:$0xff] }
 0x4f8   : > { %1574 = vst [vmem:[#allocation4 + $0xc] sm:$0xf] %v1573_v38  ;;  %v2350_v42 = vpop.f32.mrb[31].mxu1  ;;  %v2199_v43 = vcombine.low %v1575_v41, %v1575_v41  ;;  %v2200_v44 = vcombine.high %v1575_v41, %v1575_v41 }
 0x4fa   : > { %1886 = vmatprep.mubr.bf16.mxu0 %v2200_v44 }
 0x4fb   : > { %1887 = vmatmul.mubr.bf16.vlgmr.msra.gmra.mrb[32].mxu0 %v2199_v43 }
 0x4ff   : > { %v1576_v45 = vld [vmem:[#allocation4 + $0x8] sm:$0xff] }
 0x500   : > { %v2201_v46 = vcombine.low %v1576_v45, %v1576_v45  ;;  %v2202_v47 = vcombine.high %v1576_v45, %v1576_v45 }
 0x502   : > { %1926 = vmatprep.mubr.bf16.mxu1 %v2202_v47 }
 0x503   : > { %1927 = vmatmul.mubr.bf16.vlgmr.msra.gmra.mrb[32].mxu1 %v2201_v46 }
 0x5ce   : > { %v2275_v48 = vpop.f32.mrb[32].mxu0 }
 0x5cf   : > { %v2276_v53 = vpop.f32.mrb[33].mxu0 }
 0x5d0   : > { %v2277_v54 = vadd.f32 %v2276_v53, %v2275_v48  ;;  %v2278_v55 = vpop.f32.mrb[34].mxu0 }
 0x5d1   : > { %v2279_v56 = vpop.f32.mrb[35].mxu0 }
 0x5d2   : > { %v1889_v60 = vadd.f32 %v2277_v54, %v2198_v57 }
 0x5d6   : > { %v2297_v58 = vpop.f32.mrb[32].mxu1 }
 0x5d7   : > { %v2298_v59 = vpop.f32.mrb[33].mxu1 }
 0x5d8   : > { %v2299_v49 = vadd.f32 %v2298_v59, %v2297_v58  ;;  %v2300_v50 = vpop.f32.mrb[34].mxu1 }
 0x5d9   : > { %v2301_v51 = vpop.f32.mrb[35].mxu1 }
 0x5da   : > { %v1929_v52 = vadd.f32 %v2299_v49, %v1889_v60 }
 0x5dc   : > { %1934 = vst [vmem:[%s535_s28] sm:$0xff] %v1929_v52 }
 0x5dd   : > { %2840 = shalt.err (!%p2837_p2)
}
 0x5de   : > { %s2841_s17 = scalar_lea.hbm %s3425_s22, 128  ;;  %s2845_s21 = scalar_lea.hbm %s3557_s25, 256 }
 0x5df   : > { %p2842_p8 = scmp.ne.s32.totalorder %s3425_s22, %s2841_s17  ;;  %p2846_p10 = scmp.lt.u32.totalorder %s3425_s22, %s3557_s25 }
 0x5e0   : > { %p2847_p13 = scmp.lt.u32.totalorder %s2845_s21, %s2841_s17  ;;  %p2849_p6 = scmp.lt.u32.totalorder %s2841_s17, %s3425_s22 }
 0x5e1   : > { %p2843_p0 = pnand %p2842_p8, %p3558_p1 }
 0x5e2   : > { %p2848_p3 = por %p2847_p13, %p2846_p10 }
 0x5e3   : > { %p2844_p4 = pneg %p2843_p0 }
 0x5e4   : > { %p2850_p12 = por %p2849_p6, %p2848_p3 }
 0x5e6   : > { %p2851_p9 = pnand %p2850_p12, %p2844_p4 }
 0x5e8   : > { %2854 = shalt.err (!%p2851_p9)
}
 0x5e9   : > { %2377 = dma.vmem_to_hbm [thread:$0]  (%p3558_p1), %s3427_s29, 128, %s3425_s22, %s1936_s4  }
 0x5ea PF: > { %s3559_s27 = sld [smem:[#allocation26_spill]]  ;;  %s3560_s16 = sld [smem:[#allocation33_spill]] }
 0x5eb   : > { %s3561_s3 = sld [smem:[#allocation29_spill]] }
 0x5f0   : > { %s1962_s23 = sand.u32 1, %s3559_s27   ;;  %p3562_p7 = scmp.ne.s32.totalorder %s3560_s16, 0 }
 0x5f1   : > { %p3563_p11 = scmp.ge.s32.totalorder %s3561_s3, 2  ;;  %s1963_s5 = scalar_lea.sflag [#allocation7], %s1962_s23 }
 0x5f3   : > { %p2406_p5 = pnand %p3563_p11, %p3562_p7 }
 0x5f5   : > { %2900 = dma.done.wait (!%p2406_p5), %s1963_s5, 128  }
 0x5f6   : > { %2902 = vsyncadd (!%p2406_p5), %s1963_s5, 4294967168  ;;  %s32_s18 = sadd.s32 1, %s3561_s3   ;;  %s3564_s1 = sld [smem:[#allocation32_spill]] }
 0x5f7   : > { %p29_p2 = scmp.ge.s32.totalorder %s32_s18, 4   ;;  %s3565_s16 = sld [smem:[#allocation28_spill]] }
 0x5f8   : > { %s3566_s17 = sld [smem:[#allocation30_spill]]  ;;  %s3567_s13 = smov %s2909_s14 }
 0x5f9   : > { %s3568_s14 = smov %s2913_s15  ;;  %31 = sbr.rel (!%p29_p2) target bundleno = 18 (0x12), region = 153 }
 0x5fc   : > { %s3569_s15 = smov %s3564_s1 }
 0x600   :  { %1968 = vsyncpa [#allocation6], 1 }
 0x601   :  { %1970 = vsyncpa [#allocation6 + $0x1], 1 }
 0x602   :  { %1971 = vsyncpa [#allocation9], 1 }
 0x603   :  { %1973 = vsyncpa [#allocation9 + $0x1], 1 }
 0x604   :  { %1974 = vsyncpa [#allocation12], 1 }
 0x605   :  { %1975 = vsyncpa [#allocation15], 1 }
 0x606   :  { %1976 = vsyncpa [#allocation18], 1 }
 0x607   :  { %1977 = vsyncpa [#allocation7], 1 }
 0x608   :  { %1979 = vsyncpa [#allocation7 + $0x1], 1 }

</bundles_post_ra>
